<compile_context>
chip_gen: v7x
topology: tpu7x:2x2x1
jax: 0.10.0
libtpu: 0.0.40
codegen_flags: <defaults>
</compile_context>

<pallas_src>
import functools

import jax
import jax.numpy as jnp
from jax.experimental import pallas as pl
from jax.experimental.pallas import tpu as pltpu


# ----------------------------- VMEM budgeting -------------------------------
def _vmem_config():
    """Generation-aware VMEM sizing.

    v5e/v6e have 128 MiB of physical VMEM per TensorCore, v7x has 64 MiB.
    Use ~half of physical as the Mosaic scoped limit and ~70% of that as the
    band-tiling budget (v5e/v6e -> 64 / ~45 MiB, v7x -> 32 / ~22 MiB)."""
    try:
        phys = int(pltpu.get_tpu_info().vmem_capacity_bytes)
    except Exception:
        phys = 64 * 1024 * 1024
    limit = max(32 * 1024 * 1024, min(phys // 2, 96 * 1024 * 1024))
    return limit, int(limit * 0.7)


_SQRT_2_OVER_PI = 0.7978845608028654


def _gelu_tanh(x):
    # tanh-form GELU: the tanh goes to the EUP slot (idle in this kernel) and
    # costs about half the VALU work of an erf rational approximation.
    # Deviation from exact erf GELU (nn.GELU default) is < ~5e-4 absolute;
    # swap in an erf implementation here if bit-level parity is required.
    return 0.5 * x * (1.0 + jnp.tanh(_SQRT_2_OVER_PI * (x + 0.044715 * x * x * x)))


# ------------------------------ fused kernel --------------------------------
def _mlp_fused_kernel(*refs, TH, W, has_halo):
    """fc1 + ReLU + depthwise 3x3 conv + GELU + fc2 for one H-row band."""
    if has_halo:
        (x_mid_ref, x_top_ref, x_bot_ref, w1_ref, b1_ref, wdw_ref, bdw_ref,
         w2_ref, b2_ref, o_ref, hpad_ref) = refs
    else:
        (x_mid_ref, w1_ref, b1_ref, wdw_ref, bdw_ref,
         w2_ref, b2_ref, o_ref, hpad_ref) = refs
        x_top_ref = x_bot_ref = None

    n_tok = TH * W
    C_h = hpad_ref.shape[-1]
    j = pl.program_id(1)

    w1 = w1_ref[...]                              # storage dtype (bf16 fast path)
    b1 = b1_ref[...].astype(jnp.float32)          # (1, C_h)

    def fc1(xv):
        # MXU matmul in the storage dtype, f32 accumulation.
        h = jnp.dot(xv, w1, preferred_element_type=jnp.float32)
        return jnp.maximum(h + b1, 0.0)

    # fc1 + ReLU for the band interior.  Keep the f32 value live: it is also
    # the (oh=0, ow=0) conv tap, so the centre tap never reloads from VMEM.
    h_mid = fc1(x_mid_ref[0])                     # (n_tok, C_h) f32
    hpad_ref[W + 1:W + 1 + n_tok, :] = h_mid

    # Halo rows: the image row directly above / below the band.  At the image
    # top/bottom edge the conv padding is zero, so scale the (cheap, W-row)
    # fc1 result by a 0/1 scalar instead of branching around the matmul.
    zeros_row = jnp.zeros((W, C_h), jnp.float32)
    if has_halo:
        top_scale = (j > 0).astype(jnp.float32)
        bot_scale = (j < pl.num_programs(1) - 1).astype(jnp.float32)
        hpad_ref[1:W + 1, :] = fc1(x_top_ref[0]) * top_scale
        hpad_ref[W + 1 + n_tok:W + 1 + n_tok + W, :] = fc1(x_bot_ref[0]) * bot_scale
    else:
        # one band per image -> both halos are the zero conv padding
        hpad_ref[1:W + 1, :] = zeros_row
        hpad_ref[W + 1 + n_tok:W + 1 + n_tok + W, :] = zeros_row

    # Corner rows are only read by taps that the edge masks select away; zero
    # them anyway so the scratch never carries junk across grid steps.
    hpad_ref[0:1, :] = zeros_row[0:1]
    hpad_ref[n_tok + 2 * W + 1:n_tok + 2 * W + 2, :] = zeros_row[0:1]

    # ---- depthwise 3x3 conv on the flattened (n_tok, C_h) layout ----
    # Column masks kill taps that would wrap across image rows; grouping the
    # three ow==-1 taps and the three ow==+1 taps needs 2 selects instead of 6.
    col = jax.lax.broadcasted_iota(jnp.int32, (n_tok, 1), 0) % W
    not_left = col != 0
    not_right = col != (W - 1)

    wdw = wdw_ref[...].astype(jnp.float32)        # (9, C_h), row k == (kh, kw)
    bdw = bdw_ref[...].astype(jnp.float32)        # (1, C_h)

    def tap(oh, ow):
        start = (W + 1) + oh * W + ow             # static slice start
        return hpad_ref[start:start + n_tok, :]

    acc_left = (tap(-1, -1) * wdw[0:1] + tap(0, -1) * wdw[3:4]
                + tap(1, -1) * wdw[6:7])
    acc_mid = (tap(-1, 0) * wdw[1:2] + h_mid * wdw[4:5]
               + tap(1, 0) * wdw[7:8])
    acc_right = (tap(-1, 1) * wdw[2:3] + tap(0, 1) * wdw[5:6]
                 + tap(1, 1) * wdw[8:9])
    conv = (jnp.where(not_left, acc_left, 0.0) + acc_mid
            + jnp.where(not_right, acc_right, 0.0) + bdw)

    act = _gelu_tanh(conv)
    # TODO(synk): nn.Dropout(drop) is the identity here (drop=0.0 / eval mode);
    # training-mode dropout is not implemented.
    y = jnp.dot(act.astype(w2_ref.dtype), w2_ref[...],
                preferred_element_type=jnp.float32)
    y = y + b2_ref[...].astype(jnp.float32)
    o_ref[0] = y.astype(o_ref.dtype)


# --------------------------------- wrapper ----------------------------------
def _const_spec(shape, single_buffer):
    """BlockSpec for a grid-invariant operand (weights / biases).

    With single_buffer=True the operand lives in one VMEM buffer
    (pl.Buffered(1)) — fetched once, never re-fetched — halving its footprint."""
    idx = lambda *_: (0,) * len(shape)
    if single_buffer:
        return pl.BlockSpec(shape, idx, pipeline_mode=pl.Buffered(1))
    return pl.BlockSpec(shape, idx)


def _pick_band_rows(B, H, W, c_in, c_h, c_out, itemsize, budget, max_rows):
    """Largest divisor of H whose per-step footprint fits the VMEM budget."""
    def footprint(th):
        n_tok = th * W
        sz = itemsize
        x_bufs = 2 * n_tok * c_in * sz + 4 * W * c_in * sz        # double-buffered
        out_bufs = 2 * n_tok * c_out * sz
        w_bufs = 2 * (c_in * c_h + c_h * c_out + 11 * c_h + c_out) * sz
        hpad = (n_tok + 2 * W + 2) * c_h * 4                      # f32 scratch
        temps = (n_tok * (5 * c_h + 2 * c_out) + 2 * W * c_h) * 4  # f32 live values
        return x_bufs + out_bufs + w_bufs + hpad + temps

    divisors = [d for d in range(1, H + 1) if H % d == 0 and d <= max_rows]
    fitting = [d for d in divisors if footprint(d) <= budget] or [min(divisors)]
    th = max(fitting)
    if B == 1 and th == H:
        # keep >= 2 grid steps so both v7x TensorCores get work, but only if a
        # ~2-band split exists (avoid tiny bands with large halo redundancy)
        halves = [d for d in fitting if d < H and 2 * d >= H]
        if halves:
            th = max(halves)
    return th


def _mlp_forward_impl(x, params, H, W, single_buffer_weights, max_rows_per_band):
    w1, b1, w_dw, b_dw, w2, b2 = params
    B, N, C_in = x.shape
    assert N == H * W, "token count must equal H * W"
    C_h = w1.shape[1]
    C_out = w2.shape[1]
    itemsize = jnp.dtype(x.dtype).itemsize

    vmem_limit, vmem_budget = _vmem_config()
    max_rows = H if max_rows_per_band is None else max(1, min(max_rows_per_band, H))

    # Band-tiled path needs W-token halo blocks, whose (8,128) tiling rule
    # requires W % 8 == 0; otherwise run one whole image per grid step (the
    # conv halos are then the all-zero padding rows).
    # TODO(synk): an H-tiled halo pipeline for W % 8 != 0 AND very large images.
    has_halo = (W % 8 == 0) and (H > 1)
    if has_halo:
        TH = _pick_band_rows(B, H, W, C_in, C_h, C_out, itemsize,
                             vmem_budget, max_rows)
        has_halo = TH < H
    if not has_halo:
        TH = H
    nbands = H // TH
    n_tok = TH * W
    sb = single_buffer_weights

    in_specs = [pl.BlockSpec((1, n_tok, C_in), lambda b, j: (b, j, 0))]
    call_args = [x]
    if has_halo:
        in_specs += [
            pl.BlockSpec((1, W, C_in),
                         lambda b, j: (b, jnp.maximum(j * TH - 1, 0), 0)),
            pl.BlockSpec((1, W, C_in),
                         lambda b, j: (b, jnp.minimum(j * TH + TH, H - 1), 0)),
        ]
        call_args += [x, x]
    in_specs += [
        _const_spec((C_in, C_h), sb),
        _const_spec((1, C_h), sb),
        _const_spec((9, C_h), sb),
        _const_spec((1, C_h), sb),
        _const_spec((C_h, C_out), sb),
        _const_spec((1, C_out), sb),
    ]
    call_args += [w1, b1.reshape(1, C_h), w_dw.reshape(9, C_h),
                  b_dw.reshape(1, C_h), w2, b2.reshape(1, C_out)]

    halo_rows = 2 * B * nbands * W if has_halo else 0
    flops = (2 * B * N * C_in * C_h + 2 * halo_rows * C_in * C_h
             + 18 * B * N * C_h + 2 * B * N * C_h * C_out)
    bytes_accessed = ((B * N * (C_in + C_out) + halo_rows * C_in
                       + C_in * C_h + C_h * C_out + 11 * C_h + C_out) * itemsize)

    kernel = functools.partial(_mlp_fused_kernel, TH=TH, W=W, has_halo=has_halo)
    return pl.pallas_call(
        kernel,
        out_shape=jax.ShapeDtypeStruct((B, N, C_out), x.dtype),
        grid_spec=pltpu.PrefetchScalarGridSpec(
            num_scalar_prefetch=0,
            grid=(B, nbands),
            in_specs=in_specs,
            out_specs=pl.BlockSpec((1, n_tok, C_out), lambda b, j: (b, j, 0)),
            scratch_shapes=[pltpu.VMEM((n_tok + 2 * W + 2, C_h), jnp.float32)],
        ),
        compiler_params=pltpu.CompilerParams(
            dimension_semantics=("parallel", "parallel"),
            vmem_limit_bytes=vmem_limit),
        cost_estimate=pl.CostEstimate(flops=flops,
                                      transcendentals=B * N * C_h,
                                      bytes_accessed=bytes_accessed),
    )(*call_args)


def mlp_forward(x, params, H, W, *, single_buffer_weights=True,
                max_rows_per_band=None):
    """Fused Mlp forward.  x: (B, N, C_in) with N == H * W.

    params = (w1, b1, w_dw, b_dw, w2, b2):
      w1: (C_in, C_h)    fc1 weight, applied as x @ w1  (== PyTorch weight.T)
      b1: (C_h,)
      w_dw: (3, 3, C_h)  depthwise weight, w_dw[kh, kw, c] == torch_w[c, 0, kh, kw]
      b_dw: (C_h,)
      w2: (C_h, C_out)   fc2 weight, applied as h @ w2  (== PyTorch weight.T)
      b2: (C_out,)
    Pass bf16 activations/weights to hit the bf16 MXU fast path."""
    if single_buffer_weights:
        try:
            return _mlp_forward_impl(x, params, H, W, True, max_rows_per_band)
        except Exception:
            # pl.Buffered(1) single-buffering of grid-invariant weights may be
            # unavailable on some JAX versions; retry with default buffering.
            pass
    return _mlp_forward_impl(x, params, H, W, False, max_rows_per_band)


# ------------------------------ pure-JAX reference ---------------------------
def _reference(x, params, H, W):
    w1, b1, w_dw, b_dw, w2, b2 = params
    B, N, _ = x.shape
    prec = jax.lax.Precision.HIGHEST
    h = jnp.maximum(jnp.dot(x, w1, precision=prec) + b1, 0.0)
    himg = h.reshape(B, H, W, -1)
    hpad = jnp.pad(himg, ((0, 0), (1, 1), (1, 1), (0, 0)))
    conv = jnp.zeros_like(himg)
    for kh in range(3):
        for kw in range(3):
            conv = conv + hpad[:, kh:kh + H, kw:kw + W, :] * w_dw[kh, kw]
    conv = conv + b_dw
    act = jax.nn.gelu(conv, approximate=False)        # exact GELU == nn.GELU()
    out = jnp.dot(act.reshape(B, N, -1), w2, precision=prec) + b2
    return out


# ----------------------------------- demo ------------------------------------
def _make_case(key, B, H, W, c_in, c_h, c_out, dtype):
    ks = jax.random.split(key, 7)
    N = H * W
    x = jax.random.normal(ks[0], (B, N, c_in), jnp.float32)
    w1 = jax.random.normal(ks[1], (c_in, c_h), jnp.float32) / jnp.sqrt(c_in)
    b1 = 0.02 * jax.random.normal(ks[2], (c_h,), jnp.float32)
    w_dw = jax.random.normal(ks[3], (3, 3, c_h), jnp.float32) * jnp.sqrt(2.0 / 9.0)
    b_dw = 0.02 * jax.random.normal(ks[4], (c_h,), jnp.float32)
    w2 = jax.random.normal(ks[5], (c_h, c_out), jnp.float32) / jnp.sqrt(c_h)
    b2 = 0.02 * jax.random.normal(ks[6], (c_out,), jnp.float32)
    params = (w1, b1, w_dw, b_dw, w2, b2)
    # bf16 copies drive the MXU-native fast path in the kernel
    return x.astype(dtype), tuple(p.astype(dtype) for p in params)


def _check(x, params, H, W, **kw):
    out = jax.block_until_ready(mlp_forward(x, params, H, W, **kw))
    ref = _reference(x.astype(jnp.float32),
                     tuple(p.astype(jnp.float32) for p in params), H, W)
    assert out.shape == ref.shape
    out_f = out.astype(jnp.float32)
    err = float(jnp.max(jnp.abs(out_f - ref)))
    # Tolerance budget: bf16 rounding of act / output + tanh-GELU (~5e-4) vs
    # exact erf GELU; an f32 run matches to ~1e-5.
    assert jnp.allclose(out_f, ref, atol=5e-2, rtol=5e-2), (
        f"mismatch vs reference: max abs err {err}")


if __name__ == "__main__":
    key = jax.random.PRNGKey(0)
    k1, k2 = jax.random.split(key)

    # main config: bf16 activations/weights, lane-dense channel dims
    B, H, W = 2, 8, 8
    x, params = _make_case(k1, B, H, W, 128, 256, 128, jnp.bfloat16)
    _check(x, params, H, W)                           # one band per image
    _check(x, params, H, W, max_rows_per_band=4)      # band-tiled path w/ halos

    # W not a multiple of 8 -> whole-image (no-halo) fallback path
    x2, params2 = _make_case(k2, 1, 4, 4, 128, 128, 128, jnp.bfloat16)
    _check(x2, params2, 4, 4)

    print("KERNEL_OK")
</pallas_src>

<mosaic_0001>
module attributes {stable_mosaic.version = 11 : i64} {
  func.func @_mlp_fused_kernel(%arg0: i32, %arg1: i32, %arg2: memref<1x64x128xbf16, #tpu.memory_space<vmem>>, %arg3: memref<128x256xbf16, #tpu.memory_space<vmem>>, %arg4: memref<1x256xbf16, #tpu.memory_space<vmem>>, %arg5: memref<9x256xbf16, #tpu.memory_space<vmem>>, %arg6: memref<1x256xbf16, #tpu.memory_space<vmem>>, %arg7: memref<256x128xbf16, #tpu.memory_space<vmem>>, %arg8: memref<1x128xbf16, #tpu.memory_space<vmem>>, %arg9: memref<1x64x128xbf16, #tpu.memory_space<vmem>>, %arg10: memref<82x256xf32, #tpu.memory_space<vmem>>) attributes {dimension_semantics = [#tpu.dimension_semantics<parallel>, #tpu.dimension_semantics<parallel>], iteration_bounds = array<i64: 2, 1>, scalar_prefetch = 0 : i64, scratch_operands = 1 : i64, tpu.core_type = #tpu.core_type<tc>, window_params = [{transform_indices = @transform_0, window_bounds = array<i64: 1, 64, 128>}, {pipeline_mode = #tpu.pipeline_mode<synchronous>, transform_indices = @transform_1, window_bounds = array<i64: 128, 256>}, {pipeline_mode = #tpu.pipeline_mode<synchronous>, transform_indices = @transform_2, window_bounds = array<i64: 1, 256>}, {pipeline_mode = #tpu.pipeline_mode<synchronous>, transform_indices = @transform_3, window_bounds = array<i64: 9, 256>}, {pipeline_mode = #tpu.pipeline_mode<synchronous>, transform_indices = @transform_4, window_bounds = array<i64: 1, 256>}, {pipeline_mode = #tpu.pipeline_mode<synchronous>, transform_indices = @transform_5, window_bounds = array<i64: 256, 128>}, {pipeline_mode = #tpu.pipeline_mode<synchronous>, transform_indices = @transform_6, window_bounds = array<i64: 1, 128>}, {transform_indices = @transform_7, window_bounds = array<i64: 1, 64, 128>}]} {
    %c0 = arith.constant 0 : index
    %c0_0 = arith.constant 0 : index
    %0 = vector.load %arg3[%c0, %c0_0] : memref<128x256xbf16, #tpu.memory_space<vmem>>, vector<128x256xbf16>
    %c0_1 = arith.constant 0 : index
    %c0_2 = arith.constant 0 : index
    %1 = vector.load %arg4[%c0_1, %c0_2] : memref<1x256xbf16, #tpu.memory_space<vmem>>, vector<1x256xbf16>
    %2 = arith.extf %1 : vector<1x256xbf16> to vector<1x256xf32>
    %c0_3 = arith.constant 0 : index
    %c0_4 = arith.constant 0 : index
    %c0_5 = arith.constant 0 : index
    %3 = vector.load %arg2[%c0_3, %c0_4, %c0_5] : memref<1x64x128xbf16, #tpu.memory_space<vmem>>, vector<1x64x128xbf16>
    %4 = vector.shape_cast %3 : vector<1x64x128xbf16> to vector<64x128xbf16>
    %cst = arith.constant dense<0.000000e+00> : vector<64x256xf32>
    %5 = tpu.matmul %4, %0, %cst {dimension_numbers = #tpu.dot_dimension_numbers<[1], [0], [0], [1], [0, 0, 1, 1], [], []>} : vector<64x128xbf16>, vector<128x256xbf16>, vector<64x256xf32> -> vector<64x256xf32>
    %6 = vector.broadcast %2 : vector<1x256xf32> to vector<64x256xf32>
    %7 = arith.addf %5, %6 : vector<64x256xf32>
    %cst_6 = arith.constant 0.000000e+00 : f32
    %8 = vector.broadcast %cst_6 : f32 to vector<64x256xf32>
    %9 = arith.maximumf %7, %8 : vector<64x256xf32>
    %c9 = arith.constant 9 : index
    %c0_7 = arith.constant 0 : index
    %10 = vector.load %arg10[%c9, %c0_7] : memref<82x256xf32, #tpu.memory_space<vmem>>, vector<64x256xf32>
    tpu.vector_store %arg10[%c9, %c0_7], %9 {strides = array<i32>} : memref<82x256xf32, #tpu.memory_space<vmem>>, vector<64x256xf32>,
    %cst_8 = arith.constant 0.000000e+00 : f32
    %11 = vector.broadcast %cst_8 : f32 to vector<8x256xf32>
    %c1 = arith.constant 1 : index
    %c0_9 = arith.constant 0 : index
    %12 = vector.load %arg10[%c1, %c0_9] : memref<82x256xf32, #tpu.memory_space<vmem>>, vector<8x256xf32>
    tpu.vector_store %arg10[%c1, %c0_9], %11 {strides = array<i32>} : memref<82x256xf32, #tpu.memory_space<vmem>>, vector<8x256xf32>,
    %c73 = arith.constant 73 : index
    %c0_10 = arith.constant 0 : index
    %13 = vector.load %arg10[%c73, %c0_10] : memref<82x256xf32, #tpu.memory_space<vmem>>, vector<8x256xf32>
    tpu.vector_store %arg10[%c73, %c0_10], %11 {strides = array<i32>} : memref<82x256xf32, #tpu.memory_space<vmem>>, vector<8x256xf32>,
    %14 = vector.extract_strided_slice %11 {offsets = [0, 0], sizes = [1, 256], strides = [1, 1]} : vector<8x256xf32> to vector<1x256xf32>
    %c0_11 = arith.constant 0 : index
    %c0_12 = arith.constant 0 : index
    %15 = vector.load %arg10[%c0_11, %c0_12] : memref<82x256xf32, #tpu.memory_space<vmem>>, vector<1x256xf32>
    tpu.vector_store %arg10[%c0_11, %c0_12], %14 {strides = array<i32>} : memref<82x256xf32, #tpu.memory_space<vmem>>, vector<1x256xf32>,
    %16 = vector.extract_strided_slice %11 {offsets = [0, 0], sizes = [1, 256], strides = [1, 1]} : vector<8x256xf32> to vector<1x256xf32>
    %c81 = arith.constant 81 : index
    %c0_13 = arith.constant 0 : index
    %17 = vector.load %arg10[%c81, %c0_13] : memref<82x256xf32, #tpu.memory_space<vmem>>, vector<1x256xf32>
    tpu.vector_store %arg10[%c81, %c0_13], %16 {strides = array<i32>} : memref<82x256xf32, #tpu.memory_space<vmem>>, vector<1x256xf32>,
    %18 = tpu.iota {dimensions = array<i32: 0>} : vector<64x1xi32>
    %c8_i32 = arith.constant 8 : i32
    %c0_i32 = arith.constant 0 : i32
    %19 = arith.cmpi eq, %c8_i32, %c0_i32 : i32
    %c1_i32 = arith.constant 1 : i32
    %20 = arith.select %19, %c1_i32, %c8_i32 : i32
    %21 = vector.broadcast %20 : i32 to vector<64x1xi32>
    %22 = arith.remsi %18, %21 : vector<64x1xi32>
    %c0_i32_14 = arith.constant 0 : i32
    %23 = vector.broadcast %c0_i32_14 : i32 to vector<64x1xi32>
    %24 = arith.cmpi ne, %22, %23 : vector<64x1xi32>
    %c0_i32_15 = arith.constant 0 : i32
    %25 = vector.broadcast %c0_i32_15 : i32 to vector<64x1xi32>
    %26 = arith.cmpi slt, %22, %25 : vector<64x1xi32>
    %c0_i32_16 = arith.constant 0 : i32
    %27 = arith.cmpi slt, %20, %c0_i32_16 : i32
    %28 = vector.broadcast %27 : i1 to vector<64x1xi1>
    %29 = vector.broadcast %28 : vector<64x1xi1> to vector<64x1xi1>
    %30 = arith.xori %26, %29 : vector<64x1xi1>
    %31 = arith.andi %30, %24 : vector<64x1xi1>
    %32 = vector.broadcast %20 : i32 to vector<64x1xi32>
    %33 = arith.addi %22, %32 : vector<64x1xi32>
    %34 = arith.select %31, %33, %22 : vector<64x1xi1>, vector<64x1xi32>
    %c0_i32_17 = arith.constant 0 : i32
    %35 = vector.broadcast %c0_i32_17 : i32 to vector<64x1xi32>
    %36 = arith.cmpi ne, %34, %35 : vector<64x1xi32>
    %c7_i32 = arith.constant 7 : i32
    %37 = vector.broadcast %c7_i32 : i32 to vector<64x1xi32>
    %38 = arith.cmpi ne, %34, %37 : vector<64x1xi32>
    %c0_18 = arith.constant 0 : index
    %c0_19 = arith.constant 0 : index
    %39 = vector.load %arg5[%c0_18, %c0_19] : memref<9x256xbf16, #tpu.memory_space<vmem>>, vector<9x256xbf16>
    %40 = arith.extf %39 : vector<9x256xbf16> to vector<9x256xf32>
    %c0_20 = arith.constant 0 : index
    %c0_21 = arith.constant 0 : index
    %41 = vector.load %arg6[%c0_20, %c0_21] : memref<1x256xbf16, #tpu.memory_space<vmem>>, vector<1x256xbf16>
    %42 = arith.extf %41 : vector<1x256xbf16> to vector<1x256xf32>
    %c0_22 = arith.constant 0 : index
    %c0_23 = arith.constant 0 : index
    %43 = vector.load %arg10[%c0_22, %c0_23] : memref<82x256xf32, #tpu.memory_space<vmem>>, vector<64x256xf32>
    %44 = vector.extract_strided_slice %40 {offsets = [0, 0], sizes = [1, 256], strides = [1, 1]} : vector<9x256xf32> to vector<1x256xf32>
    %45 = vector.broadcast %44 : vector<1x256xf32> to vector<64x256xf32>
    %46 = arith.mulf %43, %45 : vector<64x256xf32>
    %c8 = arith.constant 8 : index
    %c0_24 = arith.constant 0 : index
    %47 = vector.load %arg10[%c8, %c0_24] : memref<82x256xf32, #tpu.memory_space<vmem>>, vector<64x256xf32>
    %48 = vector.extract_strided_slice %40 {offsets = [3, 0], sizes = [1, 256], strides = [1, 1]} : vector<9x256xf32> to vector<1x256xf32>
    %49 = vector.broadcast %48 : vector<1x256xf32> to vector<64x256xf32>
    %50 = arith.mulf %47, %49 : vector<64x256xf32>
    %51 = arith.addf %46, %50 : vector<64x256xf32>
    %c16 = arith.constant 16 : index
    %c0_25 = arith.constant 0 : index
    %52 = vector.load %arg10[%c16, %c0_25] : memref<82x256xf32, #tpu.memory_space<vmem>>, vector<64x256xf32>
    %53 = vector.extract_strided_slice %40 {offsets = [6, 0], sizes = [1, 256], strides = [1, 1]} : vector<9x256xf32> to vector<1x256xf32>
    %54 = vector.broadcast %53 : vector<1x256xf32> to vector<64x256xf32>
    %55 = arith.mulf %52, %54 : vector<64x256xf32>
    %56 = arith.addf %51, %55 : vector<64x256xf32>
    %c1_26 = arith.constant 1 : index
    %c0_27 = arith.constant 0 : index
    %57 = vector.load %arg10[%c1_26, %c0_27] : memref<82x256xf32, #tpu.memory_space<vmem>>, vector<64x256xf32>
    %58 = vector.extract_strided_slice %40 {offsets = [1, 0], sizes = [1, 256], strides = [1, 1]} : vector<9x256xf32> to vector<1x256xf32>
    %59 = vector.broadcast %58 : vector<1x256xf32> to vector<64x256xf32>
    %60 = arith.mulf %57, %59 : vector<64x256xf32>
    %61 = vector.extract_strided_slice %40 {offsets = [4, 0], sizes = [1, 256], strides = [1, 1]} : vector<9x256xf32> to vector<1x256xf32>
    %62 = vector.broadcast %61 : vector<1x256xf32> to vector<64x256xf32>
    %63 = arith.mulf %9, %62 : vector<64x256xf32>
    %64 = arith.addf %60, %63 : vector<64x256xf32>
    %c17 = arith.constant 17 : index
    %c0_28 = arith.constant 0 : index
    %65 = vector.load %arg10[%c17, %c0_28] : memref<82x256xf32, #tpu.memory_space<vmem>>, vector<64x256xf32>
    %66 = vector.extract_strided_slice %40 {offsets = [7, 0], sizes = [1, 256], strides = [1, 1]} : vector<9x256xf32> to vector<1x256xf32>
    %67 = vector.broadcast %66 : vector<1x256xf32> to vector<64x256xf32>
    %68 = arith.mulf %65, %67 : vector<64x256xf32>
    %69 = arith.addf %64, %68 : vector<64x256xf32>
    %c2 = arith.constant 2 : index
    %c0_29 = arith.constant 0 : index
    %70 = vector.load %arg10[%c2, %c0_29] : memref<82x256xf32, #tpu.memory_space<vmem>>, vector<64x256xf32>
    %71 = vector.extract_strided_slice %40 {offsets = [2, 0], sizes = [1, 256], strides = [1, 1]} : vector<9x256xf32> to vector<1x256xf32>
    %72 = vector.broadcast %71 : vector<1x256xf32> to vector<64x256xf32>
    %73 = arith.mulf %70, %72 : vector<64x256xf32>
    %c10 = arith.constant 10 : index
    %c0_30 = arith.constant 0 : index
    %74 = vector.load %arg10[%c10, %c0_30] : memref<82x256xf32, #tpu.memory_space<vmem>>, vector<64x256xf32>
    %75 = vector.extract_strided_slice %40 {offsets = [5, 0], sizes = [1, 256], strides = [1, 1]} : vector<9x256xf32> to vector<1x256xf32>
    %76 = vector.broadcast %75 : vector<1x256xf32> to vector<64x256xf32>
    %77 = arith.mulf %74, %76 : vector<64x256xf32>
    %78 = arith.addf %73, %77 : vector<64x256xf32>
    %c18 = arith.constant 18 : index
    %c0_31 = arith.constant 0 : index
    %79 = vector.load %arg10[%c18, %c0_31] : memref<82x256xf32, #tpu.memory_space<vmem>>, vector<64x256xf32>
    %80 = vector.extract_strided_slice %40 {offsets = [8, 0], sizes = [1, 256], strides = [1, 1]} : vector<9x256xf32> to vector<1x256xf32>
    %81 = vector.broadcast %80 : vector<1x256xf32> to vector<64x256xf32>
    %82 = arith.mulf %79, %81 : vector<64x256xf32>
    %83 = arith.addf %78, %82 : vector<64x256xf32>
    %cst_32 = arith.constant 0.000000e+00 : f32
    %84 = vector.shape_cast %36 : vector<64x1xi1> to vector<64x1xi1>
    %85 = vector.broadcast %84 : vector<64x1xi1> to vector<64x256xi1>
    %86 = vector.broadcast %cst_32 : f32 to vector<64x256xf32>
    %87 = arith.select %85, %56, %86 : vector<64x256xi1>, vector<64x256xf32>
    %88 = arith.addf %87, %69 : vector<64x256xf32>
    %cst_33 = arith.constant 0.000000e+00 : f32
    %89 = vector.shape_cast %38 : vector<64x1xi1> to vector<64x1xi1>
    %90 = vector.broadcast %89 : vector<64x1xi1> to vector<64x256xi1>
    %91 = vector.broadcast %cst_33 : f32 to vector<64x256xf32>
    %92 = arith.select %90, %83, %91 : vector<64x256xi1>, vector<64x256xf32>
    %93 = arith.addf %88, %92 : vector<64x256xf32>
    %94 = vector.broadcast %42 : vector<1x256xf32> to vector<64x256xf32>
    %95 = arith.addf %93, %94 : vector<64x256xf32>
    %cst_34 = arith.constant 5.000000e-01 : f32
    %96 = vector.broadcast %cst_34 : f32 to vector<64x256xf32>
    %97 = arith.mulf %96, %95 : vector<64x256xf32>
    %cst_35 = arith.constant 4.471500e-02 : f32
    %98 = vector.broadcast %cst_35 : f32 to vector<64x256xf32>
    %99 = arith.mulf %98, %95 : vector<64x256xf32>
    %100 = arith.mulf %99, %95 : vector<64x256xf32>
    %101 = arith.mulf %100, %95 : vector<64x256xf32>
    %102 = arith.addf %95, %101 : vector<64x256xf32>
    %cst_36 = arith.constant 0.797884583 : f32
    %103 = vector.broadcast %cst_36 : f32 to vector<64x256xf32>
    %104 = arith.mulf %103, %102 : vector<64x256xf32>
    %105 = math.tanh %104 : vector<64x256xf32>
    %cst_37 = arith.constant 1.000000e+00 : f32
    %106 = vector.broadcast %cst_37 : f32 to vector<64x256xf32>
    %107 = arith.addf %106, %105 : vector<64x256xf32>
    %108 = arith.mulf %97, %107 : vector<64x256xf32>
    %109 = arith.truncf %108 : vector<64x256xf32> to vector<64x256xbf16>
    %c0_38 = arith.constant 0 : index
    %c0_39 = arith.constant 0 : index
    %110 = vector.load %arg7[%c0_38, %c0_39] : memref<256x128xbf16, #tpu.memory_space<vmem>>, vector<256x128xbf16>
    %cst_40 = arith.constant dense<0.000000e+00> : vector<64x128xf32>
    %111 = tpu.matmul %109, %110, %cst_40 {dimension_numbers = #tpu.dot_dimension_numbers<[1], [0], [0], [1], [0, 0, 1, 1], [], []>} : vector<64x256xbf16>, vector<256x128xbf16>, vector<64x128xf32> -> vector<64x128xf32>
    %c0_41 = arith.constant 0 : index
    %c0_42 = arith.constant 0 : index
    %112 = vector.load %arg8[%c0_41, %c0_42] : memref<1x128xbf16, #tpu.memory_space<vmem>>, vector<1x128xbf16>
    %113 = arith.extf %112 : vector<1x128xbf16> to vector<1x128xf32>
    %114 = vector.broadcast %113 : vector<1x128xf32> to vector<64x128xf32>
    %115 = arith.addf %111, %114 : vector<64x128xf32>
    %116 = arith.truncf %115 : vector<64x128xf32> to vector<64x128xbf16>
    %c0_43 = arith.constant 0 : index
    %c0_44 = arith.constant 0 : index
    %c0_45 = arith.constant 0 : index
    %117 = vector.load %arg9[%c0_43, %c0_44, %c0_45] : memref<1x64x128xbf16, #tpu.memory_space<vmem>>, vector<1x64x128xbf16>
    %118 = vector.shape_cast %117 : vector<1x64x128xbf16> to vector<64x128xbf16>
    %119 = vector.shape_cast %116 : vector<64x128xbf16> to vector<1x64x128xbf16>
    tpu.vector_store %arg9[%c0_43, %c0_44, %c0_45], %119 {strides = array<i32>} : memref<1x64x128xbf16, #tpu.memory_space<vmem>>, vector<1x64x128xbf16>,
    return
  }
  func.func @transform_0(%arg0: i32, %arg1: i32) -> (i32, i32, i32) {
    %c0_i32 = arith.constant 0 : i32
    %c0_i32_0 = arith.constant 0 : i32
    return %arg0, %arg1, %c0_i32 : i32, i32, i32
  }
  func.func @transform_1(%arg0: i32, %arg1: i32) -> (i32, i32) {
    %c0_i32 = arith.constant 0 : i32
    %c0_i32_0 = arith.constant 0 : i32
    %c0_i32_1 = arith.constant 0 : i32
    return %c0_i32, %c0_i32_0 : i32, i32
  }
  func.func @transform_2(%arg0: i32, %arg1: i32) -> (i32, i32) {
    %c0_i32 = arith.constant 0 : i32
    %c0_i32_0 = arith.constant 0 : i32
    %c0_i32_1 = arith.constant 0 : i32
    return %c0_i32, %c0_i32_0 : i32, i32
  }
  func.func @transform_3(%arg0: i32, %arg1: i32) -> (i32, i32) {
    %c0_i32 = arith.constant 0 : i32
    %c0_i32_0 = arith.constant 0 : i32
    %c0_i32_1 = arith.constant 0 : i32
    return %c0_i32, %c0_i32_0 : i32, i32
  }
  func.func @transform_4(%arg0: i32, %arg1: i32) -> (i32, i32) {
    %c0_i32 = arith.constant 0 : i32
    %c0_i32_0 = arith.constant 0 : i32
    %c0_i32_1 = arith.constant 0 : i32
    return %c0_i32, %c0_i32_0 : i32, i32
  }
  func.func @transform_5(%arg0: i32, %arg1: i32) -> (i32, i32) {
    %c0_i32 = arith.constant 0 : i32
    %c0_i32_0 = arith.constant 0 : i32
    %c0_i32_1 = arith.constant 0 : i32
    return %c0_i32, %c0_i32_0 : i32, i32
  }
  func.func @transform_6(%arg0: i32, %arg1: i32) -> (i32, i32) {
    %c0_i32 = arith.constant 0 : i32
    %c0_i32_0 = arith.constant 0 : i32
    %c0_i32_1 = arith.constant 0 : i32
    return %c0_i32, %c0_i32_0 : i32, i32
  }
  func.func @transform_7(%arg0: i32, %arg1: i32) -> (i32, i32, i32) {
    %c0_i32 = arith.constant 0 : i32
    %c0_i32_0 = arith.constant 0 : i32
    return %arg0, %arg1, %c0_i32 : i32, i32, i32
  }
}

module attributes {stable_mosaic.version = 11 : i64} {
  func.func @_mlp_fused_kernel(%arg0: i32, %arg1: i32, %arg2: memref<1x64x128xbf16, #tpu.memory_space<vmem>>, %arg3: memref<128x256xbf16, #tpu.memory_space<vmem>>, %arg4: memref<1x256xbf16, #tpu.memory_space<vmem>>, %arg5: memref<9x256xbf16, #tpu.memory_space<vmem>>, %arg6: memref<1x256xbf16, #tpu.memory_space<vmem>>, %arg7: memref<256x128xbf16, #tpu.memory_space<vmem>>, %arg8: memref<1x128xbf16, #tpu.memory_space<vmem>>, %arg9: memref<1x64x128xbf16, #tpu.memory_space<vmem>>, %arg10: memref<82x256xf32, #tpu.memory_space<vmem>>) attributes {dimension_semantics = [#tpu.dimension_semantics<parallel>, #tpu.dimension_semantics<parallel>], iteration_bounds = array<i64: 2, 1>, scalar_prefetch = 0 : i64, scratch_operands = 1 : i64, tpu.core_type = #tpu.core_type<tc>, window_params = [{transform_indices = @transform_0, window_bounds = array<i64: 1, 64, 128>}, {pipeline_mode = #tpu.pipeline_mode<synchronous>, transform_indices = @transform_1, window_bounds = array<i64: 128, 256>}, {pipeline_mode = #tpu.pipeline_mode<synchronous>, transform_indices = @transform_2, window_bounds = array<i64: 1, 256>}, {pipeline_mode = #tpu.pipeline_mode<synchronous>, transform_indices = @transform_3, window_bounds = array<i64: 9, 256>}, {pipeline_mode = #tpu.pipeline_mode<synchronous>, transform_indices = @transform_4, window_bounds = array<i64: 1, 256>}, {pipeline_mode = #tpu.pipeline_mode<synchronous>, transform_indices = @transform_5, window_bounds = array<i64: 256, 128>}, {pipeline_mode = #tpu.pipeline_mode<synchronous>, transform_indices = @transform_6, window_bounds = array<i64: 1, 128>}, {transform_indices = @transform_7, window_bounds = array<i64: 1, 64, 128>}]} {
    %c0 = arith.constant 0 : index
    %c0_0 = arith.constant 0 : index
    %0 = vector.load %arg3[%c0, %c0_0] : memref<128x256xbf16, #tpu.memory_space<vmem>>, vector<128x256xbf16>
    %c0_1 = arith.constant 0 : index
    %c0_2 = arith.constant 0 : index
    %1 = vector.load %arg4[%c0_1, %c0_2] : memref<1x256xbf16, #tpu.memory_space<vmem>>, vector<1x256xbf16>
    %2 = arith.extf %1 : vector<1x256xbf16> to vector<1x256xf32>
    %c0_3 = arith.constant 0 : index
    %c0_4 = arith.constant 0 : index
    %c0_5 = arith.constant 0 : index
    %3 = vector.load %arg2[%c0_3, %c0_4, %c0_5] : memref<1x64x128xbf16, #tpu.memory_space<vmem>>, vector<1x64x128xbf16>
    %4 = vector.shape_cast %3 : vector<1x64x128xbf16> to vector<64x128xbf16>
    %cst = arith.constant dense<0.000000e+00> : vector<64x256xf32>
    %5 = tpu.matmul %4, %0, %cst {dimension_numbers = #tpu.dot_dimension_numbers<[1], [0], [0], [1], [0, 0, 1, 1], [], []>} : vector<64x128xbf16>, vector<128x256xbf16>, vector<64x256xf32> -> vector<64x256xf32>
    %6 = vector.broadcast %2 : vector<1x256xf32> to vector<64x256xf32>
    %7 = arith.addf %5, %6 : vector<64x256xf32>
    %cst_6 = arith.constant 0.000000e+00 : f32
    %8 = vector.broadcast %cst_6 : f32 to vector<64x256xf32>
    %9 = arith.maximumf %7, %8 : vector<64x256xf32>
    %c9 = arith.constant 9 : index
    %c0_7 = arith.constant 0 : index
    %10 = vector.load %arg10[%c9, %c0_7] : memref<82x256xf32, #tpu.memory_space<vmem>>, vector<64x256xf32>
    tpu.vector_store %arg10[%c9, %c0_7], %9 {strides = array<i32>} : memref<82x256xf32, #tpu.memory_space<vmem>>, vector<64x256xf32>,
    %cst_8 = arith.constant 0.000000e+00 : f32
    %11 = vector.broadcast %cst_8 : f32 to vector<8x256xf32>
    %c1 = arith.constant 1 : index
    %c0_9 = arith.constant 0 : index
    %12 = vector.load %arg10[%c1, %c0_9] : memref<82x256xf32, #tpu.memory_space<vmem>>, vector<8x256xf32>
    tpu.vector_store %arg10[%c1, %c0_9], %11 {strides = array<i32>} : memref<82x256xf32, #tpu.memory_space<vmem>>, vector<8x256xf32>,
    %c73 = arith.constant 73 : index
    %c0_10 = arith.constant 0 : index
    %13 = vector.load %arg10[%c73, %c0_10] : memref<82x256xf32, #tpu.memory_space<vmem>>, vector<8x256xf32>
    tpu.vector_store %arg10[%c73, %c0_10], %11 {strides = array<i32>} : memref<82x256xf32, #tpu.memory_space<vmem>>, vector<8x256xf32>,
    %14 = vector.extract_strided_slice %11 {offsets = [0, 0], sizes = [1, 256], strides = [1, 1]} : vector<8x256xf32> to vector<1x256xf32>
    %c0_11 = arith.constant 0 : index
    %c0_12 = arith.constant 0 : index
    %15 = vector.load %arg10[%c0_11, %c0_12] : memref<82x256xf32, #tpu.memory_space<vmem>>, vector<1x256xf32>
    tpu.vector_store %arg10[%c0_11, %c0_12], %14 {strides = array<i32>} : memref<82x256xf32, #tpu.memory_space<vmem>>, vector<1x256xf32>,
    %16 = vector.extract_strided_slice %11 {offsets = [0, 0], sizes = [1, 256], strides = [1, 1]} : vector<8x256xf32> to vector<1x256xf32>
    %c81 = arith.constant 81 : index
    %c0_13 = arith.constant 0 : index
    %17 = vector.load %arg10[%c81, %c0_13] : memref<82x256xf32, #tpu.memory_space<vmem>>, vector<1x256xf32>
    tpu.vector_store %arg10[%c81, %c0_13], %16 {strides = array<i32>} : memref<82x256xf32, #tpu.memory_space<vmem>>, vector<1x256xf32>,
    %18 = tpu.iota {dimensions = array<i32: 0>} : vector<64x1xi32>
    %c8_i32 = arith.constant 8 : i32
    %c0_i32 = arith.constant 0 : i32
    %19 = arith.cmpi eq, %c8_i32, %c0_i32 : i32
    %c1_i32 = arith.constant 1 : i32
    %20 = arith.select %19, %c1_i32, %c8_i32 : i32
    %21 = vector.broadcast %20 : i32 to vector<64x1xi32>
    %22 = arith.remsi %18, %21 : vector<64x1xi32>
    %c0_i32_14 = arith.constant 0 : i32
    %23 = vector.broadcast %c0_i32_14 : i32 to vector<64x1xi32>
    %24 = arith.cmpi ne, %22, %23 : vector<64x1xi32>
    %c0_i32_15 = arith.constant 0 : i32
    %25 = vector.broadcast %c0_i32_15 : i32 to vector<64x1xi32>
    %26 = arith.cmpi slt, %22, %25 : vector<64x1xi32>
    %c0_i32_16 = arith.constant 0 : i32
    %27 = arith.cmpi slt, %20, %c0_i32_16 : i32
    %28 = vector.broadcast %27 : i1 to vector<64x1xi1>
    %29 = vector.broadcast %28 : vector<64x1xi1> to vector<64x1xi1>
    %30 = arith.xori %26, %29 : vector<64x1xi1>
    %31 = arith.andi %30, %24 : vector<64x1xi1>
    %32 = vector.broadcast %20 : i32 to vector<64x1xi32>
    %33 = arith.addi %22, %32 : vector<64x1xi32>
    %34 = arith.select %31, %33, %22 : vector<64x1xi1>, vector<64x1xi32>
    %c0_i32_17 = arith.constant 0 : i32
    %35 = vector.broadcast %c0_i32_17 : i32 to vector<64x1xi32>
    %36 = arith.cmpi ne, %34, %35 : vector<64x1xi32>
    %c7_i32 = arith.constant 7 : i32
    %37 = vector.broadcast %c7_i32 : i32 to vector<64x1xi32>
    %38 = arith.cmpi ne, %34, %37 : vector<64x1xi32>
    %c0_18 = arith.constant 0 : index
    %c0_19 = arith.constant 0 : index
    %39 = vector.load %arg5[%c0_18, %c0_19] : memref<9x256xbf16, #tpu.memory_space<vmem>>, vector<9x256xbf16>
    %40 = arith.extf %39 : vector<9x256xbf16> to vector<9x256xf32>
    %c0_20 = arith.constant 0 : index
    %c0_21 = arith.constant 0 : index
    %41 = vector.load %arg6[%c0_20, %c0_21] : memref<1x256xbf16, #tpu.memory_space<vmem>>, vector<1x256xbf16>
    %42 = arith.extf %41 : vector<1x256xbf16> to vector<1x256xf32>
    %c0_22 = arith.constant 0 : index
    %c0_23 = arith.constant 0 : index
    %43 = vector.load %arg10[%c0_22, %c0_23] : memref<82x256xf32, #tpu.memory_space<vmem>>, vector<64x256xf32>
    %44 = vector.extract_strided_slice %40 {offsets = [0, 0], sizes = [1, 256], strides = [1, 1]} : vector<9x256xf32> to vector<1x256xf32>
    %45 = vector.broadcast %44 : vector<1x256xf32> to vector<64x256xf32>
    %46 = arith.mulf %43, %45 : vector<64x256xf32>
    %c8 = arith.constant 8 : index
    %c0_24 = arith.constant 0 : index
    %47 = vector.load %arg10[%c8, %c0_24] : memref<82x256xf32, #tpu.memory_space<vmem>>, vector<64x256xf32>
    %48 = vector.extract_strided_slice %40 {offsets = [3, 0], sizes = [1, 256], strides = [1, 1]} : vector<9x256xf32> to vector<1x256xf32>
    %49 = vector.broadcast %48 : vector<1x256xf32> to vector<64x256xf32>
    %50 = arith.mulf %47, %49 : vector<64x256xf32>
    %51 = arith.addf %46, %50 : vector<64x256xf32>
    %c16 = arith.constant 16 : index
    %c0_25 = arith.constant 0 : index
    %52 = vector.load %arg10[%c16, %c0_25] : memref<82x256xf32, #tpu.memory_space<vmem>>, vector<64x256xf32>
    %53 = vector.extract_strided_slice %40 {offsets = [6, 0], sizes = [1, 256], strides = [1, 1]} : vector<9x256xf32> to vector<1x256xf32>
    %54 = vector.broadcast %53 : vector<1x256xf32> to vector<64x256xf32>
    %55 = arith.mulf %52, %54 : vector<64x256xf32>
    %56 = arith.addf %51, %55 : vector<64x256xf32>
    %c1_26 = arith.constant 1 : index
    %c0_27 = arith.constant 0 : index
    %57 = vector.load %arg10[%c1_26, %c0_27] : memref<82x256xf32, #tpu.memory_space<vmem>>, vector<64x256xf32>
    %58 = vector.extract_strided_slice %40 {offsets = [1, 0], sizes = [1, 256], strides = [1, 1]} : vector<9x256xf32> to vector<1x256xf32>
    %59 = vector.broadcast %58 : vector<1x256xf32> to vector<64x256xf32>
    %60 = arith.mulf %57, %59 : vector<64x256xf32>
    %61 = vector.extract_strided_slice %40 {offsets = [4, 0], sizes = [1, 256], strides = [1, 1]} : vector<9x256xf32> to vector<1x256xf32>
    %62 = vector.broadcast %61 : vector<1x256xf32> to vector<64x256xf32>
    %63 = arith.mulf %9, %62 : vector<64x256xf32>
    %64 = arith.addf %60, %63 : vector<64x256xf32>
    %c17 = arith.constant 17 : index
    %c0_28 = arith.constant 0 : index
    %65 = vector.load %arg10[%c17, %c0_28] : memref<82x256xf32, #tpu.memory_space<vmem>>, vector<64x256xf32>
    %66 = vector.extract_strided_slice %40 {offsets = [7, 0], sizes = [1, 256], strides = [1, 1]} : vector<9x256xf32> to vector<1x256xf32>
    %67 = vector.broadcast %66 : vector<1x256xf32> to vector<64x256xf32>
    %68 = arith.mulf %65, %67 : vector<64x256xf32>
    %69 = arith.addf %64, %68 : vector<64x256xf32>
    %c2 = arith.constant 2 : index
    %c0_29 = arith.constant 0 : index
    %70 = vector.load %arg10[%c2, %c0_29] : memref<82x256xf32, #tpu.memory_space<vmem>>, vector<64x256xf32>
    %71 = vector.extract_strided_slice %40 {offsets = [2, 0], sizes = [1, 256], strides = [1, 1]} : vector<9x256xf32> to vector<1x256xf32>
    %72 = vector.broadcast %71 : vector<1x256xf32> to vector<64x256xf32>
    %73 = arith.mulf %70, %72 : vector<64x256xf32>
    %c10 = arith.constant 10 : index
    %c0_30 = arith.constant 0 : index
    %74 = vector.load %arg10[%c10, %c0_30] : memref<82x256xf32, #tpu.memory_space<vmem>>, vector<64x256xf32>
    %75 = vector.extract_strided_slice %40 {offsets = [5, 0], sizes = [1, 256], strides = [1, 1]} : vector<9x256xf32> to vector<1x256xf32>
    %76 = vector.broadcast %75 : vector<1x256xf32> to vector<64x256xf32>
    %77 = arith.mulf %74, %76 : vector<64x256xf32>
    %78 = arith.addf %73, %77 : vector<64x256xf32>
    %c18 = arith.constant 18 : index
    %c0_31 = arith.constant 0 : index
    %79 = vector.load %arg10[%c18, %c0_31] : memref<82x256xf32, #tpu.memory_space<vmem>>, vector<64x256xf32>
    %80 = vector.extract_strided_slice %40 {offsets = [8, 0], sizes = [1, 256], strides = [1, 1]} : vector<9x256xf32> to vector<1x256xf32>
    %81 = vector.broadcast %80 : vector<1x256xf32> to vector<64x256xf32>
    %82 = arith.mulf %79, %81 : vector<64x256xf32>
    %83 = arith.addf %78, %82 : vector<64x256xf32>
    %cst_32 = arith.constant 0.000000e+00 : f32
    %84 = vector.shape_cast %36 : vector<64x1xi1> to vector<64x1xi1>
    %85 = vector.broadcast %84 : vector<64x1xi1> to vector<64x256xi1>
    %86 = vector.broadcast %cst_32 : f32 to vector<64x256xf32>
    %87 = arith.select %85, %56, %86 : vector<64x256xi1>, vector<64x256xf32>
    %88 = arith.addf %87, %69 : vector<64x256xf32>
    %cst_33 = arith.constant 0.000000e+00 : f32
    %89 = vector.shape_cast %38 : vector<64x1xi1> to vector<64x1xi1>
    %90 = vector.broadcast %89 : vector<64x1xi1> to vector<64x256xi1>
    %91 = vector.broadcast %cst_33 : f32 to vector<64x256xf32>
    %92 = arith.select %90, %83, %91 : vector<64x256xi1>, vector<64x256xf32>
    %93 = arith.addf %88, %92 : vector<64x256xf32>
    %94 = vector.broadcast %42 : vector<1x256xf32> to vector<64x256xf32>
    %95 = arith.addf %93, %94 : vector<64x256xf32>
    %cst_34 = arith.constant 5.000000e-01 : f32
    %96 = vector.broadcast %cst_34 : f32 to vector<64x256xf32>
    %97 = arith.mulf %96, %95 : vector<64x256xf32>
    %cst_35 = arith.constant 4.471500e-02 : f32
    %98 = vector.broadcast %cst_35 : f32 to vector<64x256xf32>
    %99 = arith.mulf %98, %95 : vector<64x256xf32>
    %100 = arith.mulf %99, %95 : vector<64x256xf32>
    %101 = arith.mulf %100, %95 : vector<64x256xf32>
    %102 = arith.addf %95, %101 : vector<64x256xf32>
    %cst_36 = arith.constant 0.797884583 : f32
    %103 = vector.broadcast %cst_36 : f32 to vector<64x256xf32>
    %104 = arith.mulf %103, %102 : vector<64x256xf32>
    %105 = math.tanh %104 : vector<64x256xf32>
    %cst_37 = arith.constant 1.000000e+00 : f32
    %106 = vector.broadcast %cst_37 : f32 to vector<64x256xf32>
    %107 = arith.addf %106, %105 : vector<64x256xf32>
    %108 = arith.mulf %97, %107 : vector<64x256xf32>
    %109 = arith.truncf %108 : vector<64x256xf32> to vector<64x256xbf16>
    %c0_38 = arith.constant 0 : index
    %c0_39 = arith.constant 0 : index
    %110 = vector.load %arg7[%c0_38, %c0_39] : memref<256x128xbf16, #tpu.memory_space<vmem>>, vector<256x128xbf16>
    %cst_40 = arith.constant dense<0.000000e+00> : vector<64x128xf32>
    %111 = tpu.matmul %109, %110, %cst_40 {dimension_numbers = #tpu.dot_dimension_numbers<[1], [0], [0], [1], [0, 0, 1, 1], [], []>} : vector<64x256xbf16>, vector<256x128xbf16>, vector<64x128xf32> -> vector<64x128xf32>
    %c0_41 = arith.constant 0 : index
    %c0_42 = arith.constant 0 : index
    %112 = vector.load %arg8[%c0_41, %c0_42] : memref<1x128xbf16, #tpu.memory_space<vmem>>, vector<1x128xbf16>
    %113 = arith.extf %112 : vector<1x128xbf16> to vector<1x128xf32>
    %114 = vector.broadcast %113 : vector<1x128xf32> to vector<64x128xf32>
    %115 = arith.addf %111, %114 : vector<64x128xf32>
    %116 = arith.truncf %115 : vector<64x128xf32> to vector<64x128xbf16>
    %c0_43 = arith.constant 0 : index
    %c0_44 = arith.constant 0 : index
    %c0_45 = arith.constant 0 : index
    %117 = vector.load %arg9[%c0_43, %c0_44, %c0_45] : memref<1x64x128xbf16, #tpu.memory_space<vmem>>, vector<1x64x128xbf16>
    %118 = vector.shape_cast %117 : vector<1x64x128xbf16> to vector<64x128xbf16>
    %119 = vector.shape_cast %116 : vector<64x128xbf16> to vector<1x64x128xbf16>
    tpu.vector_store %arg9[%c0_43, %c0_44, %c0_45], %119 {strides = array<i32>} : memref<1x64x128xbf16, #tpu.memory_space<vmem>>, vector<1x64x128xbf16>,
    return
  }
  func.func @transform_0(%arg0: i32, %arg1: i32) -> (i32, i32, i32) {
    %c0_i32 = arith.constant 0 : i32
    %c0_i32_0 = arith.constant 0 : i32
    return %arg0, %arg1, %c0_i32 : i32, i32, i32
  }
  func.func @transform_1(%arg0: i32, %arg1: i32) -> (i32, i32) {
    %c0_i32 = arith.constant 0 : i32
    %c0_i32_0 = arith.constant 0 : i32
    %c0_i32_1 = arith.constant 0 : i32
    return %c0_i32, %c0_i32_0 : i32, i32
  }
  func.func @transform_2(%arg0: i32, %arg1: i32) -> (i32, i32) {
    %c0_i32 = arith.constant 0 : i32
    %c0_i32_0 = arith.constant 0 : i32
    %c0_i32_1 = arith.constant 0 : i32
    return %c0_i32, %c0_i32_0 : i32, i32
  }
  func.func @transform_3(%arg0: i32, %arg1: i32) -> (i32, i32) {
    %c0_i32 = arith.constant 0 : i32
    %c0_i32_0 = arith.constant 0 : i32
    %c0_i32_1 = arith.constant 0 : i32
    return %c0_i32, %c0_i32_0 : i32, i32
  }
  func.func @transform_4(%arg0: i32, %arg1: i32) -> (i32, i32) {
    %c0_i32 = arith.constant 0 : i32
    %c0_i32_0 = arith.constant 0 : i32
    %c0_i32_1 = arith.constant 0 : i32
    return %c0_i32, %c0_i32_0 : i32, i32
  }
  func.func @transform_5(%arg0: i32, %arg1: i32) -> (i32, i32) {
    %c0_i32 = arith.constant 0 : i32
    %c0_i32_0 = arith.constant 0 : i32
    %c0_i32_1 = arith.constant 0 : i32
    return %c0_i32, %c0_i32_0 : i32, i32
  }
  func.func @transform_6(%arg0: i32, %arg1: i32) -> (i32, i32) {
    %c0_i32 = arith.constant 0 : i32
    %c0_i32_0 = arith.constant 0 : i32
    %c0_i32_1 = arith.constant 0 : i32
    return %c0_i32, %c0_i32_0 : i32, i32
  }
  func.func @transform_7(%arg0: i32, %arg1: i32) -> (i32, i32, i32) {
    %c0_i32 = arith.constant 0 : i32
    %c0_i32_0 = arith.constant 0 : i32
    return %arg0, %arg1, %c0_i32 : i32, i32, i32
  }
}

</mosaic_0001>

<bundles_post_ra>
// kernel: tpu_custom_call.1
= control target key start
LH: loop header
LB: loop body
LE: loop exit
PB: predicated region body
PF: predicated region fallthrough
CT: control target
= control target key end

     0   :  { %s3874_s0 = inlined_call_operand.hbm [shape: bf16[2,64,128], index: 0, kind: input, shape index: {}]   ;;  %s3875_s1 = inlined_call_operand.hbm [shape: bf16[128,256], index: 1, kind: input, shape index: {}]   ;;  %s3876_s2 = inlined_call_operand.vmem [shape: bf16[1,256], index: 2, kind: input, shape index: {}]   ;;  %s3877_s3 = inlined_call_operand.hbm [shape: bf16[9,256], index: 3, kind: input, shape index: {}]   ;;  %s3878_s4 = inlined_call_operand.vmem [shape: bf16[1,256], index: 4, kind: input, shape index: {}]   ;;  %s3879_s5 = inlined_call_operand.hbm [shape: bf16[256,128], index: 5, kind: input, shape index: {}]   ;;  %s3880_s6 = inlined_call_operand.vmem [shape: bf16[1,128], index: 6, kind: input, shape index: {}]   ;;  %s3881_s7 = inlined_call_operand.hbm [shape: bf16[2,64,128], index: 7, kind: output, shape index: {}]  }
   0x1   :  { %3934 = sst [smem:[#allocation67_spill]] %s3881_s7 }
   0x2   :  { %12 = vsyncpa [#allocation4], 0 }
   0x3   :  { %14 = vsyncpa [#allocation4 + $0x1], 0 }
   0x4   :  { %15 = vsyncpa [#allocation7], 0 }
   0x5   :  { %16 = vsyncpa [#allocation10], 0 }
   0x6   :  { %17 = vsyncpa [#allocation5], 0 }
   0x7   :  { %19 = vsyncpa [#allocation5 + $0x1], 0  ;;  %s2629_s24 = smov 0   ;;  %s2631_s25 = smov 0  }
   0x8   :  { %s2633_s26 = smov 0   ;;  %s2635_s27 = smov 0  }
   0x9   :  { %s2637_s28 = smov 0   ;;  %s2639_s29 = smov 0  }
   0xa LB: > { %3935 = sst [smem:[#allocation16_spill]] %s2554_s24  ;;  %s2055_s30 = sadd.s32 4294967295, %s2574_s29   ;;  %s2574_s29 = sphi %s2639_s29, %s25_s29   ;;  %s2570_s28 = sphi %s2637_s28, %s4118_s28   ;;  %s2566_s27 = sphi %s2635_s27, %s4117_s27   ;;  %s2562_s26 = sphi %s2633_s26, %s4116_s26   ;;  %s2558_s25 = sphi %s2631_s25, %s4115_s25   ;;  %s2554_s24 = sphi %s2629_s24, %s4114_s24  }
   0xb   : > { %3936 = sst [smem:[#allocation17_spill]] %s2566_s27  ;;  %s2056_s8 = sadd.s32 4294967294, %s2574_s29  }
   0xc   : > { %p59_p0 = scmp.ne.s32.totalorder %s2558_s25, %s2554_s24  ;;  %p2663_p1 = scmp.eq.s32.totalorder %s2055_s30, 0 }
   0xd   : > { %p2667_p2 = scmp.eq.s32.totalorder %s2055_s30, 1  ;;  %p217_p3 = scmp.eq.s32.totalorder %s2056_s8, 1 }
   0xe   : > { %s3937_s9 = scalar_select %p2663_p1, 1, 0 }
   0xf   : > { %s3938_s10 = scalar_select %p2667_p2, 1, 0 }
  0x10   : > { %p2673_p4 = por %p2663_p1, %p59_p0  ;;  %p2057_p5 = scmp.ge.s32.totalorder %s2574_s29, 1 }
  0x11   : > { %p2678_p6 = por %p217_p3, %p59_p0  ;;  %p224_p7 = scmp.lt.s32.totalorder %s2574_s29, 3 }
  0x12   : > { %s3939_s11 = scalar_select %p2673_p4, 1, 0 }
  0x13   : > { %s3940_s12 = scalar_select %p2678_p6, 1, 0 }
  0x14   : > { %p2683_p8 = pnand %p2057_p5, %p224_p7  ;;  %s2576_s14 = smov [#allocation6]  }
  0x15   : > { %3941 = sst [smem:[#allocation18_spill]] %s3940_s12  ;;  %s236_s15 = sshll.u32 %s2576_s14, 4  ;;  %s2687_s15 = int_to_ptr.vmem [resolvable:$true] %s236_s15 }
  0x16   : > { %s3942_s13 = scalar_select %p2683_p8, 1, 0 }
  0x17   : > { %p2209_p9 = pneg %p2683_p8  ;;  %s2577_s17 = smov [#allocation8]  }
  0x18   : > { %s252_s18 = sshll.u32 %s2577_s17, 4  ;;  %s2578_s19 = smov [#allocation9]   ;;  %s2698_s18 = int_to_ptr.vmem [resolvable:$true] %s252_s18 }
  0x19   : > { %p2694_p11 = pnand %p2209_p9, %p2663_p1  ;;  %s2700_s20 = sshll.u32 %s2578_s19, 4  ;;  %s269_s20 = int_to_ptr.vmem [resolvable:$true] %s2700_s20 }
  0x1a   : > { %s2370_s23 = scalar_lea.hbm %s3875_s1, 2048 }
  0x1b   : > { %p2371_p12 = scmp.ne.s32.totalorder %s3875_s1, %s2370_s23  ;;  %p2710_p13 = pneg %p2694_p11 }
  0x1c   : > { %p2377_p5 = scmp.lt.u32.totalorder %s2370_s23, %s3875_s1 }
  0x1d   : > { %p2373_p0 = pnand %p2710_p13, %p2371_p12 }
  0x1f   : > { %p2374_p3 = pneg %p2373_p0 }
  0x21   : > { %p2379_p7 = pnand %p2377_p5, %p2374_p3 }
  0x23   : > { %2382 = shalt.err (!%p2379_p7)
}
  0x24   : > { %s2383_s21 = scalar_lea.vmem %s2687_s15, 2048  ;;  %p2391_p1 = scmp.lt.s32.totalorder %s2687_s15, %s2687_s15 }
  0x25   : > { %p2384_p9 = scmp.ne.s32.totalorder %s2687_s15, %s2383_s21  ;;  %p2392_p4 = scmp.lt.s32.totalorder %s2383_s21, %s2383_s21 }
  0x27   : > { %p2386_p10 = pnand %p2384_p9, %p2710_p13  ;;  %p2393_p12 = por %p2392_p4, %p2391_p1 }
  0x29   : > { %p2387_p6 = pneg %p2386_p10 }
  0x2b   : > { %p2394_p0 = pnand %p2393_p12, %p2387_p6 }
  0x2d   : > { %2397 = shalt.err (!%p2394_p0)
}
  0x2e   : > { %s2579_s22 = smov 128   ;;  %s2580_s23 = smov 8  }
  0x2f   : > { %2212 = dma.hbm_to_vmem [thread:$0]  (!%p2694_p11), %s3875_s1, 2048, %s2687_s15, [#allocation7], %s2579_s22, %s2579_s22, %s2580_s23  }
  0x30   : > { %s2398_s12 = scalar_lea.hbm %s3877_s3, 256 }
  0x31   : > { %p2399_p1 = scmp.ne.s32.totalorder %s3877_s3, %s2398_s12  ;;  %p2405_p10 = scmp.lt.u32.totalorder %s2398_s12, %s3877_s3 }
  0x33   : > { %p2401_p4 = pnand %p2399_p1, %p2710_p13 }
  0x35   : > { %p2402_p6 = pneg %p2401_p4 }
  0x37   : > { %p2407_p3 = pnand %p2405_p10, %p2402_p6 }
  0x39   : > { %2410 = shalt.err (!%p2407_p3)
}
  0x3a   : > { %s2411_s15 = scalar_lea.vmem %s2698_s18, 256  ;;  %p2419_p12 = scmp.lt.s32.totalorder %s2698_s18, %s2698_s18 }
  0x3b   : > { %p2412_p5 = scmp.ne.s32.totalorder %s2698_s18, %s2411_s15  ;;  %p2420_p0 = scmp.lt.s32.totalorder %s2411_s15, %s2411_s15 }
  0x3d   : > { %p2414_p7 = pnand %p2412_p5, %p2710_p13  ;;  %p2421_p1 = por %p2420_p0, %p2419_p12 }
  0x3f   : > { %p2415_p9 = pneg %p2414_p7 }
  0x41   : > { %p2422_p4 = pnand %p2421_p1, %p2415_p9 }
  0x43   : > { %2425 = shalt.err (!%p2422_p4)
}
  0x44   : > { %2215 = dma.hbm_to_vmem [thread:$0]  (!%p2694_p11), %s3877_s3, 256, %s2698_s18, [#allocation7], %s2579_s22, %s2579_s22, %s2580_s23  }
  0x45   : > { %s2426_s30 = scalar_lea.hbm %s3879_s5, 2048 }
  0x46   : > { %p2427_p6 = scmp.ne.s32.totalorder %s3879_s5, %s2426_s30  ;;  %p2433_p5 = scmp.lt.u32.totalorder %s2426_s30, %s3879_s5 }
  0x48   : > { %p2429_p10 = pnand %p2427_p6, %p2710_p13 }
  0x4a   : > { %p2430_p3 = pneg %p2429_p10 }
  0x4c   : > { %p2435_p7 = pnand %p2433_p5, %p2430_p3 }
  0x4e   : > { %2438 = shalt.err (!%p2435_p7)
}
  0x4f   : > { %s2439_s15 = scalar_lea.vmem %s269_s20, 2048  ;;  %p2447_p1 = scmp.lt.s32.totalorder %s269_s20, %s269_s20 }
  0x50   : > { %p2440_p9 = scmp.ne.s32.totalorder %s269_s20, %s2439_s15  ;;  %p2448_p4 = scmp.lt.s32.totalorder %s2439_s15, %s2439_s15 }
  0x52   : > { %p2442_p12 = pnand %p2440_p9, %p2710_p13  ;;  %p2449_p8 = por %p2448_p4, %p2447_p1 }
  0x54   : > { %p2443_p0 = pneg %p2442_p12 }
  0x56   : > { %p2450_p2 = pnand %p2449_p8, %p2443_p0 }
  0x58   : > { %2453 = shalt.err (!%p2450_p2)
}
  0x59   : > { %s2581_s18 = smov 64   ;;  %s2582_s14 = smov 4  }
  0x5a   : > { %2218 = dma.hbm_to_vmem [thread:$0]  (!%p2694_p11), %s3879_s5, 2048, %s269_s20, [#allocation10], %s2581_s18, %s2581_s18, %s2582_s14  }
  0x5b   : > { %s46_s7 = sadd.s32 1, %s2562_s26  ;;  %s37_s24 = sadd.s32 1, %s2570_s28 }
  0x5c   : > { %p53_p2 = scmp.ne.s32.totalorder %s2562_s26, %s2558_s25  ;;  %p39_p8 = scmp.ge.s32.totalorder %s37_s24, 2 }
  0x5d   : > { %p54_p13 = scmp.eq.s32.totalorder %s2574_s29, 0  ;;  %p3945_p6 = scmp.ne.s32.totalorder %s3938_s10, 0 }
  0x5e   : > { %p2230_p3 = scmp.lt.s32.totalorder %s2574_s29, 2  ;;  %s4120_s24 = smov (%p39_p8, %s37_s24), 0 }
  0x5f   : > { %p2783_p10 = por %p3945_p6, %p53_p2  ;;  %p55_p5 = por %p54_p13, %p53_p2 }
  0x60   : > { %s285_s16 = sand.u32 1, %s2562_s26   ;;  %s41_s12 = ssub.s32 %s2570_s28, %s4120_s24 }
  0x61   : > { %p44_p7 = scmp.eq.s32.totalorder %s41_s12, 0  ;;  %s2062_s20 = sshll.u32 %s285_s16, 5 }
  0x62   : > { %s2120_s30 = sshll.u32 %s2570_s28, 9  ;;  %s289_s21 = scalar_lea.vmem [#allocation3], %s2062_s20 }
  0x63   : > { %s2795_s8 = scalar_select %p44_p7, %s2562_s26, %s46_s7  }
  0x64   : > { %s2800_s10 = scalar_lea.hbm %s3874_s0, %s2120_s30  ;;  %s298_s15 = sshll.u32 %s289_s21, 4  ;;  %s2802_s15 = int_to_ptr.vmem [resolvable:$true] %s298_s15 }
  0x65   : > { %p2806_p11 = pnand %p2230_p3, %p55_p5  ;;  %s2810_s23 = scalar_lea.sflag [#allocation4], %s285_s16 }
  0x66   : > { %s2454_s7 = scalar_lea.hbm %s2800_s10, 512  ;;  %s2459_s30 = scalar_lea.hbm %s3874_s0, 1024 }
  0x67   : > { %p2455_p9 = scmp.ne.s32.totalorder %s2800_s10, %s2454_s7  ;;  %p2456_p12 = pneg %p2806_p11 }
  0x68   : > { %p2460_p4 = scmp.lt.u32.totalorder %s2800_s10, %s3874_s0  ;;  %p2461_p2 = scmp.lt.u32.totalorder %s2459_s30, %s2454_s7 }
  0x69   : > { %p2457_p0 = pnand %p2456_p12, %p2455_p9  ;;  %p2463_p13 = scmp.lt.u32.totalorder %s2454_s7, %s2800_s10 }
  0x6a   : > { %p2462_p8 = por %p2461_p2, %p2460_p4 }
  0x6b   : > { %p2458_p1 = pneg %p2457_p0 }
  0x6c   : > { %p2464_p6 = por %p2463_p13, %p2462_p8 }
  0x6e   : > { %p2465_p3 = pnand %p2464_p6, %p2458_p1 }
  0x70   : > { %2468 = shalt.err (!%p2465_p3)
}
  0x71   : > { %s2469_s16 = scalar_lea.vmem %s2802_s15, 512  ;;  %s2583_s21 = smov [#allocation3]  }
  0x72   : > { %p2470_p5 = scmp.ne.s32.totalorder %s2802_s15, %s2469_s16  ;;  %s2474_s12 = sshll.u32 %s2583_s21, 4  ;;  %s2475_s12 = int_to_ptr.vmem [resolvable:$false] %s2474_s12 }
  0x73   : > { %s2476_s20 = scalar_lea.vmem %s2475_s12, 1024  ;;  %p2477_p0 = scmp.lt.s32.totalorder %s2802_s15, %s2475_s12 }
  0x74   : > { %p2472_p7 = pnand %p2470_p5, %p2456_p12  ;;  %p2478_p4 = scmp.lt.s32.totalorder %s2476_s20, %s2469_s16 }
  0x76   : > { %p2473_p9 = pneg %p2472_p7  ;;  %p2479_p2 = por %p2478_p4, %p2477_p0 }
  0x78   : > { %p2480_p8 = pnand %p2479_p2, %p2473_p9 }
  0x7a   : > { %2483 = shalt.err (!%p2480_p8)
}
  0x7b   : > { %2222 = dma.hbm_to_vmem [thread:$0]  (!%p2806_p11), %s2800_s10, 512, %s2802_s15, %s2810_s23, %s2581_s18, %s2581_s18, %s2582_s14  }
  0x7c   : > { %p3948_p12 = scmp.ne.s32.totalorder %s3942_s13, 0 }
  0x7e   : > { %310 = sbr.rel (%p3948_p12) target bundleno = 820 (0x334), region = 48 }
  0x85   : > { %s2844_s7 = sand.u32 1, %s2558_s25   ;;  %p3949_p1 = scmp.ne.s32.totalorder %s3939_s11, 0 }
  0x86   : > { %s2066_s30 = sshll.u32 %s2844_s7, 5  ;;  %s313_s17 = scalar_lea.sflag [#allocation4], %s2844_s7 }
  0x87   : > { %s2850_s22 = scalar_lea.vmem [#allocation3], %s2066_s30 }
  0x88   : > { %2537 = dma.done.wait (%p3949_p1), %s313_s17, 512  }
  0x89   : > { %2539 = vsyncadd (%p3949_p1), %s313_s17, 4294966784  ;;  %p3950_p11 = scmp.ne.s32.totalorder %s3937_s9, 0 }
  0x8b   : > { %2541 = dma.done.wait (%p3950_p11), [#allocation7], 2304  }
  0x8c   : > { %2543 = vsyncadd (%p3950_p11), [#allocation7], 4294964992 }
  0x8d   : > { %2545 = dma.done.wait (%p3950_p11), [#allocation10], 2048  }
  0x8e   : > { %2547 = vsyncadd (%p3950_p11), [#allocation10], 4294965248  ;;  %v2584_v0 = vmov 0   ;;  %v2294_v1 = vld [vmem:[#allocation6 + $0x4] ss:$8 sps:$4 sm:$0xff]   ;;  %v2320_v19 = vld [vmem:[%s2850_s22 + $0x10] sm:$0xff]   ;;  %v389_v22 = vlaneseq }
  0x8f   : > { %543 = vmatprep.mubr.bf16.mxu0 %v2584_v0  ;;  %v2296_v2 = vld [vmem:[#allocation6] ss:$8 sps:$4 sm:$0xff]   ;;  %511 = vmatprep.subr.bf16.mxu0 %v2294_v1  ;;  %v2297_v3 = vld [vmem:[#allocation6 + $0x14] ss:$8 sps:$4 sm:$0xff]   ;;  %v2299_v4 = vld [vmem:[#allocation6 + $0x10] ss:$8 sps:$4 sm:$0xff]  }
  0x90   : > { %512 = vmatpush1.bf16.msra.mxu0 %v2296_v2  ;;  %v2300_v5 = vld [vmem:[#allocation6 + $0x24] ss:$8 sps:$4 sm:$0xff]   ;;  %v2302_v6 = vld [vmem:[#allocation6 + $0x20] ss:$8 sps:$4 sm:$0xff]   ;;  %v2303_v7 = vld [vmem:[#allocation6 + $0x34] ss:$8 sps:$4 sm:$0xff]  }
  0x91   : > { %513 = vmatprep.subr.bf16.mxu0 %v2297_v3  ;;  %v2305_v8 = vld [vmem:[#allocation6 + $0x30] ss:$8 sps:$4 sm:$0xff]   ;;  %v2306_v9 = vld [vmem:[#allocation6 + $0x44] ss:$8 sps:$4 sm:$0xff]   ;;  %v2308_v10 = vld [vmem:[#allocation6 + $0x40] ss:$8 sps:$4 sm:$0xff]  }
  0x92   : > { %v2309_v11 = vld [vmem:[#allocation6 + $0x54] ss:$8 sps:$4 sm:$0xff]   ;;  %v2311_v12 = vld [vmem:[#allocation6 + $0x50] ss:$8 sps:$4 sm:$0xff]   ;;  %v2312_v13 = vld [vmem:[#allocation6 + $0x64] ss:$8 sps:$4 sm:$0xff]  }
  0x93   : > { %v2314_v14 = vld [vmem:[#allocation6 + $0x60] ss:$8 sps:$4 sm:$0xff]   ;;  %v2315_v15 = vld [vmem:[#allocation6 + $0x74] ss:$8 sps:$4 sm:$0xff]   ;;  %v2317_v16 = vld [vmem:[#allocation6 + $0x70] ss:$8 sps:$4 sm:$0xff]  }
  0x94   : > { %514 = vmatpush1.bf16.msra.mxu0 %v2299_v4  ;;  %v2318_v17 = vld [vmem:[%s2850_s22] sm:$0xff]   ;;  %v2319_v18 = vld [vmem:[%s2850_s22 + $0x8] sm:$0xff]   ;;  %v2321_v20 = vld [vmem:[%s2850_s22 + $0x18] sm:$0xff]   ;;  %v2585_v21 = vmov 0.0   ;;  %vm693_vm0 = vcmp.lt.s32.totalorder %v389_v22, 256  ;;  %v2868_v39 = vshrl.u32 %v389_v22, 7 }
  0x95   : > { %515 = vmatprep.subr.bf16.mxu0 %v2300_v5  ;;  %683 = vst [vmem:[#allocation2] sm:$0xfe] %v2585_v21  ;;  %684 = vst [vmem:[#allocation2 + $0x8] sm:$0xfe] %v2585_v21  ;;  %v2322_v23 = vld [vmem:[#allocation9 + $0x40] sm:$0xff]   ;;  %v2324_v25 = vld [vmem:[#allocation9 + $0x48] sm:$0xff]  }
  0x96   : > { %685 = vst [vmem:[#allocation2 + $0x10] sm:$0x1] %v2585_v21  ;;  %686 = vst [vmem:[#allocation2 + $0x18] sm:$0x1] %v2585_v21  ;;  %v2323_v24 = vld [vmem:[#allocation9] sm:$0xff]   ;;  %2153 = vmatprep.subr.bf16.mxu1 %v2322_v23  ;;  %v2325_v26 = vld [vmem:[#allocation9 + $0x8] sm:$0xff]  }
  0x97   : > { %687 = vst [vmem:[#allocation2 + $0x90] sm:$0xfe] %v2585_v21  ;;  %688 = vst [vmem:[#allocation2 + $0x98] sm:$0xfe] %v2585_v21  ;;  %2154 = vmatpush3.bf16.msra.mxu1 %v2323_v24  ;;  %v2326_v27 = vld [vmem:[#allocation9 + $0x50] sm:$0xff]   ;;  %v2328_v29 = vld [vmem:[#allocation9 + $0x58] sm:$0xff]  }
  0x98   : > { %516 = vmatpush1.bf16.msra.mxu0 %v2302_v6  ;;  %689 = vst [vmem:[#allocation2 + $0xa0] sm:$0x1] %v2585_v21  ;;  %690 = vst [vmem:[#allocation2 + $0xa8] sm:$0x1] %v2585_v21  ;;  %2155 = vmatprep.subr.bf16.mxu1 %v2324_v25  ;;  %v2327_v28 = vld [vmem:[#allocation9 + $0x10] sm:$0xff]   ;;  %v2329_v30 = vld [vmem:[#allocation9 + $0x18] sm:$0xff]  }
  0x99   : > { %517 = vmatprep.subr.bf16.mxu0 %v2303_v7  ;;  %695 = vst.msk [vmem:[#allocation2] ss:$8 sm:$0x3] %vm693_vm0, %v2585_v21  ;;  %698 = vst.msk [vmem:[#allocation2 + $0xa1] ss:$8 sm:$0x3] %vm693_vm0, %v2585_v21 }
  0x9a   : > { %v2330_v31 = vld [vmem:[#allocation9 + $0x60] sm:$0xff]   ;;  %v2332_v33 = vld [vmem:[#allocation9 + $0x68] sm:$0xff]   ;;  %v2334_v35 = vld [vmem:[#allocation9 + $0x70] sm:$0xff]   ;;  %v2874_v42 = vsub.s32 0, %v2868_v39  ;;  %v395_v44 = vsub.s32 2, %v2868_v39  ;;  %v959_v45 = vsub.s32 1, %v2868_v39 }
  0x9b   : > { %2156 = vmatpush3.bf16.msra.mxu1 %v2325_v26  ;;  %v2331_v32 = vld [vmem:[#allocation9 + $0x20] sm:$0xff]   ;;  %v2333_v34 = vld [vmem:[#allocation9 + $0x28] sm:$0xff]   ;;  %v2335_v36 = vld [vmem:[#allocation9 + $0x30] sm:$0xff]   ;;  %v985_v51 = vsub.s32 4, %v2868_v39  ;;  %v873_v59 = vsub.s32 3, %v2868_v39  ;;  %v915_v3 = vsub.s32 6, %v2868_v39 }
  0x9c   : > { %518 = vmatpush1.bf16.msra.mxu0 %v2305_v8  ;;  %2157 = vmatprep.subr.bf16.mxu1 %v2326_v27  ;;  %v2336_v37 = vld [vmem:[#allocation9 + $0x78] sm:$0xff]   ;;  %v378_v40 = vld [vmem:[%s3876_s2] sm:$0x3]  ;;  %3951 = vst [vmem:[#allocation19_spill] sm:$0xff] %v2874_v42  ;;  %v821_v43 = vld [vmem:[#allocation8] sm:$0xff]  ;;  %v1173_v4 = vsub.s32 5, %v2868_v39 }
  0x9d   : > { %519 = vmatprep.subr.bf16.mxu0 %v2306_v9  ;;  %v2337_v38 = vld [vmem:[#allocation9 + $0x38] sm:$0xff]   ;;  %v379_v41 = vunpack.c.l.bf16 %v378_v40  ;;  %v823_v46 = vunpack.c.l.bf16 %v821_v43  ;;  %v824_v47 = vunpack.c.h.bf16 %v821_v43  ;;  %v827_v52 = vld [vmem:[%s3878_s4] sm:$0x3]  ;;  %v954_v55 = vld [vmem:[#allocation2 + $0x8] sm:$0xfe]  ;;  %v2914_v7 = vadd.s32 48, %v2868_v39 }
  0x9e   : > { %v953_v54 = vld [vmem:[#allocation2] sm:$0xfe]  ;;  %v828_v58 = vunpack.c.l.bf16 %v827_v52  ;;  %v822_v60 = vld [vmem:[#allocation8 + $0x8] sm:$0x11]  ;;  %v1095_v9 = vsub.s32 7, %v2868_v39  ;;  %vm616_vm1 = vcmask 1040384  }
  0x9f   : > { %2158 = vmatpush3.bf16.msra.mxu1 %v2327_v28  ;;  %v392_v48 = vrot.slane %v379_v41, %v2874_v42  ;;  %v396_v49 = vrot.slane %v379_v41, %v395_v44  ;;  %v2879_v50 = vrot.slane %v823_v46, %v959_v45  ;;  %v2885_v53 = vrot.slane %v824_v47, %v959_v45  ;;  %v1091_v25 = vld [vmem:[#allocation2 + $0xa0] sm:$0x1]  ;;  %v1137_v43 = vld [vmem:[#allocation2] sm:$0xfc]  ;;  %s3812_s15 = scalar_lea.vmem [#allocation11], %s2066_s30  ;;  %s4107_s23 = sld [smem:[#allocation17_spill]] }
  0xa0   : > { %520 = vmatpush1.bf16.msra.mxu0 %v2308_v10  ;;  %2159 = vmatprep.subr.bf16.mxu1 %v2328_v29  ;;  %v2897_v62 = vrot.slane %v823_v46, %v985_v51  ;;  %v2904_v1 = vrot.slane %v823_v46, %v395_v44  ;;  %v2907_v2 = vrot.slane %v823_v46, %v2874_v42  ;;  %v829_v6 = vld [vmem:[#allocation2] sm:$0xff]  ;;  %v825_v8 = vunpack.c.l.bf16 %v822_v60  ;;  %s1939_s19 = sshll.u32 %s3812_s15, 4  ;;  %s4108_s20 = sld [smem:[#allocation67_spill]]  ;;  %s3819_s19 = int_to_ptr.vmem [resolvable:$true] %s1939_s19 }
  0xa1   : > { %521 = vmatprep.subr.bf16.mxu0 %v2309_v11  ;;  %v2888_v56 = vrot.slane %v392_v48, %v2874_v42  ;;  %v2891_v57 = vrot.slane %v396_v49, %v2874_v42  ;;  %v2895_v61 = vmul.f32 %v2879_v50, %v953_v54  ;;  %v2900_v63 = vmul.f32 %v2885_v53, %v954_v55  ;;  %v830_v11 = vld [vmem:[#allocation2 + $0x8] sm:$0xff]  ;;  %v1217_v27 = vld [vmem:[#allocation2 + $0xa0] sm:$0x3]  ;;  %s1924_s17 = scalar_lea.sflag [#allocation5], %s2844_s7  ;;  %s2484_s22 = scalar_lea.vmem %s3819_s19, 512 }
  0xa2   : > { %3952 = vst [vmem:[#allocation20_spill] sm:$0xff] %v2907_v2  ;;  %v2911_v5 = vrot.slane %v824_v47, %v395_v44  ;;  %v2917_v10 = vrot.slane %v823_v46, %v873_v59  ;;  %v2936_v21 = vrot.slane %v823_v46, %v1173_v4  ;;  %v2938_v22 = vrot.slane %v824_v47, %v1173_v4  ;;  %p2485_p13 = scmp.ne.s32.totalorder %s3819_s19, %s2484_s22  ;;  %s2586_s9 = smov [#allocation11]  }
  0xa3   : > { %2160 = vmatpush3.bf16.msra.mxu1 %v2329_v30  ;;  %v2944_v26 = vrot.slane %v823_v46, %v1095_v9  ;;  %v2947_v28 = vrot.slane %v825_v8, %v2874_v42  ;;  %vm1313_vm3 = vcmask 1046528   ;;  %vm1414_vm6 = vcmask 1045504   ;;  %s2488_s11 = sshll.u32 %s2586_s9, 4  ;;  %s2489_s11 = int_to_ptr.vmem [resolvable:$false] %s2488_s11 }
  0xa4   : > { %522 = vmatpush1.bf16.msra.mxu0 %v2311_v12  ;;  %2161 = vmatprep.subr.bf16.mxu1 %v2330_v31  ;;  %3953 = vst [vmem:[#allocation21_spill] sm:$0xff] %v2917_v10  ;;  %v2920_v12 = vrot.slane %v824_v47, %v2874_v42  ;;  %p2486_p6 = pnand %p2485_p13, %p2783_p10  ;;  %s2490_s13 = scalar_lea.vmem %s2489_s11, 1024 }
  0xa5   : > { %523 = vmatprep.subr.bf16.mxu0 %v2312_v13  ;;  %v2923_v13 = vadd.s32 56, %v2868_v39  ;;  %s2129_s16 = sshll.u32 %s4107_s23, 9  ;;  %p2491_p5 = scmp.lt.s32.totalorder %s3819_s19, %s2489_s11 }
  0xa6   : > { %3954 = vst [vmem:[#allocation22_spill] sm:$0xff] %v2920_v12  ;;  %v2941_v23 = vmul.f32 %v2920_v12, %v830_v11  ;;  %v2989_v11 = vadd.s32 24, %v2868_v39  ;;  %s3824_s30 = scalar_lea.hbm %s4108_s20, %s2129_s16  ;;  %p2487_p3 = pneg %p2486_p6 }
  0xa7   : > { %2162 = vmatpush3.bf16.msra.mxu1 %v2331_v32  ;;  %v2953_v32 = vrot.slane %v824_v47, %v915_v3  ;;  %p2492_p7 = scmp.lt.s32.totalorder %s2490_s13, %s2484_s22 }
  0xa8   : > { %524 = vmatpush1.bf16.msra.mxu0 %v2314_v14  ;;  %2163 = vmatprep.subr.bf16.mxu1 %v2332_v33  ;;  %v1501_v14 = vrot.slane %v828_v58, %v2874_v42  ;;  %v1092_v33 = vld [vmem:[#allocation2 + $0xa8] sm:$0x1]  ;;  %3959 = vst [vmem:[#allocation27_spill] sm:$0xff] %v2989_v11 }
  0xa9   : > { %525 = vmatprep.subr.bf16.mxu0 %v2315_v15  ;;  %v1505_v15 = vrot.slane %v828_v58, %v395_v44  ;;  %p2493_p9 = por %p2492_p7, %p2491_p5 }
  0xaa   : > { %v2951_v31 = vrot.slane %v1501_v14, %v2874_v42 }
  0xab   : > { %2164 = vmatpush3.bf16.msra.mxu1 %v2333_v34  ;;  %v2955_v34 = vrot.slane %v824_v47, %v1095_v9  ;;  %v2971_v48 = vrot.slane %v1505_v15, %v2874_v42  ;;  %v1138_v9 = vld [vmem:[#allocation2 + $0x8] sm:$0xfc]  ;;  %p2494_p0 = pnand %p2493_p9, %p2487_p3 }
  0xac   : > { %526 = vmatpush1.bf16.msra.mxu0 %v2317_v16  ;;  %2165 = vmatprep.subr.bf16.mxu1 %v2334_v35  ;;  %v2926_v16 = vrot.slane %v824_v47, %v873_v59  ;;  %3955 = vst [vmem:[#allocation23_spill] sm:$0xff] %v2951_v31  ;;  %v1218_v35 = vld [vmem:[#allocation2 + $0xa8] sm:$0x3] }
  0xad   : > { %3956 = vst [vmem:[#allocation24_spill] sm:$0xff] %v2971_v48  ;;  %v2975_v54 = vmul.f32 %v2955_v34, %v1092_v33 }
  0xaf   : > { %544 = vmatmul.mubr.bf16.vlgmr.msra.gmra.mrb[0].mxu0 %v2318_v17  ;;  %2166 = vmatpush3.bf16.msra.mxu1 %v2335_v36  ;;  %v826_v17 = vunpack.c.h.bf16 %v822_v60  ;;  %v2982_v60 = vmul.f32 %v2904_v1, %v1137_v43 }
  0xb0   : > { %553 = vmatprep.mubr.bf16.mxu0 %v2584_v0  ;;  %2167 = vmatprep.subr.bf16.mxu1 %v2336_v37 }
  0xb1   : > { %3957 = vst [vmem:[#allocation25_spill] sm:$0xff] %v2982_v60 }
  0xb3   : > { %2168 = vmatpush3.bf16.msra.mxu1 %v2337_v38  ;;  %v2959_v38 = vrot.slane %v826_v17, %v2874_v42 }
  0xb5   : > { %v2978_v55 = vmul.f32 %v2959_v38, %v1218_v35  ;;  %v2997_v35 = vadd.s32 40, %v2868_v39 }
  0xb7   : > { %554 = vmatmul.mubr.bf16.gmra.mrb[4].mxu0 %v2319_v18  ;;  %v2929_v18 = vadd.s32 8, %v2868_v39  ;;  %3961 = vst [vmem:[#allocation29_spill] sm:$0xff] %v2997_v35 }
  0xb8   : > { %563 = vmatprep.mubr.bf16.mxu0 %v2584_v0 }
  0xbf   : > { %564 = vmatmul.mubr.bf16.gmra.mrb[8].mxu0 %v2320_v19  ;;  %v2932_v19 = vmul.f32 %v2907_v2, %v829_v6 }
  0xc0   : > { %573 = vmatprep.mubr.bf16.mxu0 %v2584_v0  ;;  %v2902_v0 = vrot.slane %v824_v47, %v985_v51  ;;  %v2968_v47 = vmul.f32 %v2947_v28, %v1217_v27 }
  0xc7   : > { %574 = vmatmul.mubr.bf16.gmra.mrb[12].mxu0 %v2321_v20  ;;  %v2934_v20 = vrot.slane %v823_v46, %v915_v3  ;;  %v2965_v46 = vmul.f32 %v2944_v26, %v1091_v25  ;;  %v2985_v3 = vadd.s32 16, %v2868_v39  ;;  %v2993_v25 = vadd.s32 32, %v2868_v39 }
  0xc9   : > { %3958 = vst [vmem:[#allocation26_spill] sm:$0xff] %v2985_v3  ;;  %3960 = vst [vmem:[#allocation28_spill] sm:$0xff] %v2993_v25 }
 0x182   : > { %v545_v29 = vpop.f32.mrb[0].mxu0 }
 0x183   : > { %v546_v36 = vadd.f32 %v545_v29, %v2888_v56  ;;  %v547_v37 = vpop.f32.mrb[1].mxu0 }
 0x184   : > { %v548_v44 = vadd.f32 %v547_v37, %v2891_v57  ;;  %v549_v45 = vpop.f32.mrb[2].mxu0 }
 0x185   : > { %v584_v49 = vmax.f32 %v546_v36, 0.0  ;;  %v550_v51 = vadd.f32 %v549_v45, %v2888_v56  ;;  %v551_v52 = vpop.f32.mrb[3].mxu0  ;;  %v3005_v45 = vmul.f32 %v2911_v5, %v1138_v9 }
 0x186   : > { %v585_v58 = vmax.f32 %v548_v44, 0.0  ;;  %v552_v59 = vadd.f32 %v551_v52, %v2891_v57 }
 0x187   : > { %v617_v4 = vrot.slane %v584_v49, 7  ;;  %v991_v6 = vmul.f32 %v2897_v62, %v584_v49  ;;  %v586_v8 = vmax.f32 %v550_v51, 0.0  ;;  %3962 = vst [vmem:[#allocation30_spill] sm:$0xff] %v3005_v45 }
 0x188   : > { %v618_v14 = vrot.slane %v585_v58, 7  ;;  %v992_v15 = vmul.f32 %v2902_v0, %v585_v58  ;;  %v587_v17 = vmax.f32 %v552_v59, 0.0 }
 0x189   : > { %665 = vst [vmem:[#allocation2 + $0x10] sm:$0xfe] %v617_v4  ;;  %v1023_v27 = vrot.slane %v991_v6, 7  ;;  %v619_v29 = vrot.slane %v586_v8, 7  ;;  %v993_v33 = vmul.f32 %v2897_v62, %v586_v8 }
 0x18a   : > { %666 = vst [vmem:[#allocation2 + $0x18] sm:$0xfe] %v618_v14  ;;  %v1024_v36 = vrot.slane %v992_v15, 7  ;;  %v2999_v37 = vrot.slane %v587_v17, 7  ;;  %v3002_v43 = vmul.f32 %v2902_v0, %v587_v17  ;;  %v555_v44 = vpop.f32.mrb[4].mxu0 }
 0x18b   : > { %v620_v49 = vsel %vm616_vm1, %v617_v4, %v619_v29  ;;  %v1025_v51 = vrot.slane %v993_v33, 7  ;;  %v556_v52 = vadd.f32 %v555_v44, %v2888_v56  ;;  %v557_v58 = vpop.f32.mrb[5].mxu0  ;;  %v3018_v4 = vadd.f32 %v1023_v27, %v2895_v61 }
 0x18c   : > { %667 = vst [vmem:[#allocation2 + $0x20] sm:$0xff] %v620_v49  ;;  %v3012_v6 = vsel %vm616_vm1, %v618_v14, %v2999_v37  ;;  %v3889_v8 = vrot.slane %v3002_v43, 7  ;;  %v559_v15 = vpop.f32.mrb[6].mxu0  ;;  %v3024_v14 = vadd.f32 %v1024_v36, %v2900_v63  ;;  %v3032_v9 = vmul.f32 %v2907_v2, %v620_v49 }
 0x18d   : > { %3963 = vst [vmem:[#allocation31_spill] sm:$0xff] %v3012_v6  ;;  %3964 = vst [vmem:[#allocation32_spill] sm:$0xff] %v3018_v4  ;;  %v1026_v33 = vsel %vm616_vm1, %v1023_v27, %v1025_v51  ;;  %v588_v44 = vmax.f32 %v556_v52, 0.0  ;;  %v561_v59 = vpop.f32.mrb[7].mxu0  ;;  %v3035_v61 = vmul.f32 %v2904_v1, %v620_v49  ;;  %v3038_v52 = vmul.f32 %v2917_v10, %v620_v49 }
 0x18e   : > { %668 = vst [vmem:[#allocation2 + $0x28] sm:$0xff] %v3012_v6  ;;  %3965 = vst [vmem:[#allocation33_spill] sm:$0xff] %v3024_v14  ;;  %v3029_v17 = vsel %vm616_vm1, %v1024_v36, %v3889_v8  ;;  %v3041_v41 = vmul.f32 %v2934_v20, %v620_v49  ;;  %v969_v30 = vmul.f32 %v2879_v50, %v620_v49 }
 0x18f   : > { %3966 = vst [vmem:[#allocation34_spill] sm:$0xff] %v3032_v9  ;;  %3967 = vst [vmem:[#allocation35_spill] sm:$0xff] %v3035_v61  ;;  %v623_v27 = vrot.slane %v588_v44, 7  ;;  %v995_v63 = vmul.f32 %v2897_v62, %v588_v44  ;;  %v1181_v36 = vmul.f32 %v2936_v21, %v620_v49  ;;  %v558_v24 = vadd.f32 %v557_v58, %v2891_v57 }
 0x190   : > { %3968 = vst [vmem:[#allocation36_spill] sm:$0xff] %v3038_v52  ;;  %3969 = vst [vmem:[#allocation37_spill] sm:$0xff] %v3041_v41  ;;  %v831_v40 = vld [vmem:[#allocation2 + $0x10] sm:$0xff]  ;;  %v3049_v8 = vmul.f32 %v2920_v12, %v3012_v6  ;;  %v970_v9 = vmul.f32 %v2885_v53, %v3012_v6  ;;  %v560_v44 = vadd.f32 %v559_v15, %v2888_v56 }
 0x191   : > { %v879_v42 = vmul.f32 %v2917_v10, %v831_v40  ;;  %v1151_v35 = vmul.f32 %v2904_v1, %v831_v40  ;;  %v832_v25 = vld [vmem:[#allocation2 + $0x18] sm:$0xff]  ;;  %v3057_v31 = vmul.f32 %v2907_v2, %v831_v40  ;;  %v967_v49 = vmul.f32 %v2879_v50, %v831_v40 }
 0x192   : > { %3970 = vst [vmem:[#allocation38_spill] sm:$0xff] %v3049_v8  ;;  %v3062_v58 = vmul.f32 %v2911_v5, %v3012_v6  ;;  %v3066_v8 = vmul.f32 %v2938_v22, %v3012_v6  ;;  %v565_v11 = vpop.f32.mrb[8].mxu0  ;;  %v3069_v3 = vmul.f32 %v2920_v12, %v832_v25  ;;  %v880_v4 = vmul.f32 %v2926_v16, %v832_v25 }
 0x193   : > { %3971 = vst [vmem:[#allocation39_spill] sm:$0xff] %v3057_v31  ;;  %v3073_v15 = vsel %vm616_vm1, %v619_v29, %v623_v27  ;;  %v1029_v48 = vrot.slane %v995_v63, 7  ;;  %v567_v41 = vpop.f32.mrb[9].mxu0  ;;  %v968_v40 = vmul.f32 %v2885_v53, %v832_v25  ;;  %v3077_v52 = vmul.f32 %v2911_v5, %v832_v25 }
 0x194   : > { %3972 = vst [vmem:[#allocation40_spill] sm:$0xff] %v3062_v58  ;;  %3973 = vst [vmem:[#allocation41_spill] sm:$0xff] %v3066_v8  ;;  %v3079_v31 = vadd.f32 %v1181_v36, %v1151_v35  ;;  %v589_v58 = vmax.f32 %v558_v24, 0.0  ;;  %v569_v61 = vpop.f32.mrb[10].mxu0  ;;  %v3082_v8 = vadd.f32 %v879_v42, %v2932_v19  ;;  %v590_v60 = vmax.f32 %v560_v44, 0.0 }
 0x195   : > { %3974 = vst [vmem:[#allocation42_spill] sm:$0xff] %v3069_v3  ;;  %3975 = vst [vmem:[#allocation43_spill] sm:$0xff] %v3073_v15  ;;  %v1030_v45 = vsel %vm616_vm1, %v1025_v51, %v1029_v48  ;;  %v562_v29 = vadd.f32 %v561_v59, %v2891_v57  ;;  %v571_v14 = vpop.f32.mrb[11].mxu0  ;;  %v566_v25 = vadd.f32 %v565_v11, %v2888_v56 }
 0x196   : > { %3976 = vst [vmem:[#allocation44_spill] sm:$0xff] %v3077_v52  ;;  %3977 = vst [vmem:[#allocation45_spill] sm:$0xff] %v3079_v31  ;;  %v3086_v63 = vadd.f32 %v1030_v45, %v969_v30  ;;  %v625_v3 = vrot.slane %v589_v58, 7  ;;  %v996_v6 = vmul.f32 %v2902_v0, %v589_v58  ;;  %v3090_v35 = vadd.f32 %v1026_v33, %v967_v49 }
 0x197   : > { %3978 = vst [vmem:[#allocation46_spill] sm:$0xff] %v3082_v8  ;;  %v627_v24 = vrot.slane %v590_v60, 7  ;;  %v997_v36 = vmul.f32 %v2897_v62, %v590_v60  ;;  %v591_v42 = vmax.f32 %v562_v29, 0.0  ;;  %v592_v59 = vmax.f32 %v566_v25, 0.0 }
 0x198   : > { %3979 = vst [vmem:[#allocation47_spill] sm:$0xff] %v3086_v63  ;;  %3980 = vst [vmem:[#allocation48_spill] sm:$0xff] %v3090_v35  ;;  %v3095_v19 = vsel %vm616_vm1, %v2999_v37, %v625_v3  ;;  %v1031_v51 = vrot.slane %v996_v6, 7  ;;  %v568_v30 = vadd.f32 %v567_v41, %v2891_v57  ;;  %v570_v11 = vadd.f32 %v569_v61, %v2888_v56 }
 0x199   : > { %3981 = vst [vmem:[#allocation49_spill] sm:$0xff] %v3095_v19  ;;  %v3099_v45 = vsel %vm616_vm1, %v623_v27, %v627_v24  ;;  %v1033_v44 = vrot.slane %v997_v36, 7  ;;  %v629_v58 = vrot.slane %v591_v42, 7  ;;  %v3103_v33 = vadd.f32 %v880_v4, %v2941_v23 }
 0x19a   : > { %3982 = vst [vmem:[#allocation50_spill] sm:$0xff] %v3099_v45  ;;  %v3984_v60 = vrot.slane %v3002_v43, 7  ;;  %v998_v37 = vmul.f32 %v2902_v0, %v591_v42  ;;  %v631_v6 = vrot.slane %v592_v59, 7  ;;  %v575_v29 = vpop.f32.mrb[12].mxu0  ;;  %v999_v61 = vmul.f32 %v2897_v62, %v592_v59 }
 0x19b   : > { %3983 = vst [vmem:[#allocation51_spill] sm:$0xff] %v3103_v33  ;;  %v1034_v41 = vsel %vm616_vm1, %v1029_v48, %v1033_v44  ;;  %v3113_v27 = vsel %vm616_vm1, %v625_v3, %v629_v58  ;;  %v577_v36 = vpop.f32.mrb[13].mxu0  ;;  %v3117_v23 = vadd.f32 %v3029_v17, %v968_v40  ;;  %v593_v42 = vmax.f32 %v568_v30, 0.0 }
 0x19c   : > { %v1032_v49 = vsel %vm616_vm1, %v3984_v60, %v1031_v51  ;;  %v1035_v43 = vrot.slane %v998_v37, 7  ;;  %v3120_v4 = vsel %vm616_vm1, %v627_v24, %v631_v6  ;;  %v579_v60 = vpop.f32.mrb[14].mxu0  ;;  %v3126_v48 = vmul.f32 %v2885_v53, %v3095_v19 }
 0x19d   : > { %v3109_v25 = vadd.f32 %v1032_v49, %v970_v9  ;;  %3986 = vst [vmem:[#allocation53_spill] sm:$0xff] %v3117_v23  ;;  %3987 = vst [vmem:[#allocation54_spill] sm:$0xff] %v3120_v4  ;;  %v971_v9 = vmul.f32 %v2879_v50, %v3073_v15  ;;  %v1037_v3 = vrot.slane %v999_v61, 7  ;;  %v594_v49 = vmax.f32 %v570_v11, 0.0  ;;  %v3128_v59 = vpop.f32.mrb[15].mxu0 }
 0x19e   : > { %v3131_v17 = vsel %vm616_vm1, %v1031_v51, %v1035_v43  ;;  %v633_v40 = vrot.slane %v593_v42, 7  ;;  %v1000_v24 = vmul.f32 %v2902_v0, %v593_v42  ;;  %v572_v30 = vadd.f32 %v571_v14, %v2891_v57 }
 0x19f   : > { %3985 = vst [vmem:[#allocation52_spill] sm:$0xff] %v3109_v25  ;;  %v3137_v37 = vmul.f32 %v2879_v50, %v3099_v45  ;;  %v3140_v63 = vsel %vm616_vm1, %v1033_v44, %v1037_v3  ;;  %v635_v35 = vrot.slane %v594_v49, 7  ;;  %v1001_v11 = vmul.f32 %v2897_v62, %v594_v49 }
 0x1a0   : > { %3989 = vst [vmem:[#allocation56_spill] sm:$0xff] %v3140_v63  ;;  %v3143_v61 = vadd.f32 %v1034_v41, %v971_v9  ;;  %v3146_v51 = vsel %vm616_vm1, %v629_v58, %v633_v40  ;;  %v1039_v8 = vrot.slane %v1000_v24, 7  ;;  %v595_v31 = vmax.f32 %v572_v30, 0.0 }
 0x1a1   : > { %3988 = vst [vmem:[#allocation55_spill] sm:$0xff] %v3137_v37  ;;  %3991 = vst [vmem:[#allocation58_spill] sm:$0xff] %v3146_v51  ;;  %v3149_v42 = vsel %vm616_vm1, %v631_v6, %v635_v35  ;;  %v975_v14 = vmul.f32 %v2879_v50, %v3120_v4  ;;  %v1041_v37 = vrot.slane %v1001_v11, 7  ;;  %v576_v44 = vadd.f32 %v575_v29, %v2888_v56 }
 0x1a2   : > { %3990 = vst [vmem:[#allocation57_spill] sm:$0xff] %v3143_v61  ;;  %3992 = vst [vmem:[#allocation59_spill] sm:$0xff] %v3149_v42  ;;  %v3155_v63 = vsel %vm616_vm1, %v1035_v43, %v1039_v8  ;;  %v637_v49 = vrot.slane %v595_v31, 7  ;;  %v976_v41 = vmul.f32 %v2885_v53, %v3146_v51  ;;  %v1002_v58 = vmul.f32 %v2902_v0, %v595_v31 }
 0x1a3   : > { %3993 = vst [vmem:[#allocation60_spill] sm:$0xff] %v3155_v63  ;;  %v1042_v9 = vsel %vm616_vm1, %v1037_v3, %v1041_v37  ;;  %v596_v24 = vmax.f32 %v576_v44, 0.0  ;;  %v977_v6 = vmul.f32 %v2879_v50, %v3149_v42  ;;  %v578_v30 = vadd.f32 %v577_v36, %v2891_v57 }
 0x1a4   : > { %v1081_v11 = vadd.f32 %v1042_v9, %v975_v14  ;;  %v3165_v29 = vsel %vm616_vm1, %v633_v40, %v637_v49  ;;  %v1043_v43 = vrot.slane %v1002_v58, 7  ;;  %v580_v61 = vadd.f32 %v579_v60, %v2888_v56 }
 0x1a5   : > { %v3994_v4 = vand.u32 7, %v2914_v7  ;;  %v639_v31 = vrot.slane %v596_v24, 7  ;;  %v1003_v3 = vmul.f32 %v2897_v62, %v596_v24  ;;  %v597_v44 = vmax.f32 %v578_v30, 0.0 }
 0x1a6   : > { %v978_v36 = vmul.f32 %v2885_v53, %v3165_v29  ;;  %v1044_v14 = vsel %vm616_vm1, %v1039_v8, %v1043_v43  ;;  %v598_v40 = vmax.f32 %v580_v61, 0.0  ;;  %v865_v58 = vmul.f32 %v2907_v2, %v3149_v42 }
 0x1a7   : > { %vm3170_vm2 = vcmp.ne.s32.totalorder %v3994_v4, 0  ;;  %v1161_v56 = vmul.f32 %v2904_v1, %v3149_v42  ;;  %v3182_v4 = vadd.f32 %v1044_v14, %v976_v41  ;;  %v3185_v60 = vsel %vm616_vm1, %v635_v35, %v639_v31 }
 0x1a8   : > { %3997 = vst [vmem:[#allocation61_spill] sm:$0xff] %v3185_v60  ;;  %v1045_v9 = vrot.slane %v1003_v3, 7  ;;  %v3187_v24 = vrot.slane %v597_v44, 7  ;;  %v3190_v30 = vmul.f32 %v2902_v0, %v597_v44  ;;  %v643_v63 = vrot.slane %v598_v40, 7 }
 0x1a9   : > { %v867_v8 = vmul.f32 %v2907_v2, %v3185_v60  ;;  %v891_v61 = vmul.f32 %v2917_v10, %v3185_v60  ;;  %v979_v35 = vmul.f32 %v2879_v50, %v3185_v60  ;;  %v1005_v3 = vmul.f32 %v2897_v62, %v598_v40 }
 0x1aa   : > { %v1046_v42 = vsel %vm616_vm1, %v1041_v37, %v1045_v9  ;;  %v3199_v41 = vsel %vm616_vm1, %v637_v49, %v3187_v24  ;;  %v3915_v14 = vrot.slane %v3190_v30, 7  ;;  %v644_v45 = vsel %vm616_vm1, %v639_v31, %v643_v63  ;;  %681 = vst [vmem:[#allocation2 + $0x90] sm:$0x1] %v643_v63 }
 0x1ab   : > { %v1083_v44 = vadd.f32 %v1046_v42, %v977_v6  ;;  %v907_v2 = vadd.f32 %v891_v61, %v865_v58  ;;  %679 = vst [vmem:[#allocation2 + $0x80] sm:$0xff] %v644_v45  ;;  %v3998_v37 = vand.u32 7, %v2923_v13  ;;  %v893_v49 = vmul.f32 %v2917_v10, %v644_v45 }
 0x1ac   : > { %v933_v25 = vmul.f32 %v2934_v20, %v644_v45  ;;  %v1049_v62 = vrot.slane %v1005_v3, 7  ;;  %v1111_v42 = vmul.f32 %v2944_v26, %v3185_v60  ;;  %v1048_v63 = vsel %vm616_vm1, %v1043_v43, %v3915_v14 }
 0x1ad   : > { %vm3208_vm4 = vcmp.ne.s32.totalorder %v3998_v37, 0  ;;  %v1113_v6 = vmul.f32 %v2944_v26, %v644_v45  ;;  %v1163_v31 = vmul.f32 %v2904_v1, %v3185_v60  ;;  %v1191_v40 = vmul.f32 %v2936_v21, %v3185_v60 }
 0x1ae   : > { %v3224_v58 = vadd.f32 %v1048_v63, %v978_v36  ;;  %v909_v61 = vadd.f32 %v893_v49, %v867_v8  ;;  %v949_v37 = vadd.f32 %v933_v25, %v907_v2  ;;  %v1050_v3 = vsel %vm616_vm1, %v1045_v9, %v1049_v62 }
 0x1af   : > { %v4001_v10 = vand.u32 7, %v2914_v7  ;;  %v1085_v43 = vadd.f32 %v1050_v3, %v979_v35  ;;  %v3233_v14 = vadd.f32 %v1111_v42, %v1081_v11  ;;  %v1131_v15 = vadd.f32 %v1113_v6, %v1083_v44 }
 0x1b0   : > { %v1193_v33 = vmul.f32 %v2936_v21, %v644_v45  ;;  %v1209_v19 = vadd.f32 %v1191_v40, %v1161_v56  ;;  %v1239_v36 = vmul.f32 %v2947_v28, %v644_v45  ;;  %v1291_v2 = vsel %vm3170_vm2, %v949_v37, 0.0 }
 0x1b1   : > { %vm3229_vm5 = vcmp.ne.s32.totalorder %v4001_v10, 7  ;;  %4004 = vst [vmem:[#allocation62_spill] sm:$0xff] %v3233_v14  ;;  %v582_v7 = vadd.f32 %v3128_v59, %v2891_v57  ;;  %v3924_v25 = vrot.slane %v3233_v14, 1  ;;  %v1336_v9 = vrot.slane %v1131_v15, 1  ;;  %v911_v45 = vld [vmem:[#allocation2 + $0x90] sm:$0xff] }
 0x1b2   : > { %v1211_v10 = vadd.f32 %v1193_v33, %v1163_v31  ;;  %v866_v11 = vmul.f32 %v2920_v12, %v3165_v29  ;;  %v4005_v8 = vand.u32 7, %v2923_v13  ;;  %v1169_v35 = vld [vmem:[#allocation2 + $0x90] sm:$0x3]  ;;  %v3250_v44 = vadd.f32 %v1239_v36, %v1209_v19  ;;  %v955_v59 = vld [vmem:[#allocation2 + $0x80] sm:$0x1] }
 0x1b3   : > { %v599_v49 = vmax.f32 %v582_v7, 0.0  ;;  %v868_v57 = vmul.f32 %v2920_v12, %v3199_v41  ;;  %v892_v15 = vmul.f32 %v2926_v16, %v3199_v41  ;;  %v935_v33 = vmul.f32 %v2934_v20, %v911_v45  ;;  %v1139_v42 = vld [vmem:[#allocation2 + $0x80] sm:$0x3] }
 0x1b4   : > { %vm3246_vm7 = vcmp.ne.s32.totalorder %v4005_v8, 7  ;;  %4008 = vst [vmem:[#allocation63_spill] sm:$0xff] %v3250_v44  ;;  %v1115_v13 = vmul.f32 %v2944_v26, %v911_v45  ;;  %v1195_v63 = vmul.f32 %v2936_v21, %v1169_v35  ;;  %v1241_v6 = vmul.f32 %v2947_v28, %v911_v45 }
 0x1b5   : > { %v981_v19 = vmul.f32 %v2879_v50, %v955_v59  ;;  %v1165_v31 = vmul.f32 %v2904_v1, %v1139_v42  ;;  %v3265_v40 = vsel %vm1313_vm3, %v3924_v25, %v1336_v9  ;;  %v3925_v37 = vrot.slane %v3250_v44, 2 }
 0x1b6   : > { %4009 = vst [vmem:[#allocation64_spill] sm:$0xff] %v3265_v40  ;;  %v951_v3 = vadd.f32 %v935_v33, %v909_v61  ;;  %v1133_v36 = vadd.f32 %v1115_v13, %v1085_v43  ;;  %v1259_v7 = vadd.f32 %v1241_v6, %v1211_v10  ;;  %v645_v8 = vrot.slane %v599_v49, 7 }
 0x1b7   : > { %v1087_v60 = vadd.f32 %v1049_v62, %v981_v19  ;;  %v1213_v12 = vadd.f32 %v1195_v63, %v1165_v31  ;;  %v908_v35 = vadd.f32 %v892_v15, %v866_v11  ;;  %v980_v45 = vmul.f32 %v2885_v53, %v3199_v41 }
 0x1b8   : > { %v1293_v50 = vsel %vm3208_vm4, %v951_v3, 0.0  ;;  %v1340_v59 = vrot.slane %v1133_v36, 1  ;;  %v1441_v42 = vrot.slane %v1259_v7, 2  ;;  %v646_v25 = vsel %vm616_vm1, %v3187_v24, %v645_v8  ;;  %682 = vst [vmem:[#allocation2 + $0x98] sm:$0x1] %v645_v8 }
 0x1b9   : > { %v1135_v61 = vadd.f32 %v2965_v46, %v1087_v60  ;;  %v1261_v43 = vadd.f32 %v2968_v47, %v1213_v12  ;;  %680 = vst [vmem:[#allocation2 + $0x88] sm:$0xff] %v646_v25  ;;  %v894_v62 = vmul.f32 %v2926_v16, %v646_v25  ;;  %v934_v10 = vmul.f32 %v2953_v32, %v646_v25 }
 0x1ba   : > { %v1341_v11 = vsel %vm1313_vm3, %v1336_v9, %v1340_v59  ;;  %v1442_v15 = vsel %vm1414_vm6, %v3925_v37, %v1441_v42  ;;  %v1006_v33 = vmul.f32 %v2902_v0, %v599_v49  ;;  %v1112_v24 = vmul.f32 %v2955_v34, %v3199_v41 }
 0x1bb   : > { %v1344_v13 = vrot.slane %v1135_v61, 1  ;;  %v1376_v46 = vadd.f32 %v1341_v11, %v1291_v2  ;;  %v1445_v60 = vrot.slane %v1261_v43, 2  ;;  %v1477_v12 = vsel %vm3229_vm5, %v1442_v15, 0.0 }
 0x1bc   : > { %v910_v47 = vadd.f32 %v894_v62, %v868_v57  ;;  %v950_v63 = vadd.f32 %v934_v10, %v908_v35  ;;  %v1051_v6 = vrot.slane %v1006_v33, 7  ;;  %v1114_v9 = vmul.f32 %v2955_v34, %v646_v25 }
 0x1bd   : > { %v1345_v19 = vsel %vm1313_vm3, %v1340_v59, %v1344_v13  ;;  %v1446_v31 = vsel %vm1414_vm6, %v1441_v42, %v1445_v60  ;;  %v3290_v3 = vadd.f32 %v1477_v12, %v1376_v46  ;;  %v3293_v0 = vadd.f32 %v1112_v24, %v3182_v4 }
 0x1be   : > { %v1378_v49 = vadd.f32 %v1345_v19, %v1293_v50  ;;  %v1479_v2 = vsel %vm3246_vm7, %v1446_v31, 0.0  ;;  %v4011_v36 = vrot.slane %v3190_v30, 7  ;;  %v1132_v7 = vadd.f32 %v1114_v9, %v3224_v58 }
 0x1bf   : > { %4010 = vst [vmem:[#allocation65_spill] sm:$0xff] %v3290_v3  ;;  %v912_v8 = vld [vmem:[#allocation2 + $0x98] sm:$0xff]  ;;  %v1162_v59 = vmul.f32 %v2911_v5, %v3165_v29  ;;  %v1164_v42 = vmul.f32 %v2911_v5, %v3199_v41  ;;  %v1192_v50 = vmul.f32 %v2938_v22, %v3199_v41  ;;  %v3317_v24 = vmul.f32 %v2885_v53, %v3113_v27 }
 0x1c0   : > { %v1052_v57 = vsel %vm616_vm1, %v4011_v36, %v1051_v6  ;;  %v1170_v4 = vld [vmem:[#allocation2 + $0x98] sm:$0x3]  ;;  %v3307_v61 = vadd.f32 %v1479_v2, %v1378_v49  ;;  %v936_v30 = vmul.f32 %v2953_v32, %v912_v8  ;;  %v956_v43 = vld [vmem:[#allocation2 + $0x88] sm:$0x1]  ;;  %v1116_v62 = vmul.f32 %v2955_v34, %v912_v8 }
 0x1c1   : > { %v1086_v35 = vadd.f32 %v1052_v57, %v980_v45  ;;  %v1140_v58 = vld [vmem:[#allocation2 + $0x88] sm:$0x3]  ;;  %v1194_v45 = vmul.f32 %v2938_v22, %v646_v25  ;;  %v982_v10 = vmul.f32 %v2885_v53, %v956_v43  ;;  %v1196_v15 = vmul.f32 %v2938_v22, %v1170_v4  ;;  %v4063_v3 = vld [vmem:[#allocation58_spill] sm:$0xff] }
 0x1c2   : > { %4012 = vst [vmem:[#allocation66_spill] sm:$0xff] %v3307_v61  ;;  %v1166_v11 = vmul.f32 %v2911_v5, %v1140_v58  ;;  %v1210_v33 = vadd.f32 %v1192_v50, %v1162_v59  ;;  %v952_v13 = vadd.f32 %v936_v30, %v910_v47  ;;  %v1240_v19 = vmul.f32 %v2959_v38, %v646_v25  ;;  %v4020_v30 = vld [vmem:[#allocation42_spill] sm:$0xff]  ;;  %v4021_v58 = vld [vmem:[#allocation49_spill] sm:$0xff] }
 0x1c3   : > { %v1134_v46 = vadd.f32 %v1116_v62, %v1086_v35  ;;  %v1212_v60 = vadd.f32 %v1194_v45, %v1164_v42  ;;  %v1088_v12 = vadd.f32 %v1051_v6, %v982_v10  ;;  %v1242_v31 = vmul.f32 %v2959_v38, %v912_v8  ;;  %v1090_v10 = vld [vmem:[#allocation2 + $0x28] sm:$0xfe] }
 0x1c4   : > { %v1214_v9 = vadd.f32 %v1196_v15, %v1166_v11  ;;  %v3323_v49 = vadd.f32 %v3131_v17, %v3126_v48  ;;  %v1292_v2 = vsel %vm3170_vm2, %v950_v63, 0.0  ;;  %v3927_v36 = vrot.slane %v3293_v0, 1 }
 0x1c5   : > { %v1338_v53 = vrot.slane %v1132_v7, 1  ;;  %v1136_v47 = vadd.f32 %v2975_v54, %v1088_v12  ;;  %v3329_v57 = vadd.f32 %v1240_v19, %v1210_v33  ;;  %v1260_v6 = vadd.f32 %v1242_v31, %v1212_v60  ;;  %v1168_v60 = vld [vmem:[#allocation2 + $0x18] sm:$0xfc]  ;;  %v4022_v31 = vld [vmem:[#allocation51_spill] sm:$0xff] }
 0x1c6   : > { %v1262_v35 = vadd.f32 %v2978_v55, %v1214_v9  ;;  %v1294_v25 = vsel %vm3208_vm4, %v952_v13, 0.0  ;;  %v1342_v17 = vrot.slane %v1134_v46, 1  ;;  %v4013_v51 = vand.u32 7, %v2868_v39  ;;  %v4019_v55 = vld [vmem:[#allocation31_spill] sm:$0xff]  ;;  %v1167_v46 = vld [vmem:[#allocation2 + $0x10] sm:$0xfc] }
 0x1c7   : > { %v3337_v48 = vsel %vm1313_vm3, %v3927_v36, %v1338_v53  ;;  %v4016_v54 = vand.u32 7, %v2929_v18  ;;  %v882_v52 = vmul.f32 %v2926_v16, %v4019_v55  ;;  %v1346_v8 = vrot.slane %v1136_v47, 1 }
 0x1c8   : > { %vm3341_vm8 = vcmp.ne.s32.totalorder %v4013_v51, 0  ;;  %v3926_v59 = vrot.slane %v3329_v57, 2  ;;  %v1443_v42 = vrot.slane %v1260_v6, 2  ;;  %v1447_v4 = vrot.slane %v1262_v35, 2 }
 0x1c9   : > { %vm3347_vm9 = vcmp.ne.s32.totalorder %v4016_v54, 0  ;;  %v1343_v50 = vsel %vm1313_vm3, %v1338_v53, %v1342_v17  ;;  %v898_v43 = vadd.f32 %v882_v52, %v4020_v30  ;;  %v922_v62 = vmul.f32 %v2953_v32, %v4019_v55  ;;  %v4027_v54 = vld [vmem:[#allocation43_spill] sm:$0xff] }
 0x1ca   : > { %v924_v45 = vmul.f32 %v2953_v32, %v4021_v58  ;;  %v1347_v11 = vsel %vm1313_vm3, %v1342_v17, %v1346_v8  ;;  %v1377_v15 = vadd.f32 %v1343_v50, %v1292_v2  ;;  %v1444_v33 = vsel %vm1414_vm6, %v3926_v59, %v1443_v42  ;;  %v1215_v52 = vld [vmem:[#allocation2 + $0x20] sm:$0xfc]  ;;  %v1216_v8 = vld [vmem:[#allocation2 + $0x28] sm:$0xfc]  ;;  %v4031_v50 = vld [vmem:[#allocation33_spill] sm:$0xff] }
 0x1cb   : > { %v1448_v13 = vsel %vm1414_vm6, %v1443_v42, %v1447_v4  ;;  %v1379_v12 = vadd.f32 %v1347_v11, %v1294_v25  ;;  %v1478_v9 = vsel %vm3229_vm5, %v1444_v33, 0.0  ;;  %v938_v53 = vadd.f32 %v922_v62, %v4022_v31  ;;  %v4032_v62 = vld [vmem:[#allocation53_spill] sm:$0xff]  ;;  %v4038_v31 = vld [vmem:[#allocation35_spill] sm:$0xff] }
 0x1cc   : > { %v1480_v19 = vsel %vm3246_vm7, %v1448_v13, 0.0  ;;  %v3370_v47 = vadd.f32 %v1478_v9, %v1377_v15  ;;  %v1102_v2 = vmul.f32 %v2955_v34, %v1090_v10  ;;  %v1104_v6 = vmul.f32 %v2955_v34, %v4021_v58  ;;  %v4033_v15 = vld [vmem:[#allocation52_spill] sm:$0xff]  ;;  %v4034_v13 = vld [vmem:[#allocation25_spill] sm:$0xff] }
 0x1cd   : > { %v1106_v35 = vmul.f32 %v2955_v34, %v3113_v27  ;;  %v3377_v17 = vadd.f32 %v1480_v19, %v1379_v12  ;;  %v4024_v23 = vmov %v4013_v51  ;;  %v1179_v56 = vmul.f32 %v2936_v21, %v1167_v46  ;;  %v4037_v9 = vld [vmem:[#allocation41_spill] sm:$0xff] }
 0x1ce   : > { %4023 = vst [vmem:[#allocation31_spill] sm:$0xff] %v3370_v47  ;;  %vm3381_vm10 = vcmp.ne.s32.totalorder %v4024_v23, 7  ;;  %v1180_v51 = vmul.f32 %v2938_v22, %v1168_v60  ;;  %v1183_v55 = vmul.f32 %v2936_v21, %v4027_v54  ;;  %v4028_v42 = vand.u32 7, %v2929_v18  ;;  %v4035_v60 = vld [vmem:[#allocation30_spill] sm:$0xff]  ;;  %v4036_v18 = vld [vmem:[#allocation44_spill] sm:$0xff] }
 0x1cf   : > { %v940_v39 = vadd.f32 %v924_v45, %v898_v43  ;;  %v1120_v30 = vadd.f32 %v1102_v2, %v4031_v50  ;;  %v1122_v10 = vadd.f32 %v1104_v6, %v4032_v62  ;;  %v1184_v11 = vmul.f32 %v2938_v22, %v4021_v58  ;;  %v4039_v43 = vld [vmem:[#allocation40_spill] sm:$0xff] }
 0x1d0   : > { %vm3391_vm11 = vcmp.ne.s32.totalorder %v4028_v42, 7  ;;  %v3400_v33 = vadd.f32 %v1106_v35, %v4033_v15  ;;  %v1197_v46 = vadd.f32 %v1179_v56, %v4034_v13  ;;  %v1198_v12 = vadd.f32 %v1180_v51, %v4035_v60  ;;  %v4040_v56 = vld [vmem:[#allocation50_spill] sm:$0xff] }
 0x1d1   : > { %v1200_v19 = vadd.f32 %v4037_v9, %v4036_v18  ;;  %v1201_v23 = vadd.f32 %v1183_v55, %v4038_v31  ;;  %v1202_v45 = vadd.f32 %v1184_v11, %v4039_v43  ;;  %v1227_v2 = vmul.f32 %v2947_v28, %v1215_v52 }
 0x1d2   : > { %v1228_v6 = vmul.f32 %v2959_v38, %v1216_v8  ;;  %v1229_v42 = vmul.f32 %v2947_v28, %v4027_v54  ;;  %v1230_v35 = vmul.f32 %v2959_v38, %v4021_v58  ;;  %v1231_v51 = vmul.f32 %v2947_v28, %v4040_v56  ;;  %v4041_v8 = vld [vmem:[#allocation45_spill] sm:$0xff] }
 0x1d3   : > { %v1232_v50 = vmul.f32 %v2959_v38, %v3113_v27  ;;  %v1245_v62 = vadd.f32 %v1227_v2, %v1197_v46  ;;  %v1280_v11 = vsel %vm3341_vm8, %v938_v53, 0.0  ;;  %v1282_v52 = vsel %vm3347_vm9, %v940_v39, 0.0 }
 0x1d4   : > { %v1246_v55 = vadd.f32 %v1228_v6, %v1198_v12  ;;  %v1247_v15 = vadd.f32 %v1229_v42, %v4041_v8  ;;  %v1248_v13 = vadd.f32 %v1230_v35, %v1200_v19  ;;  %v3423_v60 = vadd.f32 %v1231_v51, %v1201_v23  ;;  %v4042_v23 = vld [vmem:[#allocation39_spill] sm:$0xff] }
 0x1d5   : > { %v3425_v18 = vadd.f32 %v1232_v50, %v1202_v45  ;;  %v1317_v9 = vrot.slane %v1120_v30, 1  ;;  %v1318_v31 = vrot.slane %v1122_v10, 1  ;;  %v3930_v43 = vrot.slane %v3400_v33, 1  ;;  %v4043_v45 = vld [vmem:[#allocation36_spill] sm:$0xff]  ;;  %v1089_v50 = vld [vmem:[#allocation2 + $0x20] sm:$0xfe] }
 0x1d6   : > { %v1415_v37 = vrot.slane %v1245_v62, 2  ;;  %v1416_v46 = vrot.slane %v1247_v15, 2  ;;  %v1418_v12 = vrot.slane %v1246_v55, 2  ;;  %v1419_v2 = vrot.slane %v1248_v13, 2  ;;  %v4044_v62 = vld [vmem:[#allocation55_spill] sm:$0xff]  ;;  %v4045_v55 = vld [vmem:[#allocation56_spill] sm:$0xff] }
 0x1d7   : > { %v3928_v53 = vrot.slane %v3423_v60, 2  ;;  %v1319_v6 = vsel %vm1313_vm3, %v1317_v9, %v1318_v31  ;;  %v1323_v39 = vsel %vm1313_vm3, %v1318_v31, %v3930_v43  ;;  %v3929_v19 = vrot.slane %v3425_v18, 2 }
 0x1d8   : > { %v897_v30 = vadd.f32 %v4043_v45, %v4042_v23  ;;  %v1365_v10 = vadd.f32 %v1319_v6, %v1280_v11  ;;  %v1367_v42 = vadd.f32 %v1323_v39, %v1282_v52  ;;  %v1417_v35 = vsel %vm1414_vm6, %v1415_v37, %v1416_v46  ;;  %v4046_v37 = vld [vmem:[#allocation60_spill] sm:$0xff]  ;;  %v4047_v39 = vld [vmem:[#allocation46_spill] sm:$0xff] }
 0x1d9   : > { %v1420_v51 = vsel %vm1414_vm6, %v1418_v12, %v1419_v2  ;;  %v3440_v8 = vadd.f32 %v4045_v55, %v4044_v62  ;;  %v1422_v15 = vsel %vm1414_vm6, %v1416_v46, %v3928_v53  ;;  %v1424_v13 = vsel %vm1414_vm6, %v1419_v2, %v3929_v19  ;;  %v4048_v46 = vld [vmem:[#allocation37_spill] sm:$0xff] }
 0x1da   : > { %v1466_v11 = vsel %vm3381_vm10, %v1420_v51, 0.0  ;;  %v1080_v52 = vadd.f32 %v4046_v37, %v3317_v24  ;;  %v1468_v9 = vsel %vm3391_vm11, %v1424_v13, 0.0  ;;  %v923_v12 = vmul.f32 %v2934_v20, %v4027_v54  ;;  %v4049_v24 = vld [vmem:[#allocation24_spill] sm:$0xff] }
 0x1db   : > { %v1482_v31 = vadd.f32 %v1466_v11, %v1365_v10  ;;  %v1484_v6 = vadd.f32 %v1468_v9, %v1367_v42  ;;  %v937_v23 = vadd.f32 %v4048_v46, %v4047_v39  ;;  %v1101_v45 = vmul.f32 %v2944_v26, %v1089_v50  ;;  %v4050_v11 = vld [vmem:[#allocation32_spill] sm:$0xff]  ;;  %v4052_v46 = vld [vmem:[#allocation47_spill] sm:$0xff] }
 0x1dc   : > { %v1103_v2 = vmul.f32 %v2944_v26, %v4027_v54  ;;  %v1465_v51 = vsel %vm3381_vm10, %v1417_v35, 0.0  ;;  %v939_v55 = vadd.f32 %v923_v12, %v897_v30  ;;  %v1105_v10 = vmul.f32 %v2944_v26, %v4040_v56  ;;  %v4051_v50 = vld [vmem:[#allocation48_spill] sm:$0xff]  ;;  %v4053_v30 = vld [vmem:[#allocation22_spill] sm:$0xff] }
 0x1dd   : > { %v1517_v62 = vadd.f32 %v4049_v24, %v1482_v31  ;;  %v1467_v42 = vsel %vm3391_vm11, %v1422_v15, 0.0  ;;  %v1519_v13 = vadd.f32 %v4049_v24, %v1484_v6  ;;  %v1119_v37 = vadd.f32 %v1101_v45, %v4050_v11  ;;  %v4054_v11 = vld [vmem:[#allocation26_spill] sm:$0xff] }
 0x1de   : > { %v1121_v9 = vadd.f32 %v1103_v2, %v4051_v50  ;;  %v3472_v59 = vadd.f32 %v1105_v10, %v4052_v46  ;;  %v1279_v25 = vsel %vm3341_vm8, %v937_v23, 0.0  ;;  %v860_v35 = vmul.f32 %v4053_v30, %v4021_v58 }
 0x1df   : > { %v1549_v39 = vmul.f32 0.044715, %v1517_v62  ;;  %v3478_v31 = vmul.f32 0.5, %v1517_v62  ;;  %v1551_v4 = vmul.f32 0.044715, %v1519_v13  ;;  %v1314_v15 = vrot.slane %v1119_v37, 1 }
 0x1e0   : > { %v1315_v12 = vrot.slane %v1121_v9, 1  ;;  %v1281_v45 = vsel %vm3347_vm9, %v939_v55, 0.0  ;;  %v3932_v2 = vrot.slane %v3472_v59, 1  ;;  %v4055_v10 = vand.u32 7, %v4054_v11 }
 0x1e1   : > { %v1565_v6 = vmul.f32 %v1549_v39, %v1517_v62  ;;  %v884_v63 = vmul.f32 %v2926_v16, %v4021_v58  ;;  %v1567_v23 = vmul.f32 %v1551_v4, %v1519_v13  ;;  %v886_v37 = vmul.f32 %v2926_v16, %v3113_v27  ;;  %v4062_v4 = vld [vmem:[#allocation38_spill] sm:$0xff] }
 0x1e2   : > { %vm3485_vm12 = vcmp.ne.s32.totalorder %v4055_v10, 0  ;;  %v1316_v46 = vsel %vm1313_vm3, %v1314_v15, %v1315_v12  ;;  %v926_v7 = vmul.f32 %v2953_v32, %v3113_v27  ;;  %v1321_v9 = vsel %vm1313_vm3, %v1315_v12, %v3932_v2  ;;  %v4058_v10 = vld [vmem:[#allocation27_spill] sm:$0xff] }
 0x1e3   : > { %v1581_v55 = vmul.f32 %v1565_v6, %v1517_v62  ;;  %v1364_v39 = vadd.f32 %v1316_v46, %v1279_v25  ;;  %v4059_v36 = vand.u32 7, %v4058_v10  ;;  %v900_v15 = vadd.f32 %v884_v63, %v4062_v4  ;;  %v4064_v4 = vld [vmem:[#allocation23_spill] sm:$0xff] }
 0x1e4   : > { %v3506_v19 = vmul.f32 0.5, %v1519_v13  ;;  %v1583_v43 = vmul.f32 %v1567_v23, %v1519_v13  ;;  %v1366_v44 = vadd.f32 %v1321_v9, %v1281_v45  ;;  %v1108_v6 = vmul.f32 %v2955_v34, %v4063_v3 }
 0x1e5   : > { %vm3501_vm13 = vcmp.ne.s32.totalorder %v4059_v36, 0  ;;  %v1597_v40 = vadd.f32 %v1581_v55, %v1517_v62  ;;  %v1481_v47 = vadd.f32 %v1465_v51, %v1364_v39  ;;  %v928_v25 = vmul.f32 %v2953_v32, %v4063_v3 }
 0x1e6   : > { %v1110_v36 = vmul.f32 %v2955_v34, %v3165_v29  ;;  %v1599_v12 = vadd.f32 %v1583_v43, %v1519_v13  ;;  %v1483_v46 = vadd.f32 %v1467_v42, %v1366_v44  ;;  %v902_v2 = vadd.f32 %v886_v37, %v860_v35 }
 0x1e7   : > { %v942_v14 = vadd.f32 %v926_v7, %v900_v15  ;;  %v1613_v63 = vmul.f32 0.7978846, %v1597_v40  ;;  %v1516_v61 = vadd.f32 %v4064_v4, %v1481_v47  ;;  %v4065_v45 = vand.u32 7, %v4054_v11 }
 0x1e8   : > { %v1126_v51 = vadd.f32 %v1108_v6, %v3323_v49  ;;  %v3522_v62 = vadd.f32 %v1110_v36, %v1080_v52  ;;  %v1615_v55 = vmul.f32 0.7978846, %v1599_v12  ;;  %v1518_v34 = vadd.f32 %v4064_v4, %v1483_v46 }
 0x1e9   : > { %vm3517_vm14 = vcmp.ne.s32.totalorder %v4065_v45, 7  ;;  %v4068_v44 = vand.u32 7, %v4058_v10  ;;  %v1156_v40 = vmul.f32 %v2911_v5, %v4021_v58  ;;  %v1186_v47 = vmul.f32 %v2938_v22, %v3113_v27 }
 0x1ea   : > { %2338 = vtanh.f32 %v1613_v63  ;;  %v1548_v42 = vmul.f32 0.044715, %v1516_v61  ;;  %v1158_v49 = vmul.f32 %v2911_v5, %v3113_v27  ;;  %v1188_v52 = vmul.f32 %v2938_v22, %v4063_v3 }
 0x1eb   : > { %vm3527_vm15 = vcmp.ne.s32.totalorder %v4068_v44, 7  ;;  %2340 = vtanh.f32 %v1615_v55  ;;  %v1550_v13 = vmul.f32 0.044715, %v1518_v34  ;;  %v944_v35 = vadd.f32 %v928_v25, %v902_v2  ;;  %v4072_v44 = vld [vmem:[#allocation21_spill] sm:$0xff] }
 0x1ec   : > { %v1204_v11 = vadd.f32 %v1186_v47, %v1156_v40  ;;  %v1564_v37 = vmul.f32 %v1548_v42, %v1516_v61  ;;  %v1206_v7 = vadd.f32 %v1188_v52, %v1158_v49  ;;  %v1234_v58 = vmul.f32 %v2959_v38, %v4063_v3 }
 0x1ed   : > { %v1236_v9 = vmul.f32 %v2959_v38, %v3165_v29  ;;  %v3543_v39 = vmul.f32 0.5, %v1516_v61  ;;  %v1566_v10 = vmul.f32 %v1550_v13, %v1518_v34  ;;  %v1284_v15 = vsel %vm3485_vm12, %v942_v14, 0.0 }
 0x1ee   : > { %v1326_v6 = vrot.slane %v1126_v51, 1  ;;  %v1580_v36 = vmul.f32 %v1564_v37, %v1516_v61  ;;  %v1252_v12 = vadd.f32 %v1234_v58, %v1204_v11  ;;  %v1330_v2 = vrot.slane %v3522_v62, 1  ;;  %v4075_v58 = vld [vmem:[#allocation34_spill] sm:$0xff] }
 0x1ef   : > { %v3547_v46 = vadd.f32 %v1236_v9, %v1206_v7  ;;  %v1582_v25 = vmul.f32 %v1566_v10, %v1518_v34  ;;  %v1286_v63 = vsel %vm3501_vm13, %v944_v35, 0.0  ;;  %v4071_v45 = vrot.slane %v3400_v33, 1  ;;  %v4073_v35 = vld [vmem:[#allocation20_spill] sm:$0xff] }
 0x1f0   : > { %v883_v40 = vmul.f32 %v4072_v44, %v4027_v54  ;;  %v1596_v47 = vadd.f32 %v1580_v36, %v1516_v61  ;;  %v1331_v14 = vsel %vm1313_vm3, %v1326_v6, %v1330_v2  ;;  %v1427_v42 = vrot.slane %v1252_v12, 2 }
 0x1f1   : > { %v1327_v55 = vsel %vm1313_vm3, %v4071_v45, %v1326_v6  ;;  %v1598_v49 = vadd.f32 %v1582_v25, %v1518_v34  ;;  %v1371_v52 = vadd.f32 %v1331_v14, %v1286_v63  ;;  %v1431_v13 = vrot.slane %v3547_v46, 2  ;;  %v4076_v63 = vld [vmem:[#allocation54_spill] sm:$0xff] }
 0x1f2   : > { %v1369_v51 = vadd.f32 %v1327_v55, %v1284_v15  ;;  %v859_v11 = vmul.f32 %v4073_v35, %v4027_v54  ;;  %v1612_v33 = vmul.f32 0.7978846, %v1596_v47  ;;  %v4074_v37 = vrot.slane %v3425_v18, 2 }
 0x1f3   : > { %v885_v61 = vmul.f32 %v4072_v44, %v4040_v56  ;;  %v899_v9 = vadd.f32 %v883_v40, %v4075_v58  ;;  %v1614_v10 = vmul.f32 0.7978846, %v1598_v49  ;;  %v1432_v15 = vsel %vm1414_vm6, %v1427_v42, %v1431_v13 }
 0x1f4   : > { %v1428_v7 = vsel %vm1414_vm6, %v4074_v37, %v1427_v42  ;;  %v925_v36 = vmul.f32 %v2934_v20, %v4040_v56  ;;  %v2339_v12 = vpop.eup %2338  ;;  %2342 = vtanh.f32 %v1612_v33  ;;  %v1472_v18 = vsel %vm3527_vm15, %v1432_v15, 0.0  ;;  %v4077_v15 = vld [vmem:[#allocation59_spill] sm:$0xff] }
 0x1f5   : > { %v1470_v6 = vsel %vm3517_vm14, %v1428_v7, 0.0  ;;  %v927_v45 = vmul.f32 %v2934_v20, %v4076_v63  ;;  %v2341_v55 = vpop.eup %2340  ;;  %v1645_v40 = vadd.f32 1.0, %v2339_v12  ;;  %v1534_v47 = vmul.f32 0.5, %v1518_v34  ;;  %v4078_v12 = vld [vmem:[#allocation57_spill] sm:$0xff] }
 0x1f6   : > { %v1486_v25 = vadd.f32 %v1470_v6, %v1369_v51  ;;  %2344 = vtanh.f32 %v1614_v10  ;;  %v1488_v14 = vadd.f32 %v1472_v18, %v1371_v52  ;;  %v1647_v42 = vadd.f32 1.0, %v2341_v55 }
 0x1f7   : > { %v901_v37 = vadd.f32 %v885_v61, %v859_v11  ;;  %v1107_v33 = vmul.f32 %v2944_v26, %v4076_v63  ;;  %v1661_v7 = vmul.f32 %v1645_v40, %v3478_v31  ;;  %v941_v58 = vadd.f32 %v925_v36, %v899_v9 }
 0x1f8   : > { %v3581_v49 = vadd.f32 %v4049_v24, %v1486_v25  ;;  %v3587_v51 = vadd.f32 %v4049_v24, %v1488_v14  ;;  %v1109_v6 = vmul.f32 %v2944_v26, %v4077_v15  ;;  %v1663_v34 = vmul.f32 %v1647_v42, %v3506_v19 }
 0x1f9   : > { %v943_v10 = vadd.f32 %v927_v45, %v901_v37  ;;  %v1155_v11 = vmul.f32 %v2904_v1, %v4027_v54  ;;  %v1125_v18 = vadd.f32 %v1107_v33, %v4078_v12  ;;  %v1157_v9 = vmul.f32 %v2904_v1, %v4040_v56  ;;  %v4079_v12 = vld [vmem:[#allocation28_spill] sm:$0xff] }
 0x1fa   : > { %v1553_v52 = vmul.f32 0.044715, %v3581_v49  ;;  %v1555_v61 = vmul.f32 0.044715, %v3587_v51  ;;  %v3598_v31 = vadd.f32 %v1109_v6, %v3440_v8  ;;  %v1677_v36 = vpack.c.bf16 %v1663_v34, %v1661_v7 }
 0x1fb   : > { %v1185_v19 = vmul.f32 %v2936_v21, %v4040_v56  ;;  %v1187_v25 = vmul.f32 %v2936_v21, %v4076_v63  ;;  %v1233_v45 = vmul.f32 %v2947_v28, %v4076_v63  ;;  %v1235_v8 = vmul.f32 %v2947_v28, %v4077_v15 }
 0x1fc   : > { %v1569_v26 = vmul.f32 %v1553_v52, %v3581_v49  ;;  %v1571_v54 = vmul.f32 %v1555_v61, %v3587_v51  ;;  %v1283_v55 = vsel %vm3485_vm12, %v941_v58, 0.0  ;;  %1850 = vmatprep.mubr.bf16.mxu1 %v1677_v36  ;;  %v1285_v37 = vsel %vm3501_vm13, %v943_v10, 0.0 }
 0x1fd   : > { %v1203_v14 = vadd.f32 %v1185_v19, %v1155_v11  ;;  %v1205_v42 = vadd.f32 %v1187_v25, %v1157_v9  ;;  %v1324_v7 = vrot.slane %v1125_v18, 1  ;;  %v1328_v6 = vrot.slane %v3598_v31, 1  ;;  %v4084_v25 = vld [vmem:[#allocation29_spill] sm:$0xff] }
 0x1fe   : > { %v1585_v40 = vmul.f32 %v1569_v26, %v3581_v49  ;;  %v1587_v33 = vmul.f32 %v1571_v54, %v3587_v51  ;;  %v862_v34 = vmul.f32 %v4053_v30, %v3113_v27  ;;  %v2343_v52 = vpop.eup %2342  ;;  %v4080_v11 = vand.u32 7, %v4079_v12 }
 0x1ff   : > { %v1251_v58 = vadd.f32 %v1233_v45, %v1203_v14  ;;  %v3622_v61 = vadd.f32 %v1235_v8, %v1205_v42  ;;  %v864_v53 = vmul.f32 %v4053_v30, %v4063_v3  ;;  %v1644_v18 = vadd.f32 1.0, %v2343_v52 }
 0x200   : > { %v1601_v50 = vadd.f32 %v1585_v40, %v3581_v49  ;;  %vm3626_vm0 = vcmp.ne.s32.totalorder %v4080_v11, 0  ;;  %v2345_v10 = vpop.eup %2344  ;;  %v1603_v36 = vadd.f32 %v1587_v33, %v3587_v51  ;;  %v4083_v27 = vrot.slane %v3472_v59, 1 }
 0x201   : > { %v1329_v19 = vsel %vm1313_vm3, %v1324_v7, %v1328_v6  ;;  %v4085_v54 = vand.u32 7, %v4084_v25  ;;  %v1646_v8 = vadd.f32 1.0, %v2345_v10  ;;  %v1660_v42 = vmul.f32 %v1644_v18, %v3543_v39 }
 0x202   : > { %v1325_v26 = vsel %vm1313_vm3, %v4083_v27, %v1324_v7  ;;  %v1617_v30 = vmul.f32 0.7978846, %v1601_v50  ;;  %v1370_v14 = vadd.f32 %v1329_v19, %v1285_v37  ;;  %v1619_v33 = vmul.f32 0.7978846, %v1603_v36 }
 0x203   : > { %vm3641_vm1 = vcmp.ne.s32.totalorder %v4085_v54, 0  ;;  %v1368_v40 = vadd.f32 %v1325_v26, %v1283_v55  ;;  %v1425_v59 = vrot.slane %v1251_v58, 2  ;;  %v1429_v52 = vrot.slane %v3622_v61, 2 }
 0x204   : > { %v1662_v11 = vmul.f32 %v1646_v8, %v1534_v47  ;;  %2346 = vtanh.f32 %v1617_v30  ;;  %v888_v7 = vmul.f32 %v2926_v16, %v4063_v3  ;;  %v890_v27 = vmul.f32 %v2926_v16, %v3165_v29 }
 0x205   : > { %2348 = vtanh.f32 %v1619_v33  ;;  %v4088_v10 = vrot.slane %v3423_v60, 2  ;;  %v1430_v39 = vsel %vm1414_vm6, %v1425_v59, %v1429_v52  ;;  %v930_v37 = vmul.f32 %v2953_v32, %v3165_v29 }
 0x206   : > { %v1676_v47 = vpack.c.bf16 %v1662_v11, %v1660_v42  ;;  %v1471_v58 = vsel %vm3527_vm15, %v1430_v39, 0.0  ;;  %v4089_v16 = vand.u32 7, %v4079_v12  ;;  %v904_v18 = vadd.f32 %v888_v7, %v862_v34 }
 0x207   : > { %v1426_v55 = vsel %vm1414_vm6, %v4088_v10, %v1425_v59  ;;  %v1487_v26 = vadd.f32 %v1471_v58, %v1370_v14  ;;  %v906_v19 = vadd.f32 %v890_v27, %v864_v53  ;;  %v932_v54 = vmul.f32 %v2953_v32, %v3199_v41 }
 0x208   : > { %v1469_v50 = vsel %vm3517_vm14, %v1426_v55, 0.0  ;;  %vm3665_vm2 = vcmp.ne.s32.totalorder %v4089_v16, 7  ;;  %1851 = vmatmul.mubr.bf16.vlgmr.msra.gmra.mrb[0].mxu1 %v1676_v47  ;;  %v946_v8 = vadd.f32 %v930_v37, %v904_v18  ;;  %v1160_v23 = vmul.f32 %v2911_v5, %v4063_v3  ;;  %v4096_v55 = vld [vmem:[#allocation61_spill] sm:$0xff] }
 0x209   : > { %v1485_v36 = vadd.f32 %v1469_v50, %v1368_v40  ;;  %v1190_v43 = vmul.f32 %v2938_v22, %v3165_v29  ;;  %v1238_v12 = vmul.f32 %v2959_v38, %v3199_v41  ;;  %v3679_v34 = vadd.f32 %v4064_v4, %v1487_v26 }
 0x20a   : > { %v948_v53 = vadd.f32 %v932_v54, %v906_v19  ;;  %v4092_v40 = vrot.slane %v3293_v0, 1  ;;  %v1537_v5 = vmul.f32 0.5, %v3581_v49  ;;  %v1539_v3 = vmul.f32 0.5, %v3587_v51 }
 0x20b   : > { %v1520_v30 = vadd.f32 %v4064_v4, %v1485_v36  ;;  %v4093_v22 = vand.u32 7, %v4084_v25  ;;  %v1208_v29 = vadd.f32 %v1190_v43, %v1160_v23  ;;  %v1554_v14 = vmul.f32 0.044715, %v3679_v34 }
 0x20c   : > { %v1335_v32 = vsel %vm1313_vm3, %v1330_v2, %v4092_v40  ;;  %v1288_v0 = vsel %vm3626_vm0, %v946_v8, 0.0  ;;  %v861_v62 = vmul.f32 %v4073_v35, %v4040_v56  ;;  %v1290_v49 = vsel %vm3641_vm1, %v948_v53, 0.0 }
 0x20d   : > { %vm3690_vm4 = vcmp.ne.s32.totalorder %v4093_v22, 7  ;;  %v1552_v41 = vmul.f32 0.044715, %v1520_v30  ;;  %v1256_v2 = vadd.f32 %v1238_v12, %v1208_v29  ;;  %v863_v51 = vmul.f32 %v4073_v35, %v4076_v63 }
 0x20e   : > { %v887_v25 = vmul.f32 %v4072_v44, %v4076_v63  ;;  %v1570_v33 = vmul.f32 %v1554_v14, %v3679_v34  ;;  %v1373_v59 = vadd.f32 %v1335_v32, %v1288_v0  ;;  %v889_v11 = vmul.f32 %v4072_v44, %v4077_v15  ;;  %v2347_v7 = vpop.eup %2346  ;;  %v4098_v14 = vld [vmem:[#allocation66_spill] sm:$0xff] }
 0x20f   : > { %v1568_v42 = vmul.f32 %v1552_v41, %v1520_v30  ;;  %v1375_v56 = vadd.f32 %v3337_v48, %v1290_v49  ;;  %v1435_v27 = vrot.slane %v1256_v2, 2  ;;  %v931_v39 = vmul.f32 %v2934_v20, %v4096_v55  ;;  %v2349_v37 = vpop.eup %2348  ;;  %v4099_v0 = vld [vmem:[#allocation62_spill] sm:$0xff] }
 0x210   : > { %v903_v10 = vadd.f32 %v887_v25, %v861_v62  ;;  %v1649_v35 = vadd.f32 1.0, %v2347_v7  ;;  %v1586_v50 = vmul.f32 %v1570_v33, %v3679_v34  ;;  %v929_v58 = vmul.f32 %v2934_v20, %v4077_v15  ;;  %v4101_v25 = vld [vmem:[#allocation31_spill] sm:$0xff] }
 0x211   : > { %v1584_v47 = vmul.f32 %v1568_v42, %v1520_v30  ;;  %v1651_v16 = vadd.f32 1.0, %v2349_v37  ;;  %v1436_v44 = vsel %vm1414_vm6, %v1431_v13, %v1435_v27  ;;  %v4097_v48 = vrot.slane %v3329_v57, 2 }
 0x212   : > { %v905_v36 = vadd.f32 %v889_v11, %v863_v51  ;;  %v1665_v26 = vmul.f32 %v1649_v35, %v1537_v5  ;;  %v1602_v54 = vadd.f32 %v1586_v50, %v3679_v34  ;;  %v1474_v8 = vsel %vm3665_vm2, %v1436_v44, 0.0  ;;  %v4104_v35 = vld [vmem:[#allocation63_spill] sm:$0xff] }
 0x213   : > { %v1440_v18 = vsel %vm1414_vm6, %v1435_v27, %v4097_v48  ;;  %v1600_v19 = vadd.f32 %v1584_v47, %v1520_v30  ;;  %v1667_v23 = vmul.f32 %v1651_v16, %v1539_v3  ;;  %v1490_v43 = vadd.f32 %v1474_v8, %v1373_v59  ;;  %v4102_v59 = vld [vmem:[#allocation64_spill] sm:$0xff] }
 0x214   : > { %v1476_v20 = vsel %vm3690_vm4, %v1440_v18, 0.0  ;;  %v947_v46 = vadd.f32 %v931_v39, %v905_v36  ;;  %v1618_v13 = vmul.f32 0.7978846, %v1602_v54  ;;  %v1159_v57 = vmul.f32 %v2904_v1, %v4076_v63 }
 0x215   : > { %v1616_v12 = vmul.f32 0.7978846, %v1600_v19  ;;  %v1492_v53 = vadd.f32 %v1476_v20, %v1375_v56  ;;  %v1679_v40 = vpack.c.bf16 %v1667_v23, %v1665_v26  ;;  %v3728_v32 = vadd.f32 %v4049_v24, %v1490_v43 }
 0x216   : > { %v1189_v5 = vmul.f32 %v2936_v21, %v4077_v15  ;;  %v1237_v3 = vmul.f32 %v2947_v28, %v4096_v55  ;;  %v3736_v22 = vadd.f32 %v4049_v24, %v3377_v17  ;;  %v945_v41 = vadd.f32 %v929_v58, %v903_v10  ;;  %v4103_v55 = vld [vmem:[#allocation65_spill] sm:$0xff] }
 0x217   : > { %2350 = vtanh.f32 %v1616_v12  ;;  %v3739_v29 = vadd.f32 %v4049_v24, %v1492_v53  ;;  %1858 = vmatprep.mubr.bf16.mxu1 %v1679_v40  ;;  %v1557_v1 = vmul.f32 0.044715, %v3728_v32  ;;  %v3744_v21 = vadd.f32 %v4064_v4, %v4098_v14 }
 0x218   : > { %2352 = vtanh.f32 %v1618_v13  ;;  %v1207_v63 = vadd.f32 %v1189_v5, %v1159_v57  ;;  %v1536_v15 = vmul.f32 0.5, %v1520_v30  ;;  %v4100_v17 = vrot.slane %v4099_v0, 1 }
 0x219   : > { %v1559_v28 = vmul.f32 0.044715, %v3739_v29  ;;  %v1573_v2 = vmul.f32 %v1557_v1, %v3728_v32  ;;  %v1289_v51 = vsel %vm3641_vm1, %v947_v46, 0.0  ;;  %v3757_v42 = vadd.f32 %v4049_v24, %v4101_v25 }
 0x21a   : > { %v1333_v62 = vsel %vm1313_vm3, %v1328_v6, %v4100_v17  ;;  %v1255_v49 = vadd.f32 %v1237_v3, %v1207_v63  ;;  %v1287_v33 = vsel %vm3626_vm0, %v945_v41, 0.0  ;;  %v1374_v11 = vadd.f32 %v4102_v59, %v1289_v51 }
 0x21b   : > { %v1575_v30 = vmul.f32 %v1559_v28, %v3739_v29  ;;  %v1563_v31 = vmul.f32 0.044715, %v3736_v22  ;;  %v1589_v6 = vmul.f32 %v1573_v2, %v3728_v32  ;;  %v1372_v7 = vadd.f32 %v1333_v62, %v1287_v33 }
 0x21c   : > { %v1433_v56 = vrot.slane %v1255_v49, 2  ;;  %v1561_v45 = vmul.f32 0.044715, %v3757_v42  ;;  %v1538_v27 = vmul.f32 0.5, %v3679_v34  ;;  %v3771_v9 = vadd.f32 %v4064_v4, %v4103_v55 }
 0x21d   : > { %v1591_v24 = vmul.f32 %v1575_v30, %v3739_v29  ;;  %v1579_v10 = vmul.f32 %v1563_v31, %v3736_v22  ;;  %v1605_v39 = vadd.f32 %v1589_v6, %v3728_v32  ;;  %v4105_v47 = vrot.slane %v4104_v35, 2 }
 0x21e   : > { %v1434_v37 = vsel %vm1414_vm6, %v1429_v52, %v1433_v56  ;;  %v1577_v34 = vmul.f32 %v1561_v45, %v3757_v42  ;;  %v1560_v8 = vmul.f32 0.044715, %v3771_v9  ;;  %v1562_v23 = vmul.f32 0.044715, %v3744_v21 }
 0x21f   : > { %v1438_v50 = vsel %vm1414_vm6, %v1433_v56, %v4105_v47  ;;  %v1607_v58 = vadd.f32 %v1591_v24, %v3739_v29  ;;  %v1473_v16 = vsel %vm3665_vm2, %v1434_v37, 0.0  ;;  %v1595_v48 = vmul.f32 %v1579_v10, %v3736_v22 }
 0x220   : > { %v1475_v44 = vsel %vm3690_vm4, %v1438_v50, 0.0  ;;  %v1621_v18 = vmul.f32 0.7978846, %v1605_v39  ;;  %v1489_v61 = vadd.f32 %v1473_v16, %v1372_v7  ;;  %v1593_v52 = vmul.f32 %v1577_v34, %v3757_v42 }
 0x221   : > { %v1491_v36 = vadd.f32 %v1475_v44, %v1374_v11  ;;  %v2351_v26 = vpop.eup %2350  ;;  %v1623_v19 = vmul.f32 0.7978846, %v1607_v58  ;;  %v1611_v54 = vadd.f32 %v1595_v48, %v3736_v22  ;;  %v1576_v1 = vmul.f32 %v1560_v8, %v3771_v9 }
 0x222   : > { %v2353_v60 = vpop.eup %2352  ;;  %v1648_v20 = vadd.f32 1.0, %v2351_v26  ;;  %2354 = vtanh.f32 %v1621_v18  ;;  %v1524_v38 = vadd.f32 %v4064_v4, %v1489_v61  ;;  %v1609_v12 = vadd.f32 %v1593_v52, %v3757_v42 }
 0x223   : > { %v1526_v43 = vadd.f32 %v4064_v4, %v1491_v36  ;;  %v1650_v46 = vadd.f32 1.0, %v2353_v60  ;;  %2356 = vtanh.f32 %v1623_v19  ;;  %v1627_v13 = vmul.f32 0.7978846, %v1611_v54 }
 0x224   : > { %v1664_v53 = vmul.f32 %v1648_v20, %v1536_v15  ;;  %v1556_v57 = vmul.f32 0.044715, %v1524_v38  ;;  %v1625_v3 = vmul.f32 0.7978846, %v1609_v12  ;;  %v1578_v63 = vmul.f32 %v1562_v23, %v3744_v21 }
 0x225   : > { %v1666_v40 = vmul.f32 %v1650_v46, %v1538_v27  ;;  %v1558_v5 = vmul.f32 0.044715, %v1526_v43  ;;  %2358 = vtanh.f32 %v1627_v13  ;;  %v1592_v0 = vmul.f32 %v1576_v1, %v3771_v9  ;;  %v4106_v13 = vld [vmem:[#allocation19_spill] sm:$0xff] }
 0x226   : > { %v1572_v41 = vmul.f32 %v1556_v57, %v1524_v38  ;;  %2360 = vtanh.f32 %v1625_v3  ;;  %v1594_v17 = vmul.f32 %v1578_v63, %v3744_v21  ;;  %v1541_v7 = vmul.f32 0.5, %v3728_v32 }
 0x227   : > { %v1678_v14 = vpack.c.bf16 %v1666_v40, %v1664_v53  ;;  %v1574_v28 = vmul.f32 %v1558_v5, %v1526_v43  ;;  %v1608_v2 = vadd.f32 %v1592_v0, %v3771_v9  ;;  %v1543_v56 = vmul.f32 0.5, %v3739_v29 }
 0x228   : > { %v1588_v4 = vmul.f32 %v1572_v41, %v1524_v38  ;;  %v1610_v49 = vadd.f32 %v1594_v17, %v3744_v21  ;;  %v1547_v24 = vmul.f32 0.5, %v3736_v22  ;;  %v1545_v47 = vmul.f32 0.5, %v3757_v42 }
 0x229   : > { %1859 = vmatmul.mubr.bf16.gmra.mrb[4].mxu1 %v1678_v14  ;;  %v1590_v15 = vmul.f32 %v1574_v28, %v1526_v43  ;;  %v1624_v33 = vmul.f32 0.7978846, %v1608_v2  ;;  %v1540_v18 = vmul.f32 0.5, %v1524_v38  ;;  %v1542_v22 = vmul.f32 0.5, %v1526_v43 }
 0x22a   : > { %v1604_v62 = vadd.f32 %v1588_v4, %v1524_v38  ;;  %v1626_v6 = vmul.f32 0.7978846, %v1610_v49  ;;  %v1544_v52 = vmul.f32 0.5, %v3771_v9  ;;  %v1546_v42 = vmul.f32 0.5, %v3744_v21  ;;  %v1716_v38 = vld [vmem:[%s3880_s6] sm:$0x1] }
 0x22b   : > { %v1606_v51 = vadd.f32 %v1590_v15, %v1526_v43  ;;  %v1717_v43 = vunpack.c.l.bf16 %v1716_v38 }
 0x22c   : > { %v2355_v25 = vpop.eup %2354  ;;  %v1620_v30 = vmul.f32 0.7978846, %v1604_v62 }
 0x22d   : > { %v2357_v59 = vpop.eup %2356  ;;  %v1653_v11 = vadd.f32 1.0, %v2355_v25  ;;  %v1622_v31 = vmul.f32 0.7978846, %v1606_v51  ;;  %v1721_v53 = vrot.slane %v1717_v43, %v4106_v13 }
 0x22e   : > { %v1655_v45 = vadd.f32 1.0, %v2357_v59  ;;  %2362 = vtanh.f32 %v1620_v30 }
 0x22f   : > { %v2359_v27 = vpop.eup %2358  ;;  %2364 = vtanh.f32 %v1622_v31  ;;  %v1669_v10 = vmul.f32 %v1653_v11, %v1541_v7 }
 0x230   : > { %v1671_v55 = vmul.f32 %v1655_v45, %v1543_v56  ;;  %v1659_v39 = vadd.f32 1.0, %v2359_v27  ;;  %2366 = vtanh.f32 %v1624_v33  ;;  %v2361_v37 = vpop.eup %2360 }
 0x231   : > { %2368 = vtanh.f32 %v1626_v6  ;;  %v1657_v50 = vadd.f32 1.0, %v2361_v37 }
 0x232   : > { %v1681_v35 = vpack.c.bf16 %v1671_v55, %v1669_v10  ;;  %v1675_v34 = vmul.f32 %v1659_v39, %v1547_v24 }
 0x233   : > { %v1673_v32 = vmul.f32 %v1657_v50, %v1545_v47 }
 0x234   : > { %1866 = vmatprep.mubr.bf16.mxu1 %v1681_v35 }
 0x235   : > { %v1683_v29 = vpack.c.bf16 %v1675_v34, %v1673_v32 }
 0x238   : > { %v2363_v58 = vpop.eup %2362 }
 0x239   : > { %v2365_v16 = vpop.eup %2364  ;;  %v1652_v44 = vadd.f32 1.0, %v2363_v58 }
 0x23a   : > { %v2367_v48 = vpop.eup %2366  ;;  %v1654_v61 = vadd.f32 1.0, %v2365_v16 }
 0x23b   : > { %v2369_v36 = vpop.eup %2368  ;;  %v1656_v26 = vadd.f32 1.0, %v2367_v48  ;;  %v1668_v19 = vmul.f32 %v1652_v44, %v1540_v18 }
 0x23c   : > { %v1670_v54 = vmul.f32 %v1654_v61, %v1542_v22  ;;  %v1658_v8 = vadd.f32 1.0, %v2369_v36 }
 0x23d   : > { %v1672_v60 = vmul.f32 %v1656_v26, %v1544_v52 }
 0x23e   : > { %v1680_v23 = vpack.c.bf16 %v1670_v54, %v1668_v19  ;;  %v1674_v20 = vmul.f32 %v1658_v8, %v1546_v42 }
 0x240   : > { %1867 = vmatmul.mubr.bf16.gmra.mrb[8].mxu1 %v1680_v23  ;;  %v1682_v46 = vpack.c.bf16 %v1674_v20, %v1672_v60 }
 0x241   : > { %1874 = vmatprep.mubr.bf16.mxu1 %v1683_v29 }
 0x248   : > { %1875 = vmatmul.mubr.bf16.gmra.mrb[12].mxu1 %v1682_v46 }
 0x2db   : > { %v2169_v9 = vpop.f32.mrb[0].mxu1 }
 0x2dc   : > { %v2170_v12 = vpop.f32.mrb[1].mxu1 }
 0x2dd   : > { %v2171_v57 = vadd.f32 %v2170_v12, %v2169_v9  ;;  %v2172_v21 = vpop.f32.mrb[2].mxu1 }
 0x2de   : > { %v2173_v40 = vpop.f32.mrb[3].mxu1 }
 0x2df   : > { %v2174_v5 = vadd.f32 %v2173_v40, %v2172_v21  ;;  %v1853_v3 = vadd.f32 %v2171_v57, %v1721_v53 }
 0x2e1   : > { %v1856_v41 = vadd.f32 %v2174_v5, %v1721_v53 }
 0x2e3   : > { %v2133_v1 = vpack.c.bf16 %v1856_v41, %v1853_v3 }
 0x2e5   : > { %2134 = vst [vmem:[%s3812_s15] sm:$0xff] %v2133_v1  }
 0x2fc   : > { %v2175_v63 = vpop.f32.mrb[4].mxu1 }
 0x2fd   : > { %v2176_v14 = vpop.f32.mrb[5].mxu1 }
 0x2fe   : > { %v2177_v28 = vadd.f32 %v2176_v14, %v2175_v63  ;;  %v2178_v4 = vpop.f32.mrb[6].mxu1 }
 0x2ff   : > { %v2179_v0 = vpop.f32.mrb[7].mxu1 }
 0x300   : > { %v2180_v17 = vadd.f32 %v2179_v0, %v2178_v4  ;;  %v1861_v15 = vadd.f32 %v2177_v28, %v1721_v53 }
 0x302   : > { %v1864_v62 = vadd.f32 %v2180_v17, %v1721_v53 }
 0x304   : > { %v2138_v2 = vpack.c.bf16 %v1864_v62, %v1861_v15 }
 0x306   : > { %2150 = vst [vmem:[%s3812_s15 + $0x8] sm:$0xff] %v2138_v2  }
 0x313   : > { %v2181_v49 = vpop.f32.mrb[8].mxu1 }
 0x314   : > { %v2182_v51 = vpop.f32.mrb[9].mxu1 }
 0x315   : > { %v2183_v25 = vadd.f32 %v2182_v51, %v2181_v49  ;;  %v2184_v30 = vpop.f32.mrb[10].mxu1 }
 0x316   : > { %v2185_v33 = vpop.f32.mrb[11].mxu1 }
 0x317   : > { %v2186_v59 = vadd.f32 %v2185_v33, %v2184_v30  ;;  %v1869_v11 = vadd.f32 %v2183_v25, %v1721_v53 }
 0x319   : > { %v1872_v31 = vadd.f32 %v2186_v59, %v1721_v53 }
 0x31b   : > { %v2143_v6 = vpack.c.bf16 %v1872_v31, %v1869_v11  ;;  %v2187_v7 = vpop.f32.mrb[12].mxu1 }
 0x31c   : > { %v2188_v56 = vpop.f32.mrb[13].mxu1 }
 0x31d   : > { %2151 = vst [vmem:[%s3812_s15 + $0x10] sm:$0xff] %v2143_v6   ;;  %v2189_v45 = vadd.f32 %v2188_v56, %v2187_v7  ;;  %v2190_v27 = vpop.f32.mrb[14].mxu1 }
 0x31e   : > { %v2191_v24 = vpop.f32.mrb[15].mxu1 }
 0x31f   : > { %v2192_v10 = vadd.f32 %v2191_v24, %v2190_v27  ;;  %v1877_v55 = vadd.f32 %v2189_v45, %v1721_v53 }
 0x321   : > { %v1880_v39 = vadd.f32 %v2192_v10, %v1721_v53 }
 0x323   : > { %v2148_v37 = vpack.c.bf16 %v1880_v39, %v1877_v55 }
 0x325   : > { %2152 = vst [vmem:[%s3812_s15 + $0x18] sm:$0xff] %v2148_v37  }
 0x326   : > { %2497 = shalt.err (!%p2494_p0)
}
 0x327   : > { %s2498_s18 = scalar_lea.hbm %s3824_s30, 512  ;;  %s2502_s15 = scalar_lea.hbm %s4108_s20, 1024 }
 0x328   : > { %p2499_p4 = scmp.ne.s32.totalorder %s3824_s30, %s2498_s18  ;;  %p2503_p12 = scmp.lt.u32.totalorder %s3824_s30, %s4108_s20 }
 0x329   : > { %p2504_p1 = scmp.lt.u32.totalorder %s2502_s15, %s2498_s18  ;;  %p2506_p13 = scmp.lt.u32.totalorder %s2498_s18, %s3824_s30 }
 0x32a   : > { %p2500_p2 = pnand %p2499_p4, %p2783_p10 }
 0x32b   : > { %p2505_p11 = por %p2504_p1, %p2503_p12 }
 0x32c   : > { %p2501_p8 = pneg %p2500_p2 }
 0x32d   : > { %p2507_p6 = por %p2506_p13, %p2505_p11 }
 0x32f   : > { %p2508_p3 = pnand %p2507_p6, %p2501_p8 }
 0x331   : > { %2511 = shalt.err (!%p2508_p3)
}
 0x332   : > { %s2587_s21 = smov 64   ;;  %s2588_s12 = smov 4  }
 0x333   : > { %2207 = dma.vmem_to_hbm [thread:$0]  (%p2783_p10), %s3819_s19, 512, %s3824_s30, %s1924_s17, %s2587_s21, %s2587_s21, %s2588_s12  }
 0x334 PF: > { %s4109_s22 = sld [smem:[#allocation16_spill]]  ;;  %s4110_s9 = sld [smem:[#allocation18_spill]] }
 0x335   : > { %p4112_p7 = scmp.ge.s32.totalorder %s2574_s29, 2 }
 0x33a   : > { %s1954_s11 = sand.u32 1, %s4109_s22   ;;  %p4111_p5 = scmp.ne.s32.totalorder %s4110_s9, 0 }
 0x33b   : > { %s1955_s13 = scalar_lea.sflag [#allocation5], %s1954_s11 }
 0x33c   : > { %p2224_p9 = pnand %p4112_p7, %p4111_p5 }
 0x33e   : > { %2549 = dma.done.wait (!%p2224_p9), %s1955_s13, 512  }
 0x33f   : > { %2551 = vsyncadd (!%p2224_p9), %s1955_s13, 4294966784  ;;  %s25_s29 = sadd.s32 1, %s2574_s29   ;;  %s4113_s7 = smov %s4120_s24 }
 0x340   : > { %p22_p0 = scmp.ge.s32.totalorder %s25_s29, 4   ;;  %s4114_s24 = smov %s2558_s25 }
 0x341   : > { %s4115_s25 = smov %s2562_s26  ;;  %s4116_s26 = smov %s2795_s8 }
 0x342   : > { %s4117_s27 = smov %s2570_s28  ;;  %s4118_s28 = smov %s4113_s7 }
 0x343   :  { %24 = sbr.rel (!%p22_p0) target bundleno = 10 (0xa), region = 106 }
 0x34a   :  { %1960 = vsyncpa [#allocation4], 1 }
 0x34b   :  { %1962 = vsyncpa [#allocation4 + $0x1], 1 }
 0x34c   :  { %1963 = vsyncpa [#allocation7], 1 }
 0x34d   :  { %1964 = vsyncpa [#allocation10], 1 }
 0x34e   :  { %1965 = vsyncpa [#allocation5], 1 }
 0x34f   :  { %1967 = vsyncpa [#allocation5 + $0x1], 1 }

// kernel: tpu_custom_call.1
= control target key start
LH: loop header
LB: loop body
LE: loop exit
PB: predicated region body
PF: predicated region fallthrough
CT: control target
= control target key end

     0   :  { %s3874_s0 = inlined_call_operand.hbm [shape: bf16[2,64,128], index: 0, kind: input, shape index: {}]   ;;  %s3875_s1 = inlined_call_operand.hbm [shape: bf16[128,256], index: 1, kind: input, shape index: {}]   ;;  %s3876_s2 = inlined_call_operand.vmem [shape: bf16[1,256], index: 2, kind: input, shape index: {}]   ;;  %s3877_s3 = inlined_call_operand.hbm [shape: bf16[9,256], index: 3, kind: input, shape index: {}]   ;;  %s3878_s4 = inlined_call_operand.vmem [shape: bf16[1,256], index: 4, kind: input, shape index: {}]   ;;  %s3879_s5 = inlined_call_operand.hbm [shape: bf16[256,128], index: 5, kind: input, shape index: {}]   ;;  %s3880_s6 = inlined_call_operand.vmem [shape: bf16[1,128], index: 6, kind: input, shape index: {}]   ;;  %s3881_s7 = inlined_call_operand.hbm [shape: bf16[2,64,128], index: 7, kind: output, shape index: {}]  }
   0x1   :  { %3934 = sst [smem:[#allocation67_spill]] %s3881_s7 }
   0x2   :  { %12 = vsyncpa [#allocation4], 0 }
   0x3   :  { %14 = vsyncpa [#allocation4 + $0x1], 0 }
   0x4   :  { %15 = vsyncpa [#allocation7], 0 }
   0x5   :  { %16 = vsyncpa [#allocation10], 0 }
   0x6   :  { %17 = vsyncpa [#allocation5], 0 }
   0x7   :  { %19 = vsyncpa [#allocation5 + $0x1], 0  ;;  %s2629_s24 = smov 0   ;;  %s2631_s25 = smov 0  }
   0x8   :  { %s2633_s26 = smov 0   ;;  %s2635_s27 = smov 0  }
   0x9   :  { %s2637_s28 = smov 0   ;;  %s2639_s29 = smov 0  }
   0xa LB: > { %3935 = sst [smem:[#allocation16_spill]] %s2554_s24  ;;  %s2055_s30 = sadd.s32 4294967295, %s2574_s29   ;;  %s2574_s29 = sphi %s2639_s29, %s25_s29   ;;  %s2570_s28 = sphi %s2637_s28, %s4118_s28   ;;  %s2566_s27 = sphi %s2635_s27, %s4117_s27   ;;  %s2562_s26 = sphi %s2633_s26, %s4116_s26   ;;  %s2558_s25 = sphi %s2631_s25, %s4115_s25   ;;  %s2554_s24 = sphi %s2629_s24, %s4114_s24  }
   0xb   : > { %3936 = sst [smem:[#allocation17_spill]] %s2566_s27  ;;  %s2056_s8 = sadd.s32 4294967294, %s2574_s29  }
   0xc   : > { %p59_p0 = scmp.ne.s32.totalorder %s2558_s25, %s2554_s24  ;;  %p2663_p1 = scmp.eq.s32.totalorder %s2055_s30, 0 }
   0xd   : > { %p2667_p2 = scmp.eq.s32.totalorder %s2055_s30, 1  ;;  %p217_p3 = scmp.eq.s32.totalorder %s2056_s8, 1 }
   0xe   : > { %s3937_s9 = scalar_select %p2663_p1, 1, 0 }
   0xf   : > { %s3938_s10 = scalar_select %p2667_p2, 1, 0 }
  0x10   : > { %p2673_p4 = por %p2663_p1, %p59_p0  ;;  %p2057_p5 = scmp.ge.s32.totalorder %s2574_s29, 1 }
  0x11   : > { %p2678_p6 = por %p217_p3, %p59_p0  ;;  %p224_p7 = scmp.lt.s32.totalorder %s2574_s29, 3 }
  0x12   : > { %s3939_s11 = scalar_select %p2673_p4, 1, 0 }
  0x13   : > { %s3940_s12 = scalar_select %p2678_p6, 1, 0 }
  0x14   : > { %p2683_p8 = pnand %p2057_p5, %p224_p7  ;;  %s2576_s14 = smov [#allocation6]  }
  0x15   : > { %3941 = sst [smem:[#allocation18_spill]] %s3940_s12  ;;  %s236_s15 = sshll.u32 %s2576_s14, 4  ;;  %s2687_s15 = int_to_ptr.vmem [resolvable:$true] %s236_s15 }
  0x16   : > { %s3942_s13 = scalar_select %p2683_p8, 1, 0 }
  0x17   : > { %p2209_p9 = pneg %p2683_p8  ;;  %s2577_s17 = smov [#allocation8]  }
  0x18   : > { %s252_s18 = sshll.u32 %s2577_s17, 4  ;;  %s2578_s19 = smov [#allocation9]   ;;  %s2698_s18 = int_to_ptr.vmem [resolvable:$true] %s252_s18 }
  0x19   : > { %p2694_p11 = pnand %p2209_p9, %p2663_p1  ;;  %s2700_s20 = sshll.u32 %s2578_s19, 4  ;;  %s269_s20 = int_to_ptr.vmem [resolvable:$true] %s2700_s20 }
  0x1a   : > { %s2370_s23 = scalar_lea.hbm %s3875_s1, 2048 }
  0x1b   : > { %p2371_p12 = scmp.ne.s32.totalorder %s3875_s1, %s2370_s23  ;;  %p2710_p13 = pneg %p2694_p11 }
  0x1c   : > { %p2377_p5 = scmp.lt.u32.totalorder %s2370_s23, %s3875_s1 }
  0x1d   : > { %p2373_p0 = pnand %p2710_p13, %p2371_p12 }
  0x1f   : > { %p2374_p3 = pneg %p2373_p0 }
  0x21   : > { %p2379_p7 = pnand %p2377_p5, %p2374_p3 }
  0x23   : > { %2382 = shalt.err (!%p2379_p7)
}
  0x24   : > { %s2383_s21 = scalar_lea.vmem %s2687_s15, 2048  ;;  %p2391_p1 = scmp.lt.s32.totalorder %s2687_s15, %s2687_s15 }
  0x25   : > { %p2384_p9 = scmp.ne.s32.totalorder %s2687_s15, %s2383_s21  ;;  %p2392_p4 = scmp.lt.s32.totalorder %s2383_s21, %s2383_s21 }
  0x27   : > { %p2386_p10 = pnand %p2384_p9, %p2710_p13  ;;  %p2393_p12 = por %p2392_p4, %p2391_p1 }
  0x29   : > { %p2387_p6 = pneg %p2386_p10 }
  0x2b   : > { %p2394_p0 = pnand %p2393_p12, %p2387_p6 }
  0x2d   : > { %2397 = shalt.err (!%p2394_p0)
}
  0x2e   : > { %s2579_s22 = smov 128   ;;  %s2580_s23 = smov 8  }
  0x2f   : > { %2212 = dma.hbm_to_vmem [thread:$0]  (!%p2694_p11), %s3875_s1, 2048, %s2687_s15, [#allocation7], %s2579_s22, %s2579_s22, %s2580_s23  }
  0x30   : > { %s2398_s12 = scalar_lea.hbm %s3877_s3, 256 }
  0x31   : > { %p2399_p1 = scmp.ne.s32.totalorder %s3877_s3, %s2398_s12  ;;  %p2405_p10 = scmp.lt.u32.totalorder %s2398_s12, %s3877_s3 }
  0x33   : > { %p2401_p4 = pnand %p2399_p1, %p2710_p13 }
  0x35   : > { %p2402_p6 = pneg %p2401_p4 }
  0x37   : > { %p2407_p3 = pnand %p2405_p10, %p2402_p6 }
  0x39   : > { %2410 = shalt.err (!%p2407_p3)
}
  0x3a   : > { %s2411_s15 = scalar_lea.vmem %s2698_s18, 256  ;;  %p2419_p12 = scmp.lt.s32.totalorder %s2698_s18, %s2698_s18 }
  0x3b   : > { %p2412_p5 = scmp.ne.s32.totalorder %s2698_s18, %s2411_s15  ;;  %p2420_p0 = scmp.lt.s32.totalorder %s2411_s15, %s2411_s15 }
  0x3d   : > { %p2414_p7 = pnand %p2412_p5, %p2710_p13  ;;  %p2421_p1 = por %p2420_p0, %p2419_p12 }
  0x3f   : > { %p2415_p9 = pneg %p2414_p7 }
  0x41   : > { %p2422_p4 = pnand %p2421_p1, %p2415_p9 }
  0x43   : > { %2425 = shalt.err (!%p2422_p4)
}
  0x44   : > { %2215 = dma.hbm_to_vmem [thread:$0]  (!%p2694_p11), %s3877_s3, 256, %s2698_s18, [#allocation7], %s2579_s22, %s2579_s22, %s2580_s23  }
  0x45   : > { %s2426_s30 = scalar_lea.hbm %s3879_s5, 2048 }
  0x46   : > { %p2427_p6 = scmp.ne.s32.totalorder %s3879_s5, %s2426_s30  ;;  %p2433_p5 = scmp.lt.u32.totalorder %s2426_s30, %s3879_s5 }
  0x48   : > { %p2429_p10 = pnand %p2427_p6, %p2710_p13 }
  0x4a   : > { %p2430_p3 = pneg %p2429_p10 }
  0x4c   : > { %p2435_p7 = pnand %p2433_p5, %p2430_p3 }
  0x4e   : > { %2438 = shalt.err (!%p2435_p7)
}
  0x4f   : > { %s2439_s15 = scalar_lea.vmem %s269_s20, 2048  ;;  %p2447_p1 = scmp.lt.s32.totalorder %s269_s20, %s269_s20 }
  0x50   : > { %p2440_p9 = scmp.ne.s32.totalorder %s269_s20, %s2439_s15  ;;  %p2448_p4 = scmp.lt.s32.totalorder %s2439_s15, %s2439_s15 }
  0x52   : > { %p2442_p12 = pnand %p2440_p9, %p2710_p13  ;;  %p2449_p8 = por %p2448_p4, %p2447_p1 }
  0x54   : > { %p2443_p0 = pneg %p2442_p12 }
  0x56   : > { %p2450_p2 = pnand %p2449_p8, %p2443_p0 }
  0x58   : > { %2453 = shalt.err (!%p2450_p2)
}
  0x59   : > { %s2581_s18 = smov 64   ;;  %s2582_s14 = smov 4  }
  0x5a   : > { %2218 = dma.hbm_to_vmem [thread:$0]  (!%p2694_p11), %s3879_s5, 2048, %s269_s20, [#allocation10], %s2581_s18, %s2581_s18, %s2582_s14  }
  0x5b   : > { %s46_s7 = sadd.s32 1, %s2562_s26  ;;  %s37_s24 = sadd.s32 1, %s2570_s28 }
  0x5c   : > { %p53_p2 = scmp.ne.s32.totalorder %s2562_s26, %s2558_s25  ;;  %p39_p8 = scmp.ge.s32.totalorder %s37_s24, 2 }
  0x5d   : > { %p54_p13 = scmp.eq.s32.totalorder %s2574_s29, 0  ;;  %p3945_p6 = scmp.ne.s32.totalorder %s3938_s10, 0 }
  0x5e   : > { %p2230_p3 = scmp.lt.s32.totalorder %s2574_s29, 2  ;;  %s4120_s24 = smov (%p39_p8, %s37_s24), 0 }
  0x5f   : > { %p2783_p10 = por %p3945_p6, %p53_p2  ;;  %p55_p5 = por %p54_p13, %p53_p2 }
  0x60   : > { %s285_s16 = sand.u32 1, %s2562_s26   ;;  %s41_s12 = ssub.s32 %s2570_s28, %s4120_s24 }
  0x61   : > { %p44_p7 = scmp.eq.s32.totalorder %s41_s12, 0  ;;  %s2062_s20 = sshll.u32 %s285_s16, 5 }
  0x62   : > { %s2120_s30 = sshll.u32 %s2570_s28, 9  ;;  %s289_s21 = scalar_lea.vmem [#allocation3], %s2062_s20 }
  0x63   : > { %s2795_s8 = scalar_select %p44_p7, %s2562_s26, %s46_s7  }
  0x64   : > { %s2800_s10 = scalar_lea.hbm %s3874_s0, %s2120_s30  ;;  %s298_s15 = sshll.u32 %s289_s21, 4  ;;  %s2802_s15 = int_to_ptr.vmem [resolvable:$true] %s298_s15 }
  0x65   : > { %p2806_p11 = pnand %p2230_p3, %p55_p5  ;;  %s2810_s23 = scalar_lea.sflag [#allocation4], %s285_s16 }
  0x66   : > { %s2454_s7 = scalar_lea.hbm %s2800_s10, 512  ;;  %s2459_s30 = scalar_lea.hbm %s3874_s0, 1024 }
  0x67   : > { %p2455_p9 = scmp.ne.s32.totalorder %s2800_s10, %s2454_s7  ;;  %p2456_p12 = pneg %p2806_p11 }
  0x68   : > { %p2460_p4 = scmp.lt.u32.totalorder %s2800_s10, %s3874_s0  ;;  %p2461_p2 = scmp.lt.u32.totalorder %s2459_s30, %s2454_s7 }
  0x69   : > { %p2457_p0 = pnand %p2456_p12, %p2455_p9  ;;  %p2463_p13 = scmp.lt.u32.totalorder %s2454_s7, %s2800_s10 }
  0x6a   : > { %p2462_p8 = por %p2461_p2, %p2460_p4 }
  0x6b   : > { %p2458_p1 = pneg %p2457_p0 }
  0x6c   : > { %p2464_p6 = por %p2463_p13, %p2462_p8 }
  0x6e   : > { %p2465_p3 = pnand %p2464_p6, %p2458_p1 }
  0x70   : > { %2468 = shalt.err (!%p2465_p3)
}
  0x71   : > { %s2469_s16 = scalar_lea.vmem %s2802_s15, 512  ;;  %s2583_s21 = smov [#allocation3]  }
  0x72   : > { %p2470_p5 = scmp.ne.s32.totalorder %s2802_s15, %s2469_s16  ;;  %s2474_s12 = sshll.u32 %s2583_s21, 4  ;;  %s2475_s12 = int_to_ptr.vmem [resolvable:$false] %s2474_s12 }
  0x73   : > { %s2476_s20 = scalar_lea.vmem %s2475_s12, 1024  ;;  %p2477_p0 = scmp.lt.s32.totalorder %s2802_s15, %s2475_s12 }
  0x74   : > { %p2472_p7 = pnand %p2470_p5, %p2456_p12  ;;  %p2478_p4 = scmp.lt.s32.totalorder %s2476_s20, %s2469_s16 }
  0x76   : > { %p2473_p9 = pneg %p2472_p7  ;;  %p2479_p2 = por %p2478_p4, %p2477_p0 }
  0x78   : > { %p2480_p8 = pnand %p2479_p2, %p2473_p9 }
  0x7a   : > { %2483 = shalt.err (!%p2480_p8)
}
  0x7b   : > { %2222 = dma.hbm_to_vmem [thread:$0]  (!%p2806_p11), %s2800_s10, 512, %s2802_s15, %s2810_s23, %s2581_s18, %s2581_s18, %s2582_s14  }
  0x7c   : > { %p3948_p12 = scmp.ne.s32.totalorder %s3942_s13, 0 }
  0x7e   : > { %310 = sbr.rel (%p3948_p12) target bundleno = 820 (0x334), region = 48 }
  0x85   : > { %s2844_s7 = sand.u32 1, %s2558_s25   ;;  %p3949_p1 = scmp.ne.s32.totalorder %s3939_s11, 0 }
  0x86   : > { %s2066_s30 = sshll.u32 %s2844_s7, 5  ;;  %s313_s17 = scalar_lea.sflag [#allocation4], %s2844_s7 }
  0x87   : > { %s2850_s22 = scalar_lea.vmem [#allocation3], %s2066_s30 }
  0x88   : > { %2537 = dma.done.wait (%p3949_p1), %s313_s17, 512  }
  0x89   : > { %2539 = vsyncadd (%p3949_p1), %s313_s17, 4294966784  ;;  %p3950_p11 = scmp.ne.s32.totalorder %s3937_s9, 0 }
  0x8b   : > { %2541 = dma.done.wait (%p3950_p11), [#allocation7], 2304  }
  0x8c   : > { %2543 = vsyncadd (%p3950_p11), [#allocation7], 4294964992 }
  0x8d   : > { %2545 = dma.done.wait (%p3950_p11), [#allocation10], 2048  }
  0x8e   : > { %2547 = vsyncadd (%p3950_p11), [#allocation10], 4294965248  ;;  %v2584_v0 = vmov 0   ;;  %v2294_v1 = vld [vmem:[#allocation6 + $0x4] ss:$8 sps:$4 sm:$0xff]   ;;  %v2320_v19 = vld [vmem:[%s2850_s22 + $0x10] sm:$0xff]   ;;  %v389_v22 = vlaneseq }
  0x8f   : > { %543 = vmatprep.mubr.bf16.mxu0 %v2584_v0  ;;  %v2296_v2 = vld [vmem:[#allocation6] ss:$8 sps:$4 sm:$0xff]   ;;  %511 = vmatprep.subr.bf16.mxu0 %v2294_v1  ;;  %v2297_v3 = vld [vmem:[#allocation6 + $0x14] ss:$8 sps:$4 sm:$0xff]   ;;  %v2299_v4 = vld [vmem:[#allocation6 + $0x10] ss:$8 sps:$4 sm:$0xff]  }
  0x90   : > { %512 = vmatpush1.bf16.msra.mxu0 %v2296_v2  ;;  %v2300_v5 = vld [vmem:[#allocation6 + $0x24] ss:$8 sps:$4 sm:$0xff]   ;;  %v2302_v6 = vld [vmem:[#allocation6 + $0x20] ss:$8 sps:$4 sm:$0xff]   ;;  %v2303_v7 = vld [vmem:[#allocation6 + $0x34] ss:$8 sps:$4 sm:$0xff]  }
  0x91   : > { %513 = vmatprep.subr.bf16.mxu0 %v2297_v3  ;;  %v2305_v8 = vld [vmem:[#allocation6 + $0x30] ss:$8 sps:$4 sm:$0xff]   ;;  %v2306_v9 = vld [vmem:[#allocation6 + $0x44] ss:$8 sps:$4 sm:$0xff]   ;;  %v2308_v10 = vld [vmem:[#allocation6 + $0x40] ss:$8 sps:$4 sm:$0xff]  }
  0x92   : > { %v2309_v11 = vld [vmem:[#allocation6 + $0x54] ss:$8 sps:$4 sm:$0xff]   ;;  %v2311_v12 = vld [vmem:[#allocation6 + $0x50] ss:$8 sps:$4 sm:$0xff]   ;;  %v2312_v13 = vld [vmem:[#allocation6 + $0x64] ss:$8 sps:$4 sm:$0xff]  }
  0x93   : > { %v2314_v14 = vld [vmem:[#allocation6 + $0x60] ss:$8 sps:$4 sm:$0xff]   ;;  %v2315_v15 = vld [vmem:[#allocation6 + $0x74] ss:$8 sps:$4 sm:$0xff]   ;;  %v2317_v16 = vld [vmem:[#allocation6 + $0x70] ss:$8 sps:$4 sm:$0xff]  }
  0x94   : > { %514 = vmatpush1.bf16.msra.mxu0 %v2299_v4  ;;  %v2318_v17 = vld [vmem:[%s2850_s22] sm:$0xff]   ;;  %v2319_v18 = vld [vmem:[%s2850_s22 + $0x8] sm:$0xff]   ;;  %v2321_v20 = vld [vmem:[%s2850_s22 + $0x18] sm:$0xff]   ;;  %v2585_v21 = vmov 0.0   ;;  %vm693_vm0 = vcmp.lt.s32.totalorder %v389_v22, 256  ;;  %v2868_v39 = vshrl.u32 %v389_v22, 7 }
  0x95   : > { %515 = vmatprep.subr.bf16.mxu0 %v2300_v5  ;;  %683 = vst [vmem:[#allocation2] sm:$0xfe] %v2585_v21  ;;  %684 = vst [vmem:[#allocation2 + $0x8] sm:$0xfe] %v2585_v21  ;;  %v2322_v23 = vld [vmem:[#allocation9 + $0x40] sm:$0xff]   ;;  %v2324_v25 = vld [vmem:[#allocation9 + $0x48] sm:$0xff]  }
  0x96   : > { %685 = vst [vmem:[#allocation2 + $0x10] sm:$0x1] %v2585_v21  ;;  %686 = vst [vmem:[#allocation2 + $0x18] sm:$0x1] %v2585_v21  ;;  %v2323_v24 = vld [vmem:[#allocation9] sm:$0xff]   ;;  %2153 = vmatprep.subr.bf16.mxu1 %v2322_v23  ;;  %v2325_v26 = vld [vmem:[#allocation9 + $0x8] sm:$0xff]  }
  0x97   : > { %687 = vst [vmem:[#allocation2 + $0x90] sm:$0xfe] %v2585_v21  ;;  %688 = vst [vmem:[#allocation2 + $0x98] sm:$0xfe] %v2585_v21  ;;  %2154 = vmatpush3.bf16.msra.mxu1 %v2323_v24  ;;  %v2326_v27 = vld [vmem:[#allocation9 + $0x50] sm:$0xff]   ;;  %v2328_v29 = vld [vmem:[#allocation9 + $0x58] sm:$0xff]  }
  0x98   : > { %516 = vmatpush1.bf16.msra.mxu0 %v2302_v6  ;;  %689 = vst [vmem:[#allocation2 + $0xa0] sm:$0x1] %v2585_v21  ;;  %690 = vst [vmem:[#allocation2 + $0xa8] sm:$0x1] %v2585_v21  ;;  %2155 = vmatprep.subr.bf16.mxu1 %v2324_v25  ;;  %v2327_v28 = vld [vmem:[#allocation9 + $0x10] sm:$0xff]   ;;  %v2329_v30 = vld [vmem:[#allocation9 + $0x18] sm:$0xff]  }
  0x99   : > { %517 = vmatprep.subr.bf16.mxu0 %v2303_v7  ;;  %695 = vst.msk [vmem:[#allocation2] ss:$8 sm:$0x3] %vm693_vm0, %v2585_v21  ;;  %698 = vst.msk [vmem:[#allocation2 + $0xa1] ss:$8 sm:$0x3] %vm693_vm0, %v2585_v21 }
  0x9a   : > { %v2330_v31 = vld [vmem:[#allocation9 + $0x60] sm:$0xff]   ;;  %v2332_v33 = vld [vmem:[#allocation9 + $0x68] sm:$0xff]   ;;  %v2334_v35 = vld [vmem:[#allocation9 + $0x70] sm:$0xff]   ;;  %v2874_v42 = vsub.s32 0, %v2868_v39  ;;  %v395_v44 = vsub.s32 2, %v2868_v39  ;;  %v959_v45 = vsub.s32 1, %v2868_v39 }
  0x9b   : > { %2156 = vmatpush3.bf16.msra.mxu1 %v2325_v26  ;;  %v2331_v32 = vld [vmem:[#allocation9 + $0x20] sm:$0xff]   ;;  %v2333_v34 = vld [vmem:[#allocation9 + $0x28] sm:$0xff]   ;;  %v2335_v36 = vld [vmem:[#allocation9 + $0x30] sm:$0xff]   ;;  %v985_v51 = vsub.s32 4, %v2868_v39  ;;  %v873_v59 = vsub.s32 3, %v2868_v39  ;;  %v915_v3 = vsub.s32 6, %v2868_v39 }
  0x9c   : > { %518 = vmatpush1.bf16.msra.mxu0 %v2305_v8  ;;  %2157 = vmatprep.subr.bf16.mxu1 %v2326_v27  ;;  %v2336_v37 = vld [vmem:[#allocation9 + $0x78] sm:$0xff]   ;;  %v378_v40 = vld [vmem:[%s3876_s2] sm:$0x3]  ;;  %3951 = vst [vmem:[#allocation19_spill] sm:$0xff] %v2874_v42  ;;  %v821_v43 = vld [vmem:[#allocation8] sm:$0xff]  ;;  %v1173_v4 = vsub.s32 5, %v2868_v39 }
  0x9d   : > { %519 = vmatprep.subr.bf16.mxu0 %v2306_v9  ;;  %v2337_v38 = vld [vmem:[#allocation9 + $0x38] sm:$0xff]   ;;  %v379_v41 = vunpack.c.l.bf16 %v378_v40  ;;  %v823_v46 = vunpack.c.l.bf16 %v821_v43  ;;  %v824_v47 = vunpack.c.h.bf16 %v821_v43  ;;  %v827_v52 = vld [vmem:[%s3878_s4] sm:$0x3]  ;;  %v954_v55 = vld [vmem:[#allocation2 + $0x8] sm:$0xfe]  ;;  %v2914_v7 = vadd.s32 48, %v2868_v39 }
  0x9e   : > { %v953_v54 = vld [vmem:[#allocation2] sm:$0xfe]  ;;  %v828_v58 = vunpack.c.l.bf16 %v827_v52  ;;  %v822_v60 = vld [vmem:[#allocation8 + $0x8] sm:$0x11]  ;;  %v1095_v9 = vsub.s32 7, %v2868_v39  ;;  %vm616_vm1 = vcmask 1040384  }
  0x9f   : > { %2158 = vmatpush3.bf16.msra.mxu1 %v2327_v28  ;;  %v392_v48 = vrot.slane %v379_v41, %v2874_v42  ;;  %v396_v49 = vrot.slane %v379_v41, %v395_v44  ;;  %v2879_v50 = vrot.slane %v823_v46, %v959_v45  ;;  %v2885_v53 = vrot.slane %v824_v47, %v959_v45  ;;  %v1091_v25 = vld [vmem:[#allocation2 + $0xa0] sm:$0x1]  ;;  %v1137_v43 = vld [vmem:[#allocation2] sm:$0xfc]  ;;  %s3812_s15 = scalar_lea.vmem [#allocation11], %s2066_s30  ;;  %s4107_s23 = sld [smem:[#allocation17_spill]] }
  0xa0   : > { %520 = vmatpush1.bf16.msra.mxu0 %v2308_v10  ;;  %2159 = vmatprep.subr.bf16.mxu1 %v2328_v29  ;;  %v2897_v62 = vrot.slane %v823_v46, %v985_v51  ;;  %v2904_v1 = vrot.slane %v823_v46, %v395_v44  ;;  %v2907_v2 = vrot.slane %v823_v46, %v2874_v42  ;;  %v829_v6 = vld [vmem:[#allocation2] sm:$0xff]  ;;  %v825_v8 = vunpack.c.l.bf16 %v822_v60  ;;  %s1939_s19 = sshll.u32 %s3812_s15, 4  ;;  %s4108_s20 = sld [smem:[#allocation67_spill]]  ;;  %s3819_s19 = int_to_ptr.vmem [resolvable:$true] %s1939_s19 }
  0xa1   : > { %521 = vmatprep.subr.bf16.mxu0 %v2309_v11  ;;  %v2888_v56 = vrot.slane %v392_v48, %v2874_v42  ;;  %v2891_v57 = vrot.slane %v396_v49, %v2874_v42  ;;  %v2895_v61 = vmul.f32 %v2879_v50, %v953_v54  ;;  %v2900_v63 = vmul.f32 %v2885_v53, %v954_v55  ;;  %v830_v11 = vld [vmem:[#allocation2 + $0x8] sm:$0xff]  ;;  %v1217_v27 = vld [vmem:[#allocation2 + $0xa0] sm:$0x3]  ;;  %s1924_s17 = scalar_lea.sflag [#allocation5], %s2844_s7  ;;  %s2484_s22 = scalar_lea.vmem %s3819_s19, 512 }
  0xa2   : > { %3952 = vst [vmem:[#allocation20_spill] sm:$0xff] %v2907_v2  ;;  %v2911_v5 = vrot.slane %v824_v47, %v395_v44  ;;  %v2917_v10 = vrot.slane %v823_v46, %v873_v59  ;;  %v2936_v21 = vrot.slane %v823_v46, %v1173_v4  ;;  %v2938_v22 = vrot.slane %v824_v47, %v1173_v4  ;;  %p2485_p13 = scmp.ne.s32.totalorder %s3819_s19, %s2484_s22  ;;  %s2586_s9 = smov [#allocation11]  }
  0xa3   : > { %2160 = vmatpush3.bf16.msra.mxu1 %v2329_v30  ;;  %v2944_v26 = vrot.slane %v823_v46, %v1095_v9  ;;  %v2947_v28 = vrot.slane %v825_v8, %v2874_v42  ;;  %vm1313_vm3 = vcmask 1046528   ;;  %vm1414_vm6 = vcmask 1045504   ;;  %s2488_s11 = sshll.u32 %s2586_s9, 4  ;;  %s2489_s11 = int_to_ptr.vmem [resolvable:$false] %s2488_s11 }
  0xa4   : > { %522 = vmatpush1.bf16.msra.mxu0 %v2311_v12  ;;  %2161 = vmatprep.subr.bf16.mxu1 %v2330_v31  ;;  %3953 = vst [vmem:[#allocation21_spill] sm:$0xff] %v2917_v10  ;;  %v2920_v12 = vrot.slane %v824_v47, %v2874_v42  ;;  %p2486_p6 = pnand %p2485_p13, %p2783_p10  ;;  %s2490_s13 = scalar_lea.vmem %s2489_s11, 1024 }
  0xa5   : > { %523 = vmatprep.subr.bf16.mxu0 %v2312_v13  ;;  %v2923_v13 = vadd.s32 56, %v2868_v39  ;;  %s2129_s16 = sshll.u32 %s4107_s23, 9  ;;  %p2491_p5 = scmp.lt.s32.totalorder %s3819_s19, %s2489_s11 }
  0xa6   : > { %3954 = vst [vmem:[#allocation22_spill] sm:$0xff] %v2920_v12  ;;  %v2941_v23 = vmul.f32 %v2920_v12, %v830_v11  ;;  %v2989_v11 = vadd.s32 24, %v2868_v39  ;;  %s3824_s30 = scalar_lea.hbm %s4108_s20, %s2129_s16  ;;  %p2487_p3 = pneg %p2486_p6 }
  0xa7   : > { %2162 = vmatpush3.bf16.msra.mxu1 %v2331_v32  ;;  %v2953_v32 = vrot.slane %v824_v47, %v915_v3  ;;  %p2492_p7 = scmp.lt.s32.totalorder %s2490_s13, %s2484_s22 }
  0xa8   : > { %524 = vmatpush1.bf16.msra.mxu0 %v2314_v14  ;;  %2163 = vmatprep.subr.bf16.mxu1 %v2332_v33  ;;  %v1501_v14 = vrot.slane %v828_v58, %v2874_v42  ;;  %v1092_v33 = vld [vmem:[#allocation2 + $0xa8] sm:$0x1]  ;;  %3959 = vst [vmem:[#allocation27_spill] sm:$0xff] %v2989_v11 }
  0xa9   : > { %525 = vmatprep.subr.bf16.mxu0 %v2315_v15  ;;  %v1505_v15 = vrot.slane %v828_v58, %v395_v44  ;;  %p2493_p9 = por %p2492_p7, %p2491_p5 }
  0xaa   : > { %v2951_v31 = vrot.slane %v1501_v14, %v2874_v42 }
  0xab   : > { %2164 = vmatpush3.bf16.msra.mxu1 %v2333_v34  ;;  %v2955_v34 = vrot.slane %v824_v47, %v1095_v9  ;;  %v2971_v48 = vrot.slane %v1505_v15, %v2874_v42  ;;  %v1138_v9 = vld [vmem:[#allocation2 + $0x8] sm:$0xfc]  ;;  %p2494_p0 = pnand %p2493_p9, %p2487_p3 }
  0xac   : > { %526 = vmatpush1.bf16.msra.mxu0 %v2317_v16  ;;  %2165 = vmatprep.subr.bf16.mxu1 %v2334_v35  ;;  %v2926_v16 = vrot.slane %v824_v47, %v873_v59  ;;  %3955 = vst [vmem:[#allocation23_spill] sm:$0xff] %v2951_v31  ;;  %v1218_v35 = vld [vmem:[#allocation2 + $0xa8] sm:$0x3] }
  0xad   : > { %3956 = vst [vmem:[#allocation24_spill] sm:$0xff] %v2971_v48  ;;  %v2975_v54 = vmul.f32 %v2955_v34, %v1092_v33 }
  0xaf   : > { %544 = vmatmul.mubr.bf16.vlgmr.msra.gmra.mrb[0].mxu0 %v2318_v17  ;;  %2166 = vmatpush3.bf16.msra.mxu1 %v2335_v36  ;;  %v826_v17 = vunpack.c.h.bf16 %v822_v60  ;;  %v2982_v60 = vmul.f32 %v2904_v1, %v1137_v43 }
  0xb0   : > { %553 = vmatprep.mubr.bf16.mxu0 %v2584_v0  ;;  %2167 = vmatprep.subr.bf16.mxu1 %v2336_v37 }
  0xb1   : > { %3957 = vst [vmem:[#allocation25_spill] sm:$0xff] %v2982_v60 }
  0xb3   : > { %2168 = vmatpush3.bf16.msra.mxu1 %v2337_v38  ;;  %v2959_v38 = vrot.slane %v826_v17, %v2874_v42 }
  0xb5   : > { %v2978_v55 = vmul.f32 %v2959_v38, %v1218_v35  ;;  %v2997_v35 = vadd.s32 40, %v2868_v39 }
  0xb7   : > { %554 = vmatmul.mubr.bf16.gmra.mrb[4].mxu0 %v2319_v18  ;;  %v2929_v18 = vadd.s32 8, %v2868_v39  ;;  %3961 = vst [vmem:[#allocation29_spill] sm:$0xff] %v2997_v35 }
  0xb8   : > { %563 = vmatprep.mubr.bf16.mxu0 %v2584_v0 }
  0xbf   : > { %564 = vmatmul.mubr.bf16.gmra.mrb[8].mxu0 %v2320_v19  ;;  %v2932_v19 = vmul.f32 %v2907_v2, %v829_v6 }
  0xc0   : > { %573 = vmatprep.mubr.bf16.mxu0 %v2584_v0  ;;  %v2902_v0 = vrot.slane %v824_v47, %v985_v51  ;;  %v2968_v47 = vmul.f32 %v2947_v28, %v1217_v27 }
  0xc7   : > { %574 = vmatmul.mubr.bf16.gmra.mrb[12].mxu0 %v2321_v20  ;;  %v2934_v20 = vrot.slane %v823_v46, %v915_v3  ;;  %v2965_v46 = vmul.f32 %v2944_v26, %v1091_v25  ;;  %v2985_v3 = vadd.s32 16, %v2868_v39  ;;  %v2993_v25 = vadd.s32 32, %v2868_v39 }
  0xc9   : > { %3958 = vst [vmem:[#allocation26_spill] sm:$0xff] %v2985_v3  ;;  %3960 = vst [vmem:[#allocation28_spill] sm:$0xff] %v2993_v25 }
 0x182   : > { %v545_v29 = vpop.f32.mrb[0].mxu0 }
 0x183   : > { %v546_v36 = vadd.f32 %v545_v29, %v2888_v56  ;;  %v547_v37 = vpop.f32.mrb[1].mxu0 }
 0x184   : > { %v548_v44 = vadd.f32 %v547_v37, %v2891_v57  ;;  %v549_v45 = vpop.f32.mrb[2].mxu0 }
 0x185   : > { %v584_v49 = vmax.f32 %v546_v36, 0.0  ;;  %v550_v51 = vadd.f32 %v549_v45, %v2888_v56  ;;  %v551_v52 = vpop.f32.mrb[3].mxu0  ;;  %v3005_v45 = vmul.f32 %v2911_v5, %v1138_v9 }
 0x186   : > { %v585_v58 = vmax.f32 %v548_v44, 0.0  ;;  %v552_v59 = vadd.f32 %v551_v52, %v2891_v57 }
 0x187   : > { %v617_v4 = vrot.slane %v584_v49, 7  ;;  %v991_v6 = vmul.f32 %v2897_v62, %v584_v49  ;;  %v586_v8 = vmax.f32 %v550_v51, 0.0  ;;  %3962 = vst [vmem:[#allocation30_spill] sm:$0xff] %v3005_v45 }
 0x188   : > { %v618_v14 = vrot.slane %v585_v58, 7  ;;  %v992_v15 = vmul.f32 %v2902_v0, %v585_v58  ;;  %v587_v17 = vmax.f32 %v552_v59, 0.0 }
 0x189   : > { %665 = vst [vmem:[#allocation2 + $0x10] sm:$0xfe] %v617_v4  ;;  %v1023_v27 = vrot.slane %v991_v6, 7  ;;  %v619_v29 = vrot.slane %v586_v8, 7  ;;  %v993_v33 = vmul.f32 %v2897_v62, %v586_v8 }
 0x18a   : > { %666 = vst [vmem:[#allocation2 + $0x18] sm:$0xfe] %v618_v14  ;;  %v1024_v36 = vrot.slane %v992_v15, 7  ;;  %v2999_v37 = vrot.slane %v587_v17, 7  ;;  %v3002_v43 = vmul.f32 %v2902_v0, %v587_v17  ;;  %v555_v44 = vpop.f32.mrb[4].mxu0 }
 0x18b   : > { %v620_v49 = vsel %vm616_vm1, %v617_v4, %v619_v29  ;;  %v1025_v51 = vrot.slane %v993_v33, 7  ;;  %v556_v52 = vadd.f32 %v555_v44, %v2888_v56  ;;  %v557_v58 = vpop.f32.mrb[5].mxu0  ;;  %v3018_v4 = vadd.f32 %v1023_v27, %v2895_v61 }
 0x18c   : > { %667 = vst [vmem:[#allocation2 + $0x20] sm:$0xff] %v620_v49  ;;  %v3012_v6 = vsel %vm616_vm1, %v618_v14, %v2999_v37  ;;  %v3889_v8 = vrot.slane %v3002_v43, 7  ;;  %v559_v15 = vpop.f32.mrb[6].mxu0  ;;  %v3024_v14 = vadd.f32 %v1024_v36, %v2900_v63  ;;  %v3032_v9 = vmul.f32 %v2907_v2, %v620_v49 }
 0x18d   : > { %3963 = vst [vmem:[#allocation31_spill] sm:$0xff] %v3012_v6  ;;  %3964 = vst [vmem:[#allocation32_spill] sm:$0xff] %v3018_v4  ;;  %v1026_v33 = vsel %vm616_vm1, %v1023_v27, %v1025_v51  ;;  %v588_v44 = vmax.f32 %v556_v52, 0.0  ;;  %v561_v59 = vpop.f32.mrb[7].mxu0  ;;  %v3035_v61 = vmul.f32 %v2904_v1, %v620_v49  ;;  %v3038_v52 = vmul.f32 %v2917_v10, %v620_v49 }
 0x18e   : > { %668 = vst [vmem:[#allocation2 + $0x28] sm:$0xff] %v3012_v6  ;;  %3965 = vst [vmem:[#allocation33_spill] sm:$0xff] %v3024_v14  ;;  %v3029_v17 = vsel %vm616_vm1, %v1024_v36, %v3889_v8  ;;  %v3041_v41 = vmul.f32 %v2934_v20, %v620_v49  ;;  %v969_v30 = vmul.f32 %v2879_v50, %v620_v49 }
 0x18f   : > { %3966 = vst [vmem:[#allocation34_spill] sm:$0xff] %v3032_v9  ;;  %3967 = vst [vmem:[#allocation35_spill] sm:$0xff] %v3035_v61  ;;  %v623_v27 = vrot.slane %v588_v44, 7  ;;  %v995_v63 = vmul.f32 %v2897_v62, %v588_v44  ;;  %v1181_v36 = vmul.f32 %v2936_v21, %v620_v49  ;;  %v558_v24 = vadd.f32 %v557_v58, %v2891_v57 }
 0x190   : > { %3968 = vst [vmem:[#allocation36_spill] sm:$0xff] %v3038_v52  ;;  %3969 = vst [vmem:[#allocation37_spill] sm:$0xff] %v3041_v41  ;;  %v831_v40 = vld [vmem:[#allocation2 + $0x10] sm:$0xff]  ;;  %v3049_v8 = vmul.f32 %v2920_v12, %v3012_v6  ;;  %v970_v9 = vmul.f32 %v2885_v53, %v3012_v6  ;;  %v560_v44 = vadd.f32 %v559_v15, %v2888_v56 }
 0x191   : > { %v879_v42 = vmul.f32 %v2917_v10, %v831_v40  ;;  %v1151_v35 = vmul.f32 %v2904_v1, %v831_v40  ;;  %v832_v25 = vld [vmem:[#allocation2 + $0x18] sm:$0xff]  ;;  %v3057_v31 = vmul.f32 %v2907_v2, %v831_v40  ;;  %v967_v49 = vmul.f32 %v2879_v50, %v831_v40 }
 0x192   : > { %3970 = vst [vmem:[#allocation38_spill] sm:$0xff] %v3049_v8  ;;  %v3062_v58 = vmul.f32 %v2911_v5, %v3012_v6  ;;  %v3066_v8 = vmul.f32 %v2938_v22, %v3012_v6  ;;  %v565_v11 = vpop.f32.mrb[8].mxu0  ;;  %v3069_v3 = vmul.f32 %v2920_v12, %v832_v25  ;;  %v880_v4 = vmul.f32 %v2926_v16, %v832_v25 }
 0x193   : > { %3971 = vst [vmem:[#allocation39_spill] sm:$0xff] %v3057_v31  ;;  %v3073_v15 = vsel %vm616_vm1, %v619_v29, %v623_v27  ;;  %v1029_v48 = vrot.slane %v995_v63, 7  ;;  %v567_v41 = vpop.f32.mrb[9].mxu0  ;;  %v968_v40 = vmul.f32 %v2885_v53, %v832_v25  ;;  %v3077_v52 = vmul.f32 %v2911_v5, %v832_v25 }
 0x194   : > { %3972 = vst [vmem:[#allocation40_spill] sm:$0xff] %v3062_v58  ;;  %3973 = vst [vmem:[#allocation41_spill] sm:$0xff] %v3066_v8  ;;  %v3079_v31 = vadd.f32 %v1181_v36, %v1151_v35  ;;  %v589_v58 = vmax.f32 %v558_v24, 0.0  ;;  %v569_v61 = vpop.f32.mrb[10].mxu0  ;;  %v3082_v8 = vadd.f32 %v879_v42, %v2932_v19  ;;  %v590_v60 = vmax.f32 %v560_v44, 0.0 }
 0x195   : > { %3974 = vst [vmem:[#allocation42_spill] sm:$0xff] %v3069_v3  ;;  %3975 = vst [vmem:[#allocation43_spill] sm:$0xff] %v3073_v15  ;;  %v1030_v45 = vsel %vm616_vm1, %v1025_v51, %v1029_v48  ;;  %v562_v29 = vadd.f32 %v561_v59, %v2891_v57  ;;  %v571_v14 = vpop.f32.mrb[11].mxu0  ;;  %v566_v25 = vadd.f32 %v565_v11, %v2888_v56 }
 0x196   : > { %3976 = vst [vmem:[#allocation44_spill] sm:$0xff] %v3077_v52  ;;  %3977 = vst [vmem:[#allocation45_spill] sm:$0xff] %v3079_v31  ;;  %v3086_v63 = vadd.f32 %v1030_v45, %v969_v30  ;;  %v625_v3 = vrot.slane %v589_v58, 7  ;;  %v996_v6 = vmul.f32 %v2902_v0, %v589_v58  ;;  %v3090_v35 = vadd.f32 %v1026_v33, %v967_v49 }
 0x197   : > { %3978 = vst [vmem:[#allocation46_spill] sm:$0xff] %v3082_v8  ;;  %v627_v24 = vrot.slane %v590_v60, 7  ;;  %v997_v36 = vmul.f32 %v2897_v62, %v590_v60  ;;  %v591_v42 = vmax.f32 %v562_v29, 0.0  ;;  %v592_v59 = vmax.f32 %v566_v25, 0.0 }
 0x198   : > { %3979 = vst [vmem:[#allocation47_spill] sm:$0xff] %v3086_v63  ;;  %3980 = vst [vmem:[#allocation48_spill] sm:$0xff] %v3090_v35  ;;  %v3095_v19 = vsel %vm616_vm1, %v2999_v37, %v625_v3  ;;  %v1031_v51 = vrot.slane %v996_v6, 7  ;;  %v568_v30 = vadd.f32 %v567_v41, %v2891_v57  ;;  %v570_v11 = vadd.f32 %v569_v61, %v2888_v56 }
 0x199   : > { %3981 = vst [vmem:[#allocation49_spill] sm:$0xff] %v3095_v19  ;;  %v3099_v45 = vsel %vm616_vm1, %v623_v27, %v627_v24  ;;  %v1033_v44 = vrot.slane %v997_v36, 7  ;;  %v629_v58 = vrot.slane %v591_v42, 7  ;;  %v3103_v33 = vadd.f32 %v880_v4, %v2941_v23 }
 0x19a   : > { %3982 = vst [vmem:[#allocation50_spill] sm:$0xff] %v3099_v45  ;;  %v3984_v60 = vrot.slane %v3002_v43, 7  ;;  %v998_v37 = vmul.f32 %v2902_v0, %v591_v42  ;;  %v631_v6 = vrot.slane %v592_v59, 7  ;;  %v575_v29 = vpop.f32.mrb[12].mxu0  ;;  %v999_v61 = vmul.f32 %v2897_v62, %v592_v59 }
 0x19b   : > { %3983 = vst [vmem:[#allocation51_spill] sm:$0xff] %v3103_v33  ;;  %v1034_v41 = vsel %vm616_vm1, %v1029_v48, %v1033_v44  ;;  %v3113_v27 = vsel %vm616_vm1, %v625_v3, %v629_v58  ;;  %v577_v36 = vpop.f32.mrb[13].mxu0  ;;  %v3117_v23 = vadd.f32 %v3029_v17, %v968_v40  ;;  %v593_v42 = vmax.f32 %v568_v30, 0.0 }
 0x19c   : > { %v1032_v49 = vsel %vm616_vm1, %v3984_v60, %v1031_v51  ;;  %v1035_v43 = vrot.slane %v998_v37, 7  ;;  %v3120_v4 = vsel %vm616_vm1, %v627_v24, %v631_v6  ;;  %v579_v60 = vpop.f32.mrb[14].mxu0  ;;  %v3126_v48 = vmul.f32 %v2885_v53, %v3095_v19 }
 0x19d   : > { %v3109_v25 = vadd.f32 %v1032_v49, %v970_v9  ;;  %3986 = vst [vmem:[#allocation53_spill] sm:$0xff] %v3117_v23  ;;  %3987 = vst [vmem:[#allocation54_spill] sm:$0xff] %v3120_v4  ;;  %v971_v9 = vmul.f32 %v2879_v50, %v3073_v15  ;;  %v1037_v3 = vrot.slane %v999_v61, 7  ;;  %v594_v49 = vmax.f32 %v570_v11, 0.0  ;;  %v3128_v59 = vpop.f32.mrb[15].mxu0 }
 0x19e   : > { %v3131_v17 = vsel %vm616_vm1, %v1031_v51, %v1035_v43  ;;  %v633_v40 = vrot.slane %v593_v42, 7  ;;  %v1000_v24 = vmul.f32 %v2902_v0, %v593_v42  ;;  %v572_v30 = vadd.f32 %v571_v14, %v2891_v57 }
 0x19f   : > { %3985 = vst [vmem:[#allocation52_spill] sm:$0xff] %v3109_v25  ;;  %v3137_v37 = vmul.f32 %v2879_v50, %v3099_v45  ;;  %v3140_v63 = vsel %vm616_vm1, %v1033_v44, %v1037_v3  ;;  %v635_v35 = vrot.slane %v594_v49, 7  ;;  %v1001_v11 = vmul.f32 %v2897_v62, %v594_v49 }
 0x1a0   : > { %3989 = vst [vmem:[#allocation56_spill] sm:$0xff] %v3140_v63  ;;  %v3143_v61 = vadd.f32 %v1034_v41, %v971_v9  ;;  %v3146_v51 = vsel %vm616_vm1, %v629_v58, %v633_v40  ;;  %v1039_v8 = vrot.slane %v1000_v24, 7  ;;  %v595_v31 = vmax.f32 %v572_v30, 0.0 }
 0x1a1   : > { %3988 = vst [vmem:[#allocation55_spill] sm:$0xff] %v3137_v37  ;;  %3991 = vst [vmem:[#allocation58_spill] sm:$0xff] %v3146_v51  ;;  %v3149_v42 = vsel %vm616_vm1, %v631_v6, %v635_v35  ;;  %v975_v14 = vmul.f32 %v2879_v50, %v3120_v4  ;;  %v1041_v37 = vrot.slane %v1001_v11, 7  ;;  %v576_v44 = vadd.f32 %v575_v29, %v2888_v56 }
 0x1a2   : > { %3990 = vst [vmem:[#allocation57_spill] sm:$0xff] %v3143_v61  ;;  %3992 = vst [vmem:[#allocation59_spill] sm:$0xff] %v3149_v42  ;;  %v3155_v63 = vsel %vm616_vm1, %v1035_v43, %v1039_v8  ;;  %v637_v49 = vrot.slane %v595_v31, 7  ;;  %v976_v41 = vmul.f32 %v2885_v53, %v3146_v51  ;;  %v1002_v58 = vmul.f32 %v2902_v0, %v595_v31 }
 0x1a3   : > { %3993 = vst [vmem:[#allocation60_spill] sm:$0xff] %v3155_v63  ;;  %v1042_v9 = vsel %vm616_vm1, %v1037_v3, %v1041_v37  ;;  %v596_v24 = vmax.f32 %v576_v44, 0.0  ;;  %v977_v6 = vmul.f32 %v2879_v50, %v3149_v42  ;;  %v578_v30 = vadd.f32 %v577_v36, %v2891_v57 }
 0x1a4   : > { %v1081_v11 = vadd.f32 %v1042_v9, %v975_v14  ;;  %v3165_v29 = vsel %vm616_vm1, %v633_v40, %v637_v49  ;;  %v1043_v43 = vrot.slane %v1002_v58, 7  ;;  %v580_v61 = vadd.f32 %v579_v60, %v2888_v56 }
 0x1a5   : > { %v3994_v4 = vand.u32 7, %v2914_v7  ;;  %v639_v31 = vrot.slane %v596_v24, 7  ;;  %v1003_v3 = vmul.f32 %v2897_v62, %v596_v24  ;;  %v597_v44 = vmax.f32 %v578_v30, 0.0 }
 0x1a6   : > { %v978_v36 = vmul.f32 %v2885_v53, %v3165_v29  ;;  %v1044_v14 = vsel %vm616_vm1, %v1039_v8, %v1043_v43  ;;  %v598_v40 = vmax.f32 %v580_v61, 0.0  ;;  %v865_v58 = vmul.f32 %v2907_v2, %v3149_v42 }
 0x1a7   : > { %vm3170_vm2 = vcmp.ne.s32.totalorder %v3994_v4, 0  ;;  %v1161_v56 = vmul.f32 %v2904_v1, %v3149_v42  ;;  %v3182_v4 = vadd.f32 %v1044_v14, %v976_v41  ;;  %v3185_v60 = vsel %vm616_vm1, %v635_v35, %v639_v31 }
 0x1a8   : > { %3997 = vst [vmem:[#allocation61_spill] sm:$0xff] %v3185_v60  ;;  %v1045_v9 = vrot.slane %v1003_v3, 7  ;;  %v3187_v24 = vrot.slane %v597_v44, 7  ;;  %v3190_v30 = vmul.f32 %v2902_v0, %v597_v44  ;;  %v643_v63 = vrot.slane %v598_v40, 7 }
 0x1a9   : > { %v867_v8 = vmul.f32 %v2907_v2, %v3185_v60  ;;  %v891_v61 = vmul.f32 %v2917_v10, %v3185_v60  ;;  %v979_v35 = vmul.f32 %v2879_v50, %v3185_v60  ;;  %v1005_v3 = vmul.f32 %v2897_v62, %v598_v40 }
 0x1aa   : > { %v1046_v42 = vsel %vm616_vm1, %v1041_v37, %v1045_v9  ;;  %v3199_v41 = vsel %vm616_vm1, %v637_v49, %v3187_v24  ;;  %v3915_v14 = vrot.slane %v3190_v30, 7  ;;  %v644_v45 = vsel %vm616_vm1, %v639_v31, %v643_v63  ;;  %681 = vst [vmem:[#allocation2 + $0x90] sm:$0x1] %v643_v63 }
 0x1ab   : > { %v1083_v44 = vadd.f32 %v1046_v42, %v977_v6  ;;  %v907_v2 = vadd.f32 %v891_v61, %v865_v58  ;;  %679 = vst [vmem:[#allocation2 + $0x80] sm:$0xff] %v644_v45  ;;  %v3998_v37 = vand.u32 7, %v2923_v13  ;;  %v893_v49 = vmul.f32 %v2917_v10, %v644_v45 }
 0x1ac   : > { %v933_v25 = vmul.f32 %v2934_v20, %v644_v45  ;;  %v1049_v62 = vrot.slane %v1005_v3, 7  ;;  %v1111_v42 = vmul.f32 %v2944_v26, %v3185_v60  ;;  %v1048_v63 = vsel %vm616_vm1, %v1043_v43, %v3915_v14 }
 0x1ad   : > { %vm3208_vm4 = vcmp.ne.s32.totalorder %v3998_v37, 0  ;;  %v1113_v6 = vmul.f32 %v2944_v26, %v644_v45  ;;  %v1163_v31 = vmul.f32 %v2904_v1, %v3185_v60  ;;  %v1191_v40 = vmul.f32 %v2936_v21, %v3185_v60 }
 0x1ae   : > { %v3224_v58 = vadd.f32 %v1048_v63, %v978_v36  ;;  %v909_v61 = vadd.f32 %v893_v49, %v867_v8  ;;  %v949_v37 = vadd.f32 %v933_v25, %v907_v2  ;;  %v1050_v3 = vsel %vm616_vm1, %v1045_v9, %v1049_v62 }
 0x1af   : > { %v4001_v10 = vand.u32 7, %v2914_v7  ;;  %v1085_v43 = vadd.f32 %v1050_v3, %v979_v35  ;;  %v3233_v14 = vadd.f32 %v1111_v42, %v1081_v11  ;;  %v1131_v15 = vadd.f32 %v1113_v6, %v1083_v44 }
 0x1b0   : > { %v1193_v33 = vmul.f32 %v2936_v21, %v644_v45  ;;  %v1209_v19 = vadd.f32 %v1191_v40, %v1161_v56  ;;  %v1239_v36 = vmul.f32 %v2947_v28, %v644_v45  ;;  %v1291_v2 = vsel %vm3170_vm2, %v949_v37, 0.0 }
 0x1b1   : > { %vm3229_vm5 = vcmp.ne.s32.totalorder %v4001_v10, 7  ;;  %4004 = vst [vmem:[#allocation62_spill] sm:$0xff] %v3233_v14  ;;  %v582_v7 = vadd.f32 %v3128_v59, %v2891_v57  ;;  %v3924_v25 = vrot.slane %v3233_v14, 1  ;;  %v1336_v9 = vrot.slane %v1131_v15, 1  ;;  %v911_v45 = vld [vmem:[#allocation2 + $0x90] sm:$0xff] }
 0x1b2   : > { %v1211_v10 = vadd.f32 %v1193_v33, %v1163_v31  ;;  %v866_v11 = vmul.f32 %v2920_v12, %v3165_v29  ;;  %v4005_v8 = vand.u32 7, %v2923_v13  ;;  %v1169_v35 = vld [vmem:[#allocation2 + $0x90] sm:$0x3]  ;;  %v3250_v44 = vadd.f32 %v1239_v36, %v1209_v19  ;;  %v955_v59 = vld [vmem:[#allocation2 + $0x80] sm:$0x1] }
 0x1b3   : > { %v599_v49 = vmax.f32 %v582_v7, 0.0  ;;  %v868_v57 = vmul.f32 %v2920_v12, %v3199_v41  ;;  %v892_v15 = vmul.f32 %v2926_v16, %v3199_v41  ;;  %v935_v33 = vmul.f32 %v2934_v20, %v911_v45  ;;  %v1139_v42 = vld [vmem:[#allocation2 + $0x80] sm:$0x3] }
 0x1b4   : > { %vm3246_vm7 = vcmp.ne.s32.totalorder %v4005_v8, 7  ;;  %4008 = vst [vmem:[#allocation63_spill] sm:$0xff] %v3250_v44  ;;  %v1115_v13 = vmul.f32 %v2944_v26, %v911_v45  ;;  %v1195_v63 = vmul.f32 %v2936_v21, %v1169_v35  ;;  %v1241_v6 = vmul.f32 %v2947_v28, %v911_v45 }
 0x1b5   : > { %v981_v19 = vmul.f32 %v2879_v50, %v955_v59  ;;  %v1165_v31 = vmul.f32 %v2904_v1, %v1139_v42  ;;  %v3265_v40 = vsel %vm1313_vm3, %v3924_v25, %v1336_v9  ;;  %v3925_v37 = vrot.slane %v3250_v44, 2 }
 0x1b6   : > { %4009 = vst [vmem:[#allocation64_spill] sm:$0xff] %v3265_v40  ;;  %v951_v3 = vadd.f32 %v935_v33, %v909_v61  ;;  %v1133_v36 = vadd.f32 %v1115_v13, %v1085_v43  ;;  %v1259_v7 = vadd.f32 %v1241_v6, %v1211_v10  ;;  %v645_v8 = vrot.slane %v599_v49, 7 }
 0x1b7   : > { %v1087_v60 = vadd.f32 %v1049_v62, %v981_v19  ;;  %v1213_v12 = vadd.f32 %v1195_v63, %v1165_v31  ;;  %v908_v35 = vadd.f32 %v892_v15, %v866_v11  ;;  %v980_v45 = vmul.f32 %v2885_v53, %v3199_v41 }
 0x1b8   : > { %v1293_v50 = vsel %vm3208_vm4, %v951_v3, 0.0  ;;  %v1340_v59 = vrot.slane %v1133_v36, 1  ;;  %v1441_v42 = vrot.slane %v1259_v7, 2  ;;  %v646_v25 = vsel %vm616_vm1, %v3187_v24, %v645_v8  ;;  %682 = vst [vmem:[#allocation2 + $0x98] sm:$0x1] %v645_v8 }
 0x1b9   : > { %v1135_v61 = vadd.f32 %v2965_v46, %v1087_v60  ;;  %v1261_v43 = vadd.f32 %v2968_v47, %v1213_v12  ;;  %680 = vst [vmem:[#allocation2 + $0x88] sm:$0xff] %v646_v25  ;;  %v894_v62 = vmul.f32 %v2926_v16, %v646_v25  ;;  %v934_v10 = vmul.f32 %v2953_v32, %v646_v25 }
 0x1ba   : > { %v1341_v11 = vsel %vm1313_vm3, %v1336_v9, %v1340_v59  ;;  %v1442_v15 = vsel %vm1414_vm6, %v3925_v37, %v1441_v42  ;;  %v1006_v33 = vmul.f32 %v2902_v0, %v599_v49  ;;  %v1112_v24 = vmul.f32 %v2955_v34, %v3199_v41 }
 0x1bb   : > { %v1344_v13 = vrot.slane %v1135_v61, 1  ;;  %v1376_v46 = vadd.f32 %v1341_v11, %v1291_v2  ;;  %v1445_v60 = vrot.slane %v1261_v43, 2  ;;  %v1477_v12 = vsel %vm3229_vm5, %v1442_v15, 0.0 }
 0x1bc   : > { %v910_v47 = vadd.f32 %v894_v62, %v868_v57  ;;  %v950_v63 = vadd.f32 %v934_v10, %v908_v35  ;;  %v1051_v6 = vrot.slane %v1006_v33, 7  ;;  %v1114_v9 = vmul.f32 %v2955_v34, %v646_v25 }
 0x1bd   : > { %v1345_v19 = vsel %vm1313_vm3, %v1340_v59, %v1344_v13  ;;  %v1446_v31 = vsel %vm1414_vm6, %v1441_v42, %v1445_v60  ;;  %v3290_v3 = vadd.f32 %v1477_v12, %v1376_v46  ;;  %v3293_v0 = vadd.f32 %v1112_v24, %v3182_v4 }
 0x1be   : > { %v1378_v49 = vadd.f32 %v1345_v19, %v1293_v50  ;;  %v1479_v2 = vsel %vm3246_vm7, %v1446_v31, 0.0  ;;  %v4011_v36 = vrot.slane %v3190_v30, 7  ;;  %v1132_v7 = vadd.f32 %v1114_v9, %v3224_v58 }
 0x1bf   : > { %4010 = vst [vmem:[#allocation65_spill] sm:$0xff] %v3290_v3  ;;  %v912_v8 = vld [vmem:[#allocation2 + $0x98] sm:$0xff]  ;;  %v1162_v59 = vmul.f32 %v2911_v5, %v3165_v29  ;;  %v1164_v42 = vmul.f32 %v2911_v5, %v3199_v41  ;;  %v1192_v50 = vmul.f32 %v2938_v22, %v3199_v41  ;;  %v3317_v24 = vmul.f32 %v2885_v53, %v3113_v27 }
 0x1c0   : > { %v1052_v57 = vsel %vm616_vm1, %v4011_v36, %v1051_v6  ;;  %v1170_v4 = vld [vmem:[#allocation2 + $0x98] sm:$0x3]  ;;  %v3307_v61 = vadd.f32 %v1479_v2, %v1378_v49  ;;  %v936_v30 = vmul.f32 %v2953_v32, %v912_v8  ;;  %v956_v43 = vld [vmem:[#allocation2 + $0x88] sm:$0x1]  ;;  %v1116_v62 = vmul.f32 %v2955_v34, %v912_v8 }
 0x1c1   : > { %v1086_v35 = vadd.f32 %v1052_v57, %v980_v45  ;;  %v1140_v58 = vld [vmem:[#allocation2 + $0x88] sm:$0x3]  ;;  %v1194_v45 = vmul.f32 %v2938_v22, %v646_v25  ;;  %v982_v10 = vmul.f32 %v2885_v53, %v956_v43  ;;  %v1196_v15 = vmul.f32 %v2938_v22, %v1170_v4  ;;  %v4063_v3 = vld [vmem:[#allocation58_spill] sm:$0xff] }
 0x1c2   : > { %4012 = vst [vmem:[#allocation66_spill] sm:$0xff] %v3307_v61  ;;  %v1166_v11 = vmul.f32 %v2911_v5, %v1140_v58  ;;  %v1210_v33 = vadd.f32 %v1192_v50, %v1162_v59  ;;  %v952_v13 = vadd.f32 %v936_v30, %v910_v47  ;;  %v1240_v19 = vmul.f32 %v2959_v38, %v646_v25  ;;  %v4020_v30 = vld [vmem:[#allocation42_spill] sm:$0xff]  ;;  %v4021_v58 = vld [vmem:[#allocation49_spill] sm:$0xff] }
 0x1c3   : > { %v1134_v46 = vadd.f32 %v1116_v62, %v1086_v35  ;;  %v1212_v60 = vadd.f32 %v1194_v45, %v1164_v42  ;;  %v1088_v12 = vadd.f32 %v1051_v6, %v982_v10  ;;  %v1242_v31 = vmul.f32 %v2959_v38, %v912_v8  ;;  %v1090_v10 = vld [vmem:[#allocation2 + $0x28] sm:$0xfe] }
 0x1c4   : > { %v1214_v9 = vadd.f32 %v1196_v15, %v1166_v11  ;;  %v3323_v49 = vadd.f32 %v3131_v17, %v3126_v48  ;;  %v1292_v2 = vsel %vm3170_vm2, %v950_v63, 0.0  ;;  %v3927_v36 = vrot.slane %v3293_v0, 1 }
 0x1c5   : > { %v1338_v53 = vrot.slane %v1132_v7, 1  ;;  %v1136_v47 = vadd.f32 %v2975_v54, %v1088_v12  ;;  %v3329_v57 = vadd.f32 %v1240_v19, %v1210_v33  ;;  %v1260_v6 = vadd.f32 %v1242_v31, %v1212_v60  ;;  %v1168_v60 = vld [vmem:[#allocation2 + $0x18] sm:$0xfc]  ;;  %v4022_v31 = vld [vmem:[#allocation51_spill] sm:$0xff] }
 0x1c6   : > { %v1262_v35 = vadd.f32 %v2978_v55, %v1214_v9  ;;  %v1294_v25 = vsel %vm3208_vm4, %v952_v13, 0.0  ;;  %v1342_v17 = vrot.slane %v1134_v46, 1  ;;  %v4013_v51 = vand.u32 7, %v2868_v39  ;;  %v4019_v55 = vld [vmem:[#allocation31_spill] sm:$0xff]  ;;  %v1167_v46 = vld [vmem:[#allocation2 + $0x10] sm:$0xfc] }
 0x1c7   : > { %v3337_v48 = vsel %vm1313_vm3, %v3927_v36, %v1338_v53  ;;  %v4016_v54 = vand.u32 7, %v2929_v18  ;;  %v882_v52 = vmul.f32 %v2926_v16, %v4019_v55  ;;  %v1346_v8 = vrot.slane %v1136_v47, 1 }
 0x1c8   : > { %vm3341_vm8 = vcmp.ne.s32.totalorder %v4013_v51, 0  ;;  %v3926_v59 = vrot.slane %v3329_v57, 2  ;;  %v1443_v42 = vrot.slane %v1260_v6, 2  ;;  %v1447_v4 = vrot.slane %v1262_v35, 2 }
 0x1c9   : > { %vm3347_vm9 = vcmp.ne.s32.totalorder %v4016_v54, 0  ;;  %v1343_v50 = vsel %vm1313_vm3, %v1338_v53, %v1342_v17  ;;  %v898_v43 = vadd.f32 %v882_v52, %v4020_v30  ;;  %v922_v62 = vmul.f32 %v2953_v32, %v4019_v55  ;;  %v4027_v54 = vld [vmem:[#allocation43_spill] sm:$0xff] }
 0x1ca   : > { %v924_v45 = vmul.f32 %v2953_v32, %v4021_v58  ;;  %v1347_v11 = vsel %vm1313_vm3, %v1342_v17, %v1346_v8  ;;  %v1377_v15 = vadd.f32 %v1343_v50, %v1292_v2  ;;  %v1444_v33 = vsel %vm1414_vm6, %v3926_v59, %v1443_v42  ;;  %v1215_v52 = vld [vmem:[#allocation2 + $0x20] sm:$0xfc]  ;;  %v1216_v8 = vld [vmem:[#allocation2 + $0x28] sm:$0xfc]  ;;  %v4031_v50 = vld [vmem:[#allocation33_spill] sm:$0xff] }
 0x1cb   : > { %v1448_v13 = vsel %vm1414_vm6, %v1443_v42, %v1447_v4  ;;  %v1379_v12 = vadd.f32 %v1347_v11, %v1294_v25  ;;  %v1478_v9 = vsel %vm3229_vm5, %v1444_v33, 0.0  ;;  %v938_v53 = vadd.f32 %v922_v62, %v4022_v31  ;;  %v4032_v62 = vld [vmem:[#allocation53_spill] sm:$0xff]  ;;  %v4038_v31 = vld [vmem:[#allocation35_spill] sm:$0xff] }
 0x1cc   : > { %v1480_v19 = vsel %vm3246_vm7, %v1448_v13, 0.0  ;;  %v3370_v47 = vadd.f32 %v1478_v9, %v1377_v15  ;;  %v1102_v2 = vmul.f32 %v2955_v34, %v1090_v10  ;;  %v1104_v6 = vmul.f32 %v2955_v34, %v4021_v58  ;;  %v4033_v15 = vld [vmem:[#allocation52_spill] sm:$0xff]  ;;  %v4034_v13 = vld [vmem:[#allocation25_spill] sm:$0xff] }
 0x1cd   : > { %v1106_v35 = vmul.f32 %v2955_v34, %v3113_v27  ;;  %v3377_v17 = vadd.f32 %v1480_v19, %v1379_v12  ;;  %v4024_v23 = vmov %v4013_v51  ;;  %v1179_v56 = vmul.f32 %v2936_v21, %v1167_v46  ;;  %v4037_v9 = vld [vmem:[#allocation41_spill] sm:$0xff] }
 0x1ce   : > { %4023 = vst [vmem:[#allocation31_spill] sm:$0xff] %v3370_v47  ;;  %vm3381_vm10 = vcmp.ne.s32.totalorder %v4024_v23, 7  ;;  %v1180_v51 = vmul.f32 %v2938_v22, %v1168_v60  ;;  %v1183_v55 = vmul.f32 %v2936_v21, %v4027_v54  ;;  %v4028_v42 = vand.u32 7, %v2929_v18  ;;  %v4035_v60 = vld [vmem:[#allocation30_spill] sm:$0xff]  ;;  %v4036_v18 = vld [vmem:[#allocation44_spill] sm:$0xff] }
 0x1cf   : > { %v940_v39 = vadd.f32 %v924_v45, %v898_v43  ;;  %v1120_v30 = vadd.f32 %v1102_v2, %v4031_v50  ;;  %v1122_v10 = vadd.f32 %v1104_v6, %v4032_v62  ;;  %v1184_v11 = vmul.f32 %v2938_v22, %v4021_v58  ;;  %v4039_v43 = vld [vmem:[#allocation40_spill] sm:$0xff] }
 0x1d0   : > { %vm3391_vm11 = vcmp.ne.s32.totalorder %v4028_v42, 7  ;;  %v3400_v33 = vadd.f32 %v1106_v35, %v4033_v15  ;;  %v1197_v46 = vadd.f32 %v1179_v56, %v4034_v13  ;;  %v1198_v12 = vadd.f32 %v1180_v51, %v4035_v60  ;;  %v4040_v56 = vld [vmem:[#allocation50_spill] sm:$0xff] }
 0x1d1   : > { %v1200_v19 = vadd.f32 %v4037_v9, %v4036_v18  ;;  %v1201_v23 = vadd.f32 %v1183_v55, %v4038_v31  ;;  %v1202_v45 = vadd.f32 %v1184_v11, %v4039_v43  ;;  %v1227_v2 = vmul.f32 %v2947_v28, %v1215_v52 }
 0x1d2   : > { %v1228_v6 = vmul.f32 %v2959_v38, %v1216_v8  ;;  %v1229_v42 = vmul.f32 %v2947_v28, %v4027_v54  ;;  %v1230_v35 = vmul.f32 %v2959_v38, %v4021_v58  ;;  %v1231_v51 = vmul.f32 %v2947_v28, %v4040_v56  ;;  %v4041_v8 = vld [vmem:[#allocation45_spill] sm:$0xff] }
 0x1d3   : > { %v1232_v50 = vmul.f32 %v2959_v38, %v3113_v27  ;;  %v1245_v62 = vadd.f32 %v1227_v2, %v1197_v46  ;;  %v1280_v11 = vsel %vm3341_vm8, %v938_v53, 0.0  ;;  %v1282_v52 = vsel %vm3347_vm9, %v940_v39, 0.0 }
 0x1d4   : > { %v1246_v55 = vadd.f32 %v1228_v6, %v1198_v12  ;;  %v1247_v15 = vadd.f32 %v1229_v42, %v4041_v8  ;;  %v1248_v13 = vadd.f32 %v1230_v35, %v1200_v19  ;;  %v3423_v60 = vadd.f32 %v1231_v51, %v1201_v23  ;;  %v4042_v23 = vld [vmem:[#allocation39_spill] sm:$0xff] }
 0x1d5   : > { %v3425_v18 = vadd.f32 %v1232_v50, %v1202_v45  ;;  %v1317_v9 = vrot.slane %v1120_v30, 1  ;;  %v1318_v31 = vrot.slane %v1122_v10, 1  ;;  %v3930_v43 = vrot.slane %v3400_v33, 1  ;;  %v4043_v45 = vld [vmem:[#allocation36_spill] sm:$0xff]  ;;  %v1089_v50 = vld [vmem:[#allocation2 + $0x20] sm:$0xfe] }
 0x1d6   : > { %v1415_v37 = vrot.slane %v1245_v62, 2  ;;  %v1416_v46 = vrot.slane %v1247_v15, 2  ;;  %v1418_v12 = vrot.slane %v1246_v55, 2  ;;  %v1419_v2 = vrot.slane %v1248_v13, 2  ;;  %v4044_v62 = vld [vmem:[#allocation55_spill] sm:$0xff]  ;;  %v4045_v55 = vld [vmem:[#allocation56_spill] sm:$0xff] }
 0x1d7   : > { %v3928_v53 = vrot.slane %v3423_v60, 2  ;;  %v1319_v6 = vsel %vm1313_vm3, %v1317_v9, %v1318_v31  ;;  %v1323_v39 = vsel %vm1313_vm3, %v1318_v31, %v3930_v43  ;;  %v3929_v19 = vrot.slane %v3425_v18, 2 }
 0x1d8   : > { %v897_v30 = vadd.f32 %v4043_v45, %v4042_v23  ;;  %v1365_v10 = vadd.f32 %v1319_v6, %v1280_v11  ;;  %v1367_v42 = vadd.f32 %v1323_v39, %v1282_v52  ;;  %v1417_v35 = vsel %vm1414_vm6, %v1415_v37, %v1416_v46  ;;  %v4046_v37 = vld [vmem:[#allocation60_spill] sm:$0xff]  ;;  %v4047_v39 = vld [vmem:[#allocation46_spill] sm:$0xff] }
 0x1d9   : > { %v1420_v51 = vsel %vm1414_vm6, %v1418_v12, %v1419_v2  ;;  %v3440_v8 = vadd.f32 %v4045_v55, %v4044_v62  ;;  %v1422_v15 = vsel %vm1414_vm6, %v1416_v46, %v3928_v53  ;;  %v1424_v13 = vsel %vm1414_vm6, %v1419_v2, %v3929_v19  ;;  %v4048_v46 = vld [vmem:[#allocation37_spill] sm:$0xff] }
 0x1da   : > { %v1466_v11 = vsel %vm3381_vm10, %v1420_v51, 0.0  ;;  %v1080_v52 = vadd.f32 %v4046_v37, %v3317_v24  ;;  %v1468_v9 = vsel %vm3391_vm11, %v1424_v13, 0.0  ;;  %v923_v12 = vmul.f32 %v2934_v20, %v4027_v54  ;;  %v4049_v24 = vld [vmem:[#allocation24_spill] sm:$0xff] }
 0x1db   : > { %v1482_v31 = vadd.f32 %v1466_v11, %v1365_v10  ;;  %v1484_v6 = vadd.f32 %v1468_v9, %v1367_v42  ;;  %v937_v23 = vadd.f32 %v4048_v46, %v4047_v39  ;;  %v1101_v45 = vmul.f32 %v2944_v26, %v1089_v50  ;;  %v4050_v11 = vld [vmem:[#allocation32_spill] sm:$0xff]  ;;  %v4052_v46 = vld [vmem:[#allocation47_spill] sm:$0xff] }
 0x1dc   : > { %v1103_v2 = vmul.f32 %v2944_v26, %v4027_v54  ;;  %v1465_v51 = vsel %vm3381_vm10, %v1417_v35, 0.0  ;;  %v939_v55 = vadd.f32 %v923_v12, %v897_v30  ;;  %v1105_v10 = vmul.f32 %v2944_v26, %v4040_v56  ;;  %v4051_v50 = vld [vmem:[#allocation48_spill] sm:$0xff]  ;;  %v4053_v30 = vld [vmem:[#allocation22_spill] sm:$0xff] }
 0x1dd   : > { %v1517_v62 = vadd.f32 %v4049_v24, %v1482_v31  ;;  %v1467_v42 = vsel %vm3391_vm11, %v1422_v15, 0.0  ;;  %v1519_v13 = vadd.f32 %v4049_v24, %v1484_v6  ;;  %v1119_v37 = vadd.f32 %v1101_v45, %v4050_v11  ;;  %v4054_v11 = vld [vmem:[#allocation26_spill] sm:$0xff] }
 0x1de   : > { %v1121_v9 = vadd.f32 %v1103_v2, %v4051_v50  ;;  %v3472_v59 = vadd.f32 %v1105_v10, %v4052_v46  ;;  %v1279_v25 = vsel %vm3341_vm8, %v937_v23, 0.0  ;;  %v860_v35 = vmul.f32 %v4053_v30, %v4021_v58 }
 0x1df   : > { %v1549_v39 = vmul.f32 0.044715, %v1517_v62  ;;  %v3478_v31 = vmul.f32 0.5, %v1517_v62  ;;  %v1551_v4 = vmul.f32 0.044715, %v1519_v13  ;;  %v1314_v15 = vrot.slane %v1119_v37, 1 }
 0x1e0   : > { %v1315_v12 = vrot.slane %v1121_v9, 1  ;;  %v1281_v45 = vsel %vm3347_vm9, %v939_v55, 0.0  ;;  %v3932_v2 = vrot.slane %v3472_v59, 1  ;;  %v4055_v10 = vand.u32 7, %v4054_v11 }
 0x1e1   : > { %v1565_v6 = vmul.f32 %v1549_v39, %v1517_v62  ;;  %v884_v63 = vmul.f32 %v2926_v16, %v4021_v58  ;;  %v1567_v23 = vmul.f32 %v1551_v4, %v1519_v13  ;;  %v886_v37 = vmul.f32 %v2926_v16, %v3113_v27  ;;  %v4062_v4 = vld [vmem:[#allocation38_spill] sm:$0xff] }
 0x1e2   : > { %vm3485_vm12 = vcmp.ne.s32.totalorder %v4055_v10, 0  ;;  %v1316_v46 = vsel %vm1313_vm3, %v1314_v15, %v1315_v12  ;;  %v926_v7 = vmul.f32 %v2953_v32, %v3113_v27  ;;  %v1321_v9 = vsel %vm1313_vm3, %v1315_v12, %v3932_v2  ;;  %v4058_v10 = vld [vmem:[#allocation27_spill] sm:$0xff] }
 0x1e3   : > { %v1581_v55 = vmul.f32 %v1565_v6, %v1517_v62  ;;  %v1364_v39 = vadd.f32 %v1316_v46, %v1279_v25  ;;  %v4059_v36 = vand.u32 7, %v4058_v10  ;;  %v900_v15 = vadd.f32 %v884_v63, %v4062_v4  ;;  %v4064_v4 = vld [vmem:[#allocation23_spill] sm:$0xff] }
 0x1e4   : > { %v3506_v19 = vmul.f32 0.5, %v1519_v13  ;;  %v1583_v43 = vmul.f32 %v1567_v23, %v1519_v13  ;;  %v1366_v44 = vadd.f32 %v1321_v9, %v1281_v45  ;;  %v1108_v6 = vmul.f32 %v2955_v34, %v4063_v3 }
 0x1e5   : > { %vm3501_vm13 = vcmp.ne.s32.totalorder %v4059_v36, 0  ;;  %v1597_v40 = vadd.f32 %v1581_v55, %v1517_v62  ;;  %v1481_v47 = vadd.f32 %v1465_v51, %v1364_v39  ;;  %v928_v25 = vmul.f32 %v2953_v32, %v4063_v3 }
 0x1e6   : > { %v1110_v36 = vmul.f32 %v2955_v34, %v3165_v29  ;;  %v1599_v12 = vadd.f32 %v1583_v43, %v1519_v13  ;;  %v1483_v46 = vadd.f32 %v1467_v42, %v1366_v44  ;;  %v902_v2 = vadd.f32 %v886_v37, %v860_v35 }
 0x1e7   : > { %v942_v14 = vadd.f32 %v926_v7, %v900_v15  ;;  %v1613_v63 = vmul.f32 0.7978846, %v1597_v40  ;;  %v1516_v61 = vadd.f32 %v4064_v4, %v1481_v47  ;;  %v4065_v45 = vand.u32 7, %v4054_v11 }
 0x1e8   : > { %v1126_v51 = vadd.f32 %v1108_v6, %v3323_v49  ;;  %v3522_v62 = vadd.f32 %v1110_v36, %v1080_v52  ;;  %v1615_v55 = vmul.f32 0.7978846, %v1599_v12  ;;  %v1518_v34 = vadd.f32 %v4064_v4, %v1483_v46 }
 0x1e9   : > { %vm3517_vm14 = vcmp.ne.s32.totalorder %v4065_v45, 7  ;;  %v4068_v44 = vand.u32 7, %v4058_v10  ;;  %v1156_v40 = vmul.f32 %v2911_v5, %v4021_v58  ;;  %v1186_v47 = vmul.f32 %v2938_v22, %v3113_v27 }
 0x1ea   : > { %2338 = vtanh.f32 %v1613_v63  ;;  %v1548_v42 = vmul.f32 0.044715, %v1516_v61  ;;  %v1158_v49 = vmul.f32 %v2911_v5, %v3113_v27  ;;  %v1188_v52 = vmul.f32 %v2938_v22, %v4063_v3 }
 0x1eb   : > { %vm3527_vm15 = vcmp.ne.s32.totalorder %v4068_v44, 7  ;;  %2340 = vtanh.f32 %v1615_v55  ;;  %v1550_v13 = vmul.f32 0.044715, %v1518_v34  ;;  %v944_v35 = vadd.f32 %v928_v25, %v902_v2  ;;  %v4072_v44 = vld [vmem:[#allocation21_spill] sm:$0xff] }
 0x1ec   : > { %v1204_v11 = vadd.f32 %v1186_v47, %v1156_v40  ;;  %v1564_v37 = vmul.f32 %v1548_v42, %v1516_v61  ;;  %v1206_v7 = vadd.f32 %v1188_v52, %v1158_v49  ;;  %v1234_v58 = vmul.f32 %v2959_v38, %v4063_v3 }
 0x1ed   : > { %v1236_v9 = vmul.f32 %v2959_v38, %v3165_v29  ;;  %v3543_v39 = vmul.f32 0.5, %v1516_v61  ;;  %v1566_v10 = vmul.f32 %v1550_v13, %v1518_v34  ;;  %v1284_v15 = vsel %vm3485_vm12, %v942_v14, 0.0 }
 0x1ee   : > { %v1326_v6 = vrot.slane %v1126_v51, 1  ;;  %v1580_v36 = vmul.f32 %v1564_v37, %v1516_v61  ;;  %v1252_v12 = vadd.f32 %v1234_v58, %v1204_v11  ;;  %v1330_v2 = vrot.slane %v3522_v62, 1  ;;  %v4075_v58 = vld [vmem:[#allocation34_spill] sm:$0xff] }
 0x1ef   : > { %v3547_v46 = vadd.f32 %v1236_v9, %v1206_v7  ;;  %v1582_v25 = vmul.f32 %v1566_v10, %v1518_v34  ;;  %v1286_v63 = vsel %vm3501_vm13, %v944_v35, 0.0  ;;  %v4071_v45 = vrot.slane %v3400_v33, 1  ;;  %v4073_v35 = vld [vmem:[#allocation20_spill] sm:$0xff] }
 0x1f0   : > { %v883_v40 = vmul.f32 %v4072_v44, %v4027_v54  ;;  %v1596_v47 = vadd.f32 %v1580_v36, %v1516_v61  ;;  %v1331_v14 = vsel %vm1313_vm3, %v1326_v6, %v1330_v2  ;;  %v1427_v42 = vrot.slane %v1252_v12, 2 }
 0x1f1   : > { %v1327_v55 = vsel %vm1313_vm3, %v4071_v45, %v1326_v6  ;;  %v1598_v49 = vadd.f32 %v1582_v25, %v1518_v34  ;;  %v1371_v52 = vadd.f32 %v1331_v14, %v1286_v63  ;;  %v1431_v13 = vrot.slane %v3547_v46, 2  ;;  %v4076_v63 = vld [vmem:[#allocation54_spill] sm:$0xff] }
 0x1f2   : > { %v1369_v51 = vadd.f32 %v1327_v55, %v1284_v15  ;;  %v859_v11 = vmul.f32 %v4073_v35, %v4027_v54  ;;  %v1612_v33 = vmul.f32 0.7978846, %v1596_v47  ;;  %v4074_v37 = vrot.slane %v3425_v18, 2 }
 0x1f3   : > { %v885_v61 = vmul.f32 %v4072_v44, %v4040_v56  ;;  %v899_v9 = vadd.f32 %v883_v40, %v4075_v58  ;;  %v1614_v10 = vmul.f32 0.7978846, %v1598_v49  ;;  %v1432_v15 = vsel %vm1414_vm6, %v1427_v42, %v1431_v13 }
 0x1f4   : > { %v1428_v7 = vsel %vm1414_vm6, %v4074_v37, %v1427_v42  ;;  %v925_v36 = vmul.f32 %v2934_v20, %v4040_v56  ;;  %v2339_v12 = vpop.eup %2338  ;;  %2342 = vtanh.f32 %v1612_v33  ;;  %v1472_v18 = vsel %vm3527_vm15, %v1432_v15, 0.0  ;;  %v4077_v15 = vld [vmem:[#allocation59_spill] sm:$0xff] }
 0x1f5   : > { %v1470_v6 = vsel %vm3517_vm14, %v1428_v7, 0.0  ;;  %v927_v45 = vmul.f32 %v2934_v20, %v4076_v63  ;;  %v2341_v55 = vpop.eup %2340  ;;  %v1645_v40 = vadd.f32 1.0, %v2339_v12  ;;  %v1534_v47 = vmul.f32 0.5, %v1518_v34  ;;  %v4078_v12 = vld [vmem:[#allocation57_spill] sm:$0xff] }
 0x1f6   : > { %v1486_v25 = vadd.f32 %v1470_v6, %v1369_v51  ;;  %2344 = vtanh.f32 %v1614_v10  ;;  %v1488_v14 = vadd.f32 %v1472_v18, %v1371_v52  ;;  %v1647_v42 = vadd.f32 1.0, %v2341_v55 }
 0x1f7   : > { %v901_v37 = vadd.f32 %v885_v61, %v859_v11  ;;  %v1107_v33 = vmul.f32 %v2944_v26, %v4076_v63  ;;  %v1661_v7 = vmul.f32 %v1645_v40, %v3478_v31  ;;  %v941_v58 = vadd.f32 %v925_v36, %v899_v9 }
 0x1f8   : > { %v3581_v49 = vadd.f32 %v4049_v24, %v1486_v25  ;;  %v3587_v51 = vadd.f32 %v4049_v24, %v1488_v14  ;;  %v1109_v6 = vmul.f32 %v2944_v26, %v4077_v15  ;;  %v1663_v34 = vmul.f32 %v1647_v42, %v3506_v19 }
 0x1f9   : > { %v943_v10 = vadd.f32 %v927_v45, %v901_v37  ;;  %v1155_v11 = vmul.f32 %v2904_v1, %v4027_v54  ;;  %v1125_v18 = vadd.f32 %v1107_v33, %v4078_v12  ;;  %v1157_v9 = vmul.f32 %v2904_v1, %v4040_v56  ;;  %v4079_v12 = vld [vmem:[#allocation28_spill] sm:$0xff] }
 0x1fa   : > { %v1553_v52 = vmul.f32 0.044715, %v3581_v49  ;;  %v1555_v61 = vmul.f32 0.044715, %v3587_v51  ;;  %v3598_v31 = vadd.f32 %v1109_v6, %v3440_v8  ;;  %v1677_v36 = vpack.c.bf16 %v1663_v34, %v1661_v7 }
 0x1fb   : > { %v1185_v19 = vmul.f32 %v2936_v21, %v4040_v56  ;;  %v1187_v25 = vmul.f32 %v2936_v21, %v4076_v63  ;;  %v1233_v45 = vmul.f32 %v2947_v28, %v4076_v63  ;;  %v1235_v8 = vmul.f32 %v2947_v28, %v4077_v15 }
 0x1fc   : > { %v1569_v26 = vmul.f32 %v1553_v52, %v3581_v49  ;;  %v1571_v54 = vmul.f32 %v1555_v61, %v3587_v51  ;;  %v1283_v55 = vsel %vm3485_vm12, %v941_v58, 0.0  ;;  %1850 = vmatprep.mubr.bf16.mxu1 %v1677_v36  ;;  %v1285_v37 = vsel %vm3501_vm13, %v943_v10, 0.0 }
 0x1fd   : > { %v1203_v14 = vadd.f32 %v1185_v19, %v1155_v11  ;;  %v1205_v42 = vadd.f32 %v1187_v25, %v1157_v9  ;;  %v1324_v7 = vrot.slane %v1125_v18, 1  ;;  %v1328_v6 = vrot.slane %v3598_v31, 1  ;;  %v4084_v25 = vld [vmem:[#allocation29_spill] sm:$0xff] }
 0x1fe   : > { %v1585_v40 = vmul.f32 %v1569_v26, %v3581_v49  ;;  %v1587_v33 = vmul.f32 %v1571_v54, %v3587_v51  ;;  %v862_v34 = vmul.f32 %v4053_v30, %v3113_v27  ;;  %v2343_v52 = vpop.eup %2342  ;;  %v4080_v11 = vand.u32 7, %v4079_v12 }
 0x1ff   : > { %v1251_v58 = vadd.f32 %v1233_v45, %v1203_v14  ;;  %v3622_v61 = vadd.f32 %v1235_v8, %v1205_v42  ;;  %v864_v53 = vmul.f32 %v4053_v30, %v4063_v3  ;;  %v1644_v18 = vadd.f32 1.0, %v2343_v52 }
 0x200   : > { %v1601_v50 = vadd.f32 %v1585_v40, %v3581_v49  ;;  %vm3626_vm0 = vcmp.ne.s32.totalorder %v4080_v11, 0  ;;  %v2345_v10 = vpop.eup %2344  ;;  %v1603_v36 = vadd.f32 %v1587_v33, %v3587_v51  ;;  %v4083_v27 = vrot.slane %v3472_v59, 1 }
 0x201   : > { %v1329_v19 = vsel %vm1313_vm3, %v1324_v7, %v1328_v6  ;;  %v4085_v54 = vand.u32 7, %v4084_v25  ;;  %v1646_v8 = vadd.f32 1.0, %v2345_v10  ;;  %v1660_v42 = vmul.f32 %v1644_v18, %v3543_v39 }
 0x202   : > { %v1325_v26 = vsel %vm1313_vm3, %v4083_v27, %v1324_v7  ;;  %v1617_v30 = vmul.f32 0.7978846, %v1601_v50  ;;  %v1370_v14 = vadd.f32 %v1329_v19, %v1285_v37  ;;  %v1619_v33 = vmul.f32 0.7978846, %v1603_v36 }
 0x203   : > { %vm3641_vm1 = vcmp.ne.s32.totalorder %v4085_v54, 0  ;;  %v1368_v40 = vadd.f32 %v1325_v26, %v1283_v55  ;;  %v1425_v59 = vrot.slane %v1251_v58, 2  ;;  %v1429_v52 = vrot.slane %v3622_v61, 2 }
 0x204   : > { %v1662_v11 = vmul.f32 %v1646_v8, %v1534_v47  ;;  %2346 = vtanh.f32 %v1617_v30  ;;  %v888_v7 = vmul.f32 %v2926_v16, %v4063_v3  ;;  %v890_v27 = vmul.f32 %v2926_v16, %v3165_v29 }
 0x205   : > { %2348 = vtanh.f32 %v1619_v33  ;;  %v4088_v10 = vrot.slane %v3423_v60, 2  ;;  %v1430_v39 = vsel %vm1414_vm6, %v1425_v59, %v1429_v52  ;;  %v930_v37 = vmul.f32 %v2953_v32, %v3165_v29 }
 0x206   : > { %v1676_v47 = vpack.c.bf16 %v1662_v11, %v1660_v42  ;;  %v1471_v58 = vsel %vm3527_vm15, %v1430_v39, 0.0  ;;  %v4089_v16 = vand.u32 7, %v4079_v12  ;;  %v904_v18 = vadd.f32 %v888_v7, %v862_v34 }
 0x207   : > { %v1426_v55 = vsel %vm1414_vm6, %v4088_v10, %v1425_v59  ;;  %v1487_v26 = vadd.f32 %v1471_v58, %v1370_v14  ;;  %v906_v19 = vadd.f32 %v890_v27, %v864_v53  ;;  %v932_v54 = vmul.f32 %v2953_v32, %v3199_v41 }
 0x208   : > { %v1469_v50 = vsel %vm3517_vm14, %v1426_v55, 0.0  ;;  %vm3665_vm2 = vcmp.ne.s32.totalorder %v4089_v16, 7  ;;  %1851 = vmatmul.mubr.bf16.vlgmr.msra.gmra.mrb[0].mxu1 %v1676_v47  ;;  %v946_v8 = vadd.f32 %v930_v37, %v904_v18  ;;  %v1160_v23 = vmul.f32 %v2911_v5, %v4063_v3  ;;  %v4096_v55 = vld [vmem:[#allocation61_spill] sm:$0xff] }
 0x209   : > { %v1485_v36 = vadd.f32 %v1469_v50, %v1368_v40  ;;  %v1190_v43 = vmul.f32 %v2938_v22, %v3165_v29  ;;  %v1238_v12 = vmul.f32 %v2959_v38, %v3199_v41  ;;  %v3679_v34 = vadd.f32 %v4064_v4, %v1487_v26 }
 0x20a   : > { %v948_v53 = vadd.f32 %v932_v54, %v906_v19  ;;  %v4092_v40 = vrot.slane %v3293_v0, 1  ;;  %v1537_v5 = vmul.f32 0.5, %v3581_v49  ;;  %v1539_v3 = vmul.f32 0.5, %v3587_v51 }
 0x20b   : > { %v1520_v30 = vadd.f32 %v4064_v4, %v1485_v36  ;;  %v4093_v22 = vand.u32 7, %v4084_v25  ;;  %v1208_v29 = vadd.f32 %v1190_v43, %v1160_v23  ;;  %v1554_v14 = vmul.f32 0.044715, %v3679_v34 }
 0x20c   : > { %v1335_v32 = vsel %vm1313_vm3, %v1330_v2, %v4092_v40  ;;  %v1288_v0 = vsel %vm3626_vm0, %v946_v8, 0.0  ;;  %v861_v62 = vmul.f32 %v4073_v35, %v4040_v56  ;;  %v1290_v49 = vsel %vm3641_vm1, %v948_v53, 0.0 }
 0x20d   : > { %vm3690_vm4 = vcmp.ne.s32.totalorder %v4093_v22, 7  ;;  %v1552_v41 = vmul.f32 0.044715, %v1520_v30  ;;  %v1256_v2 = vadd.f32 %v1238_v12, %v1208_v29  ;;  %v863_v51 = vmul.f32 %v4073_v35, %v4076_v63 }
 0x20e   : > { %v887_v25 = vmul.f32 %v4072_v44, %v4076_v63  ;;  %v1570_v33 = vmul.f32 %v1554_v14, %v3679_v34  ;;  %v1373_v59 = vadd.f32 %v1335_v32, %v1288_v0  ;;  %v889_v11 = vmul.f32 %v4072_v44, %v4077_v15  ;;  %v2347_v7 = vpop.eup %2346  ;;  %v4098_v14 = vld [vmem:[#allocation66_spill] sm:$0xff] }
 0x20f   : > { %v1568_v42 = vmul.f32 %v1552_v41, %v1520_v30  ;;  %v1375_v56 = vadd.f32 %v3337_v48, %v1290_v49  ;;  %v1435_v27 = vrot.slane %v1256_v2, 2  ;;  %v931_v39 = vmul.f32 %v2934_v20, %v4096_v55  ;;  %v2349_v37 = vpop.eup %2348  ;;  %v4099_v0 = vld [vmem:[#allocation62_spill] sm:$0xff] }
 0x210   : > { %v903_v10 = vadd.f32 %v887_v25, %v861_v62  ;;  %v1649_v35 = vadd.f32 1.0, %v2347_v7  ;;  %v1586_v50 = vmul.f32 %v1570_v33, %v3679_v34  ;;  %v929_v58 = vmul.f32 %v2934_v20, %v4077_v15  ;;  %v4101_v25 = vld [vmem:[#allocation31_spill] sm:$0xff] }
 0x211   : > { %v1584_v47 = vmul.f32 %v1568_v42, %v1520_v30  ;;  %v1651_v16 = vadd.f32 1.0, %v2349_v37  ;;  %v1436_v44 = vsel %vm1414_vm6, %v1431_v13, %v1435_v27  ;;  %v4097_v48 = vrot.slane %v3329_v57, 2 }
 0x212   : > { %v905_v36 = vadd.f32 %v889_v11, %v863_v51  ;;  %v1665_v26 = vmul.f32 %v1649_v35, %v1537_v5  ;;  %v1602_v54 = vadd.f32 %v1586_v50, %v3679_v34  ;;  %v1474_v8 = vsel %vm3665_vm2, %v1436_v44, 0.0  ;;  %v4104_v35 = vld [vmem:[#allocation63_spill] sm:$0xff] }
 0x213   : > { %v1440_v18 = vsel %vm1414_vm6, %v1435_v27, %v4097_v48  ;;  %v1600_v19 = vadd.f32 %v1584_v47, %v1520_v30  ;;  %v1667_v23 = vmul.f32 %v1651_v16, %v1539_v3  ;;  %v1490_v43 = vadd.f32 %v1474_v8, %v1373_v59  ;;  %v4102_v59 = vld [vmem:[#allocation64_spill] sm:$0xff] }
 0x214   : > { %v1476_v20 = vsel %vm3690_vm4, %v1440_v18, 0.0  ;;  %v947_v46 = vadd.f32 %v931_v39, %v905_v36  ;;  %v1618_v13 = vmul.f32 0.7978846, %v1602_v54  ;;  %v1159_v57 = vmul.f32 %v2904_v1, %v4076_v63 }
 0x215   : > { %v1616_v12 = vmul.f32 0.7978846, %v1600_v19  ;;  %v1492_v53 = vadd.f32 %v1476_v20, %v1375_v56  ;;  %v1679_v40 = vpack.c.bf16 %v1667_v23, %v1665_v26  ;;  %v3728_v32 = vadd.f32 %v4049_v24, %v1490_v43 }
 0x216   : > { %v1189_v5 = vmul.f32 %v2936_v21, %v4077_v15  ;;  %v1237_v3 = vmul.f32 %v2947_v28, %v4096_v55  ;;  %v3736_v22 = vadd.f32 %v4049_v24, %v3377_v17  ;;  %v945_v41 = vadd.f32 %v929_v58, %v903_v10  ;;  %v4103_v55 = vld [vmem:[#allocation65_spill] sm:$0xff] }
 0x217   : > { %2350 = vtanh.f32 %v1616_v12  ;;  %v3739_v29 = vadd.f32 %v4049_v24, %v1492_v53  ;;  %1858 = vmatprep.mubr.bf16.mxu1 %v1679_v40  ;;  %v1557_v1 = vmul.f32 0.044715, %v3728_v32  ;;  %v3744_v21 = vadd.f32 %v4064_v4, %v4098_v14 }
 0x218   : > { %2352 = vtanh.f32 %v1618_v13  ;;  %v1207_v63 = vadd.f32 %v1189_v5, %v1159_v57  ;;  %v1536_v15 = vmul.f32 0.5, %v1520_v30  ;;  %v4100_v17 = vrot.slane %v4099_v0, 1 }
 0x219   : > { %v1559_v28 = vmul.f32 0.044715, %v3739_v29  ;;  %v1573_v2 = vmul.f32 %v1557_v1, %v3728_v32  ;;  %v1289_v51 = vsel %vm3641_vm1, %v947_v46, 0.0  ;;  %v3757_v42 = vadd.f32 %v4049_v24, %v4101_v25 }
 0x21a   : > { %v1333_v62 = vsel %vm1313_vm3, %v1328_v6, %v4100_v17  ;;  %v1255_v49 = vadd.f32 %v1237_v3, %v1207_v63  ;;  %v1287_v33 = vsel %vm3626_vm0, %v945_v41, 0.0  ;;  %v1374_v11 = vadd.f32 %v4102_v59, %v1289_v51 }
 0x21b   : > { %v1575_v30 = vmul.f32 %v1559_v28, %v3739_v29  ;;  %v1563_v31 = vmul.f32 0.044715, %v3736_v22  ;;  %v1589_v6 = vmul.f32 %v1573_v2, %v3728_v32  ;;  %v1372_v7 = vadd.f32 %v1333_v62, %v1287_v33 }
 0x21c   : > { %v1433_v56 = vrot.slane %v1255_v49, 2  ;;  %v1561_v45 = vmul.f32 0.044715, %v3757_v42  ;;  %v1538_v27 = vmul.f32 0.5, %v3679_v34  ;;  %v3771_v9 = vadd.f32 %v4064_v4, %v4103_v55 }
 0x21d   : > { %v1591_v24 = vmul.f32 %v1575_v30, %v3739_v29  ;;  %v1579_v10 = vmul.f32 %v1563_v31, %v3736_v22  ;;  %v1605_v39 = vadd.f32 %v1589_v6, %v3728_v32  ;;  %v4105_v47 = vrot.slane %v4104_v35, 2 }
 0x21e   : > { %v1434_v37 = vsel %vm1414_vm6, %v1429_v52, %v1433_v56  ;;  %v1577_v34 = vmul.f32 %v1561_v45, %v3757_v42  ;;  %v1560_v8 = vmul.f32 0.044715, %v3771_v9  ;;  %v1562_v23 = vmul.f32 0.044715, %v3744_v21 }
 0x21f   : > { %v1438_v50 = vsel %vm1414_vm6, %v1433_v56, %v4105_v47  ;;  %v1607_v58 = vadd.f32 %v1591_v24, %v3739_v29  ;;  %v1473_v16 = vsel %vm3665_vm2, %v1434_v37, 0.0  ;;  %v1595_v48 = vmul.f32 %v1579_v10, %v3736_v22 }
 0x220   : > { %v1475_v44 = vsel %vm3690_vm4, %v1438_v50, 0.0  ;;  %v1621_v18 = vmul.f32 0.7978846, %v1605_v39  ;;  %v1489_v61 = vadd.f32 %v1473_v16, %v1372_v7  ;;  %v1593_v52 = vmul.f32 %v1577_v34, %v3757_v42 }
 0x221   : > { %v1491_v36 = vadd.f32 %v1475_v44, %v1374_v11  ;;  %v2351_v26 = vpop.eup %2350  ;;  %v1623_v19 = vmul.f32 0.7978846, %v1607_v58  ;;  %v1611_v54 = vadd.f32 %v1595_v48, %v3736_v22  ;;  %v1576_v1 = vmul.f32 %v1560_v8, %v3771_v9 }
 0x222   : > { %v2353_v60 = vpop.eup %2352  ;;  %v1648_v20 = vadd.f32 1.0, %v2351_v26  ;;  %2354 = vtanh.f32 %v1621_v18  ;;  %v1524_v38 = vadd.f32 %v4064_v4, %v1489_v61  ;;  %v1609_v12 = vadd.f32 %v1593_v52, %v3757_v42 }
 0x223   : > { %v1526_v43 = vadd.f32 %v4064_v4, %v1491_v36  ;;  %v1650_v46 = vadd.f32 1.0, %v2353_v60  ;;  %2356 = vtanh.f32 %v1623_v19  ;;  %v1627_v13 = vmul.f32 0.7978846, %v1611_v54 }
 0x224   : > { %v1664_v53 = vmul.f32 %v1648_v20, %v1536_v15  ;;  %v1556_v57 = vmul.f32 0.044715, %v1524_v38  ;;  %v1625_v3 = vmul.f32 0.7978846, %v1609_v12  ;;  %v1578_v63 = vmul.f32 %v1562_v23, %v3744_v21 }
 0x225   : > { %v1666_v40 = vmul.f32 %v1650_v46, %v1538_v27  ;;  %v1558_v5 = vmul.f32 0.044715, %v1526_v43  ;;  %2358 = vtanh.f32 %v1627_v13  ;;  %v1592_v0 = vmul.f32 %v1576_v1, %v3771_v9  ;;  %v4106_v13 = vld [vmem:[#allocation19_spill] sm:$0xff] }
 0x226   : > { %v1572_v41 = vmul.f32 %v1556_v57, %v1524_v38  ;;  %2360 = vtanh.f32 %v1625_v3  ;;  %v1594_v17 = vmul.f32 %v1578_v63, %v3744_v21  ;;  %v1541_v7 = vmul.f32 0.5, %v3728_v32 }
 0x227   : > { %v1678_v14 = vpack.c.bf16 %v1666_v40, %v1664_v53  ;;  %v1574_v28 = vmul.f32 %v1558_v5, %v1526_v43  ;;  %v1608_v2 = vadd.f32 %v1592_v0, %v3771_v9  ;;  %v1543_v56 = vmul.f32 0.5, %v3739_v29 }
 0x228   : > { %v1588_v4 = vmul.f32 %v1572_v41, %v1524_v38  ;;  %v1610_v49 = vadd.f32 %v1594_v17, %v3744_v21  ;;  %v1547_v24 = vmul.f32 0.5, %v3736_v22  ;;  %v1545_v47 = vmul.f32 0.5, %v3757_v42 }
 0x229   : > { %1859 = vmatmul.mubr.bf16.gmra.mrb[4].mxu1 %v1678_v14  ;;  %v1590_v15 = vmul.f32 %v1574_v28, %v1526_v43  ;;  %v1624_v33 = vmul.f32 0.7978846, %v1608_v2  ;;  %v1540_v18 = vmul.f32 0.5, %v1524_v38  ;;  %v1542_v22 = vmul.f32 0.5, %v1526_v43 }
 0x22a   : > { %v1604_v62 = vadd.f32 %v1588_v4, %v1524_v38  ;;  %v1626_v6 = vmul.f32 0.7978846, %v1610_v49  ;;  %v1544_v52 = vmul.f32 0.5, %v3771_v9  ;;  %v1546_v42 = vmul.f32 0.5, %v3744_v21  ;;  %v1716_v38 = vld [vmem:[%s3880_s6] sm:$0x1] }
 0x22b   : > { %v1606_v51 = vadd.f32 %v1590_v15, %v1526_v43  ;;  %v1717_v43 = vunpack.c.l.bf16 %v1716_v38 }
 0x22c   : > { %v2355_v25 = vpop.eup %2354  ;;  %v1620_v30 = vmul.f32 0.7978846, %v1604_v62 }
 0x22d   : > { %v2357_v59 = vpop.eup %2356  ;;  %v1653_v11 = vadd.f32 1.0, %v2355_v25  ;;  %v1622_v31 = vmul.f32 0.7978846, %v1606_v51  ;;  %v1721_v53 = vrot.slane %v1717_v43, %v4106_v13 }
 0x22e   : > { %v1655_v45 = vadd.f32 1.0, %v2357_v59  ;;  %2362 = vtanh.f32 %v1620_v30 }
 0x22f   : > { %v2359_v27 = vpop.eup %2358  ;;  %2364 = vtanh.f32 %v1622_v31  ;;  %v1669_v10 = vmul.f32 %v1653_v11, %v1541_v7 }
 0x230   : > { %v1671_v55 = vmul.f32 %v1655_v45, %v1543_v56  ;;  %v1659_v39 = vadd.f32 1.0, %v2359_v27  ;;  %2366 = vtanh.f32 %v1624_v33  ;;  %v2361_v37 = vpop.eup %2360 }
 0x231   : > { %2368 = vtanh.f32 %v1626_v6  ;;  %v1657_v50 = vadd.f32 1.0, %v2361_v37 }
 0x232   : > { %v1681_v35 = vpack.c.bf16 %v1671_v55, %v1669_v10  ;;  %v1675_v34 = vmul.f32 %v1659_v39, %v1547_v24 }
 0x233   : > { %v1673_v32 = vmul.f32 %v1657_v50, %v1545_v47 }
 0x234   : > { %1866 = vmatprep.mubr.bf16.mxu1 %v1681_v35 }
 0x235   : > { %v1683_v29 = vpack.c.bf16 %v1675_v34, %v1673_v32 }
 0x238   : > { %v2363_v58 = vpop.eup %2362 }
 0x239   : > { %v2365_v16 = vpop.eup %2364  ;;  %v1652_v44 = vadd.f32 1.0, %v2363_v58 }
 0x23a   : > { %v2367_v48 = vpop.eup %2366  ;;  %v1654_v61 = vadd.f32 1.0, %v2365_v16 }
 0x23b   : > { %v2369_v36 = vpop.eup %2368  ;;  %v1656_v26 = vadd.f32 1.0, %v2367_v48  ;;  %v1668_v19 = vmul.f32 %v1652_v44, %v1540_v18 }
 0x23c   : > { %v1670_v54 = vmul.f32 %v1654_v61, %v1542_v22  ;;  %v1658_v8 = vadd.f32 1.0, %v2369_v36 }
 0x23d   : > { %v1672_v60 = vmul.f32 %v1656_v26, %v1544_v52 }
 0x23e   : > { %v1680_v23 = vpack.c.bf16 %v1670_v54, %v1668_v19  ;;  %v1674_v20 = vmul.f32 %v1658_v8, %v1546_v42 }
 0x240   : > { %1867 = vmatmul.mubr.bf16.gmra.mrb[8].mxu1 %v1680_v23  ;;  %v1682_v46 = vpack.c.bf16 %v1674_v20, %v1672_v60 }
 0x241   : > { %1874 = vmatprep.mubr.bf16.mxu1 %v1683_v29 }
 0x248   : > { %1875 = vmatmul.mubr.bf16.gmra.mrb[12].mxu1 %v1682_v46 }
 0x2db   : > { %v2169_v9 = vpop.f32.mrb[0].mxu1 }
 0x2dc   : > { %v2170_v12 = vpop.f32.mrb[1].mxu1 }
 0x2dd   : > { %v2171_v57 = vadd.f32 %v2170_v12, %v2169_v9  ;;  %v2172_v21 = vpop.f32.mrb[2].mxu1 }
 0x2de   : > { %v2173_v40 = vpop.f32.mrb[3].mxu1 }
 0x2df   : > { %v2174_v5 = vadd.f32 %v2173_v40, %v2172_v21  ;;  %v1853_v3 = vadd.f32 %v2171_v57, %v1721_v53 }
 0x2e1   : > { %v1856_v41 = vadd.f32 %v2174_v5, %v1721_v53 }
 0x2e3   : > { %v2133_v1 = vpack.c.bf16 %v1856_v41, %v1853_v3 }
 0x2e5   : > { %2134 = vst [vmem:[%s3812_s15] sm:$0xff] %v2133_v1  }
 0x2fc   : > { %v2175_v63 = vpop.f32.mrb[4].mxu1 }
 0x2fd   : > { %v2176_v14 = vpop.f32.mrb[5].mxu1 }
 0x2fe   : > { %v2177_v28 = vadd.f32 %v2176_v14, %v2175_v63  ;;  %v2178_v4 = vpop.f32.mrb[6].mxu1 }
 0x2ff   : > { %v2179_v0 = vpop.f32.mrb[7].mxu1 }
 0x300   : > { %v2180_v17 = vadd.f32 %v2179_v0, %v2178_v4  ;;  %v1861_v15 = vadd.f32 %v2177_v28, %v1721_v53 }
 0x302   : > { %v1864_v62 = vadd.f32 %v2180_v17, %v1721_v53 }
 0x304   : > { %v2138_v2 = vpack.c.bf16 %v1864_v62, %v1861_v15 }
 0x306   : > { %2150 = vst [vmem:[%s3812_s15 + $0x8] sm:$0xff] %v2138_v2  }
 0x313   : > { %v2181_v49 = vpop.f32.mrb[8].mxu1 }
 0x314   : > { %v2182_v51 = vpop.f32.mrb[9].mxu1 }
 0x315   : > { %v2183_v25 = vadd.f32 %v2182_v51, %v2181_v49  ;;  %v2184_v30 = vpop.f32.mrb[10].mxu1 }
 0x316   : > { %v2185_v33 = vpop.f32.mrb[11].mxu1 }
 0x317   : > { %v2186_v59 = vadd.f32 %v2185_v33, %v2184_v30  ;;  %v1869_v11 = vadd.f32 %v2183_v25, %v1721_v53 }
 0x319   : > { %v1872_v31 = vadd.f32 %v2186_v59, %v1721_v53 }
 0x31b   : > { %v2143_v6 = vpack.c.bf16 %v1872_v31, %v1869_v11  ;;  %v2187_v7 = vpop.f32.mrb[12].mxu1 }
 0x31c   : > { %v2188_v56 = vpop.f32.mrb[13].mxu1 }
 0x31d   : > { %2151 = vst [vmem:[%s3812_s15 + $0x10] sm:$0xff] %v2143_v6   ;;  %v2189_v45 = vadd.f32 %v2188_v56, %v2187_v7  ;;  %v2190_v27 = vpop.f32.mrb[14].mxu1 }
 0x31e   : > { %v2191_v24 = vpop.f32.mrb[15].mxu1 }
 0x31f   : > { %v2192_v10 = vadd.f32 %v2191_v24, %v2190_v27  ;;  %v1877_v55 = vadd.f32 %v2189_v45, %v1721_v53 }
 0x321   : > { %v1880_v39 = vadd.f32 %v2192_v10, %v1721_v53 }
 0x323   : > { %v2148_v37 = vpack.c.bf16 %v1880_v39, %v1877_v55 }
 0x325   : > { %2152 = vst [vmem:[%s3812_s15 + $0x18] sm:$0xff] %v2148_v37  }
 0x326   : > { %2497 = shalt.err (!%p2494_p0)
}
 0x327   : > { %s2498_s18 = scalar_lea.hbm %s3824_s30, 512  ;;  %s2502_s15 = scalar_lea.hbm %s4108_s20, 1024 }
 0x328   : > { %p2499_p4 = scmp.ne.s32.totalorder %s3824_s30, %s2498_s18  ;;  %p2503_p12 = scmp.lt.u32.totalorder %s3824_s30, %s4108_s20 }
 0x329   : > { %p2504_p1 = scmp.lt.u32.totalorder %s2502_s15, %s2498_s18  ;;  %p2506_p13 = scmp.lt.u32.totalorder %s2498_s18, %s3824_s30 }
 0x32a   : > { %p2500_p2 = pnand %p2499_p4, %p2783_p10 }
 0x32b   : > { %p2505_p11 = por %p2504_p1, %p2503_p12 }
 0x32c   : > { %p2501_p8 = pneg %p2500_p2 }
 0x32d   : > { %p2507_p6 = por %p2506_p13, %p2505_p11 }
 0x32f   : > { %p2508_p3 = pnand %p2507_p6, %p2501_p8 }
 0x331   : > { %2511 = shalt.err (!%p2508_p3)
}
 0x332   : > { %s2587_s21 = smov 64   ;;  %s2588_s12 = smov 4  }
 0x333   : > { %2207 = dma.vmem_to_hbm [thread:$0]  (%p2783_p10), %s3819_s19, 512, %s3824_s30, %s1924_s17, %s2587_s21, %s2587_s21, %s2588_s12  }
 0x334 PF: > { %s4109_s22 = sld [smem:[#allocation16_spill]]  ;;  %s4110_s9 = sld [smem:[#allocation18_spill]] }
 0x335   : > { %p4112_p7 = scmp.ge.s32.totalorder %s2574_s29, 2 }
 0x33a   : > { %s1954_s11 = sand.u32 1, %s4109_s22   ;;  %p4111_p5 = scmp.ne.s32.totalorder %s4110_s9, 0 }
 0x33b   : > { %s1955_s13 = scalar_lea.sflag [#allocation5], %s1954_s11 }
 0x33c   : > { %p2224_p9 = pnand %p4112_p7, %p4111_p5 }
 0x33e   : > { %2549 = dma.done.wait (!%p2224_p9), %s1955_s13, 512  }
 0x33f   : > { %2551 = vsyncadd (!%p2224_p9), %s1955_s13, 4294966784  ;;  %s25_s29 = sadd.s32 1, %s2574_s29   ;;  %s4113_s7 = smov %s4120_s24 }
 0x340   : > { %p22_p0 = scmp.ge.s32.totalorder %s25_s29, 4   ;;  %s4114_s24 = smov %s2558_s25 }
 0x341   : > { %s4115_s25 = smov %s2562_s26  ;;  %s4116_s26 = smov %s2795_s8 }
 0x342   : > { %s4117_s27 = smov %s2570_s28  ;;  %s4118_s28 = smov %s4113_s7 }
 0x343   :  { %24 = sbr.rel (!%p22_p0) target bundleno = 10 (0xa), region = 106 }
 0x34a   :  { %1960 = vsyncpa [#allocation4], 1 }
 0x34b   :  { %1962 = vsyncpa [#allocation4 + $0x1], 1 }
 0x34c   :  { %1963 = vsyncpa [#allocation7], 1 }
 0x34d   :  { %1964 = vsyncpa [#allocation10], 1 }
 0x34e   :  { %1965 = vsyncpa [#allocation5], 1 }
 0x34f   :  { %1967 = vsyncpa [#allocation5 + $0x1], 1 }

</bundles_post_ra>
